<compile_context>
chip_gen: v7x
topology: tpu7x:2x2x1
jax: 0.10.0
libtpu: 0.0.40
codegen_flags: <defaults>
</compile_context>

<pallas_src>
import functools

import jax
import jax.numpy as jnp
import numpy as np
from jax import lax
from jax.experimental import pallas as pl
from jax.experimental.pallas import tpu as pltpu

# ----------------------------- config ---------------------------------------
EMB_DIM     = 64                      # config.model.associationSpace_dim
ACT_DIM     = 64                      # hard-coded "64" activity concat in forward()
D_MODEL     = EMB_DIM + ACT_DIM       # 128
N_HEADS     = 4                       # config.model.transformer.number_heads
HEAD_DIM    = D_MODEL // N_HEADS      # 32
DIM_FF      = 256                     # config.model.transformer.dim_forward
N_LAYERS    = 2                       # config.model.transformer.num_layers
N_ACTIVES   = 12
N_INACTIVES = 12
LN_EPS      = 1e-5
NEG_INF     = -1e30

PARAM_NAMES = ("wq", "bq", "wk", "bk", "wv", "bv", "wo", "bo",
               "g1", "be1", "w1", "bf1", "w2", "bf2", "g2", "be2")


def _layernorm(x, g, b):
    mu = jnp.mean(x, axis=-1, keepdims=True)
    var = jnp.mean((x - mu) ** 2, axis=-1, keepdims=True)
    return (x - mu) * lax.rsqrt(var + LN_EPS) * g + b


# ----------------------------- fused Pallas kernel ---------------------------
def fused_transformer_kernel(n_act_ref, n_inact_ref,          # scalar prefetch (SMEM)
                             tok_ref,                          # (1, L, EMB_DIM)
                             wq_ref, bq_ref, wk_ref, bk_ref, wv_ref, bv_ref,
                             wo_ref, bo_ref, g1_ref, be1_ref,
                             w1_ref, bf1_ref, w2_ref, bf2_ref,
                             g2_ref, be2_ref,
                             o_ref):                           # (1, L, D_MODEL)
    b = pl.program_id(0)
    L = tok_ref.shape[1]

    # ---- assemble tokens: [embedding | activity flag columns] ----
    emb = tok_ref[0]                                           # (L, EMB_DIM)
    tid = lax.broadcasted_iota(jnp.int32, (L, ACT_DIM), 0)
    act_col = jnp.where(
        (tid >= 1) & (tid < 1 + N_ACTIVES), jnp.float32(1.0),
        jnp.where((tid >= 1 + N_ACTIVES) & (tid < 1 + N_ACTIVES + N_INACTIVES),
                  jnp.float32(-1.0), jnp.float32(0.0)))
    x = jnp.concatenate([emb, act_col], axis=-1)               # (L, D_MODEL)

    # ---- additive key-padding bias (faithful to the python double loop) ----
    na = n_act_ref[b]
    ni = n_inact_ref[b]
    j = lax.broadcasted_iota(jnp.int32, (1, L), 1)
    masked = (j == 0) \
        | ((j >= 1) & (j < 1 + N_ACTIVES) & (j < na + 1)) \
        | ((j >= 1 + N_ACTIVES) & (j < ni + 1 + N_ACTIVES))
    kbias = jnp.where(masked, jnp.float32(NEG_INF), jnp.float32(0.0))   # (1, L)

    scale = jnp.float32(1.0 / np.sqrt(HEAD_DIM))

    # ---- N_LAYERS post-norm encoder layers, statically unrolled ----
    for l in range(N_LAYERS):
        q = jnp.dot(x, wq_ref[l], preferred_element_type=jnp.float32) + bq_ref[l]
        k = jnp.dot(x, wk_ref[l], preferred_element_type=jnp.float32) + bk_ref[l]
        v = jnp.dot(x, wv_ref[l], preferred_element_type=jnp.float32) + bv_ref[l]
        wo = wo_ref[l]                                         # (D_MODEL, D_MODEL)

        attn = jnp.zeros((L, D_MODEL), jnp.float32)
        for h in range(N_HEADS):                               # static unroll over heads
            lo = h * HEAD_DIM
            hi = lo + HEAD_DIM
            qh = q[:, lo:hi]
            kh = k[:, lo:hi]
            vh = v[:, lo:hi]
            # scores without an explicit k transpose: contract dim 1 of q with dim 1 of k
            s = lax.dot_general(qh, kh, (((1,), (1,)), ((), ())),
                                preferred_element_type=jnp.float32) * scale + kbias
            s = s - jnp.max(s, axis=-1, keepdims=True)
            p = jnp.exp(s)
            p = p * pl.reciprocal(jnp.sum(p, axis=-1, keepdims=True), approx=True)
            oh = jnp.dot(p, vh, preferred_element_type=jnp.float32)       # (L, HEAD_DIM)
            # accumulate head contribution through the matching rows of Wo
            attn = attn + jnp.dot(oh, wo[lo:hi, :], preferred_element_type=jnp.float32)
        attn = attn + bo_ref[l]

        # ---- add & norm ----
        x = _layernorm(x + attn, g1_ref[l], be1_ref[l])

        # ---- feed-forward ----
        h1 = jnp.maximum(
            jnp.dot(x, w1_ref[l], preferred_element_type=jnp.float32) + bf1_ref[l], 0.0)
        h2 = jnp.dot(h1, w2_ref[l], preferred_element_type=jnp.float32) + bf2_ref[l]

        # ---- add & norm ----
        x = _layernorm(x + h2, g2_ref[l], be2_ref[l])

    o_ref[0] = x


# ----------------------------- wrapper (module forward) ----------------------
@jax.jit
def transformer_embedding_reference_set(query_emb, sup_act, sup_inact,
                                        n_act, n_inact, ref_set, params):
    B = query_emb.shape[0]
    tok = jnp.concatenate([query_emb, sup_act, sup_inact, ref_set], axis=1)  # (B, L, EMB_DIM)
    L = tok.shape[1]
    weights = [params[name] for name in PARAM_NAMES]

    tok_spec = pl.BlockSpec((1, L, EMB_DIM), lambda b, na, ni: (b, 0, 0))
    # full stacked weight tensors, block-index invariant -> DMA'd once across the grid
    w_specs = [pl.BlockSpec(w.shape, lambda b, na, ni: (0, 0, 0)) for w in weights]

    grid_spec = pltpu.PrefetchScalarGridSpec(
        num_scalar_prefetch=2,
        grid=(B,),
        in_specs=[tok_spec] + w_specs,
        out_specs=pl.BlockSpec((1, L, D_MODEL), lambda b, na, ni: (b, 0, 0)),
    )

    S = pl.pallas_call(
        fused_transformer_kernel,
        out_shape=jax.ShapeDtypeStruct((B, L, D_MODEL), jnp.float32),
        grid_spec=grid_spec,
        compiler_params=pltpu.CompilerParams(dimension_semantics=("parallel",)),
    )(n_act.astype(jnp.int32), n_inact.astype(jnp.int32), tok, *weights)

    q_out = S[:, 0:1, :EMB_DIM]
    a_out = S[:, 1:1 + N_ACTIVES, :EMB_DIM]
    i_out = S[:, 1 + N_ACTIVES:1 + N_ACTIVES + N_INACTIVES, :EMB_DIM]
    return q_out, a_out, i_out


# ----------------------------- pure-JAX reference (for checking) -------------
def reference_forward(query_emb, sup_act, sup_inact, n_act, n_inact, ref_set, params):
    B = query_emb.shape[0]

    def pad(t, val):
        return jnp.concatenate([t, val * jnp.ones_like(t[:, :, :ACT_DIM])], axis=2)

    S = jnp.concatenate([pad(query_emb, 0.0), pad(sup_act, 1.0),
                         pad(sup_inact, -1.0), pad(ref_set, 0.0)], axis=1)
    L = S.shape[1]
    j = jnp.arange(L)[None, :]
    na = n_act[:, None]
    ni = n_inact[:, None]
    m = (j == 0) | ((j >= 1) & (j < 1 + N_ACTIVES) & (j < na + 1)) \
        | ((j >= 1 + N_ACTIVES) & (j < ni + 1 + N_ACTIVES))
    kbias = jnp.where(m, jnp.float32(NEG_INF), jnp.float32(0.0))          # (B, L)

    for l in range(N_LAYERS):
        q = S @ params["wq"][l] + params["bq"][l]
        k = S @ params["wk"][l] + params["bk"][l]
        v = S @ params["wv"][l] + params["bv"][l]
        split = lambda t: t.reshape(B, L, N_HEADS, HEAD_DIM).transpose(0, 2, 1, 3)
        qh, kh, vh = split(q), split(k), split(v)
        s = jnp.einsum("bhqd,bhkd->bhqk", qh, kh) / np.sqrt(HEAD_DIM) + kbias[:, None, None, :]
        p = jax.nn.softmax(s, axis=-1)
        attn = jnp.einsum("bhqk,bhkd->bhqd", p, vh).transpose(0, 2, 1, 3).reshape(B, L, D_MODEL)
        attn = attn @ params["wo"][l] + params["bo"][l]
        S = _layernorm(S + attn, params["g1"][l], params["be1"][l])
        h = jax.nn.relu(S @ params["w1"][l] + params["bf1"][l]) @ params["w2"][l] + params["bf2"][l]
        S = _layernorm(S + h, params["g2"][l], params["be2"][l])

    return (S[:, 0:1, :EMB_DIM],
            S[:, 1:1 + N_ACTIVES, :EMB_DIM],
            S[:, 1 + N_ACTIVES:1 + N_ACTIVES + N_INACTIVES, :EMB_DIM])


# ----------------------------- parameter init --------------------------------
def init_params(key):
    shapes = {
        "wq": (D_MODEL, D_MODEL), "bq": (1, D_MODEL),
        "wk": (D_MODEL, D_MODEL), "bk": (1, D_MODEL),
        "wv": (D_MODEL, D_MODEL), "bv": (1, D_MODEL),
        "wo": (D_MODEL, D_MODEL), "bo": (1, D_MODEL),
        "g1": (1, D_MODEL), "be1": (1, D_MODEL),
        "w1": (D_MODEL, DIM_FF), "bf1": (1, DIM_FF),
        "w2": (DIM_FF, D_MODEL), "bf2": (1, D_MODEL),
        "g2": (1, D_MODEL), "be2": (1, D_MODEL),
    }
    params = {}
    for i, (name, shp) in enumerate(shapes.items()):
        k = jax.random.fold_in(key, i)
        if name in ("g1", "g2"):
            base, scale = 1.0, 0.02
        elif name.startswith("w"):
            base, scale = 0.0, 0.05
        else:
            base, scale = 0.0, 0.02
        params[name] = base + scale * jax.random.normal(k, (N_LAYERS,) + shp, jnp.float32)
    return params


# ----------------------------- main -------------------------------------------
if __name__ == "__main__":
    key = jax.random.PRNGKey(0)
    k0, k1, k2, k3, kp = jax.random.split(key, 5)

    B, R = 2, 7                                 # L = 1 + 12 + 12 + 7 = 32 tokens
    query_emb = jax.random.normal(k0, (B, 1, EMB_DIM), jnp.float32)
    sup_act   = jax.random.normal(k1, (B, N_ACTIVES, EMB_DIM), jnp.float32)
    sup_inact = jax.random.normal(k2, (B, N_INACTIVES, EMB_DIM), jnp.float32)
    ref_set   = jax.random.normal(k3, (B, R, EMB_DIM), jnp.float32)
    n_act     = jnp.array([3, 7], jnp.int32)    # supportSetActivesSize
    n_inact   = jnp.array([2, 12], jnp.int32)   # supportSetInactivesSize

    params = init_params(kp)

    outs = transformer_embedding_reference_set(
        query_emb, sup_act, sup_inact, n_act, n_inact, ref_set, params)
    outs = jax.block_until_ready(outs)

    refs = reference_forward(
        query_emb, sup_act, sup_inact, n_act, n_inact, ref_set, params)
    refs = jax.block_until_ready(refs)

    for o, r in zip(outs, refs):
        np.testing.assert_allclose(np.asarray(o), np.asarray(r), rtol=2e-3, atol=2e-3)

    assert outs[0].shape == (B, 1, EMB_DIM)
    assert outs[1].shape == (B, N_ACTIVES, EMB_DIM)
    assert outs[2].shape == (B, N_INACTIVES, EMB_DIM)

    print("KERNEL_OK")
</pallas_src>

<mosaic_0001>
module attributes {stable_mosaic.version = 11 : i64} {
  func.func @fused_transformer_kernel(%arg0: i32, %arg1: memref<2xi32, #tpu.memory_space<smem>>, %arg2: memref<2xi32, #tpu.memory_space<smem>>, %arg3: memref<1x32x64xf32, #tpu.memory_space<vmem>>, %arg4: memref<2x128x128xf32, #tpu.memory_space<vmem>>, %arg5: memref<2x1x128xf32, #tpu.memory_space<vmem>>, %arg6: memref<2x128x128xf32, #tpu.memory_space<vmem>>, %arg7: memref<2x1x128xf32, #tpu.memory_space<vmem>>, %arg8: memref<2x128x128xf32, #tpu.memory_space<vmem>>, %arg9: memref<2x1x128xf32, #tpu.memory_space<vmem>>, %arg10: memref<2x128x128xf32, #tpu.memory_space<vmem>>, %arg11: memref<2x1x128xf32, #tpu.memory_space<vmem>>, %arg12: memref<2x1x128xf32, #tpu.memory_space<vmem>>, %arg13: memref<2x1x128xf32, #tpu.memory_space<vmem>>, %arg14: memref<2x128x256xf32, #tpu.memory_space<vmem>>, %arg15: memref<2x1x256xf32, #tpu.memory_space<vmem>>, %arg16: memref<2x256x128xf32, #tpu.memory_space<vmem>>, %arg17: memref<2x1x128xf32, #tpu.memory_space<vmem>>, %arg18: memref<2x1x128xf32, #tpu.memory_space<vmem>>, %arg19: memref<2x1x128xf32, #tpu.memory_space<vmem>>, %arg20: memref<1x32x128xf32, #tpu.memory_space<vmem>>) attributes {dimension_semantics = [#tpu.dimension_semantics<parallel>], iteration_bounds = array<i64: 2>, scalar_prefetch = 2 : i64, scratch_operands = 0 : i64, tpu.core_type = #tpu.core_type<tc>, window_params = [{transform_indices = @transform_0, window_bounds = array<i64: 1, 32, 64>}, {pipeline_mode = #tpu.pipeline_mode<synchronous>, transform_indices = @transform_1, window_bounds = array<i64: 2, 128, 128>}, {pipeline_mode = #tpu.pipeline_mode<synchronous>, transform_indices = @transform_2, window_bounds = array<i64: 2, 1, 128>}, {pipeline_mode = #tpu.pipeline_mode<synchronous>, transform_indices = @transform_3, window_bounds = array<i64: 2, 128, 128>}, {pipeline_mode = #tpu.pipeline_mode<synchronous>, transform_indices = @transform_4, window_bounds = array<i64: 2, 1, 128>}, {pipeline_mode = #tpu.pipeline_mode<synchronous>, transform_indices = @transform_5, window_bounds = array<i64: 2, 128, 128>}, {pipeline_mode = #tpu.pipeline_mode<synchronous>, transform_indices = @transform_6, window_bounds = array<i64: 2, 1, 128>}, {pipeline_mode = #tpu.pipeline_mode<synchronous>, transform_indices = @transform_7, window_bounds = array<i64: 2, 128, 128>}, {pipeline_mode = #tpu.pipeline_mode<synchronous>, transform_indices = @transform_8, window_bounds = array<i64: 2, 1, 128>}, {pipeline_mode = #tpu.pipeline_mode<synchronous>, transform_indices = @transform_9, window_bounds = array<i64: 2, 1, 128>}, {pipeline_mode = #tpu.pipeline_mode<synchronous>, transform_indices = @transform_10, window_bounds = array<i64: 2, 1, 128>}, {pipeline_mode = #tpu.pipeline_mode<synchronous>, transform_indices = @transform_11, window_bounds = array<i64: 2, 128, 256>}, {pipeline_mode = #tpu.pipeline_mode<synchronous>, transform_indices = @transform_12, window_bounds = array<i64: 2, 1, 256>}, {pipeline_mode = #tpu.pipeline_mode<synchronous>, transform_indices = @transform_13, window_bounds = array<i64: 2, 256, 128>}, {pipeline_mode = #tpu.pipeline_mode<synchronous>, transform_indices = @transform_14, window_bounds = array<i64: 2, 1, 128>}, {pipeline_mode = #tpu.pipeline_mode<synchronous>, transform_indices = @transform_15, window_bounds = array<i64: 2, 1, 128>}, {pipeline_mode = #tpu.pipeline_mode<synchronous>, transform_indices = @transform_16, window_bounds = array<i64: 2, 1, 128>}, {transform_indices = @transform_17, window_bounds = array<i64: 1, 32, 128>}]} {
    %c0 = arith.constant 0 : index
    %c0_0 = arith.constant 0 : index
    %c0_1 = arith.constant 0 : index
    %0 = vector.load %arg3[%c0, %c0_0, %c0_1] : memref<1x32x64xf32, #tpu.memory_space<vmem>>, vector<1x32x64xf32>
    %1 = vector.shape_cast %0 : vector<1x32x64xf32> to vector<32x64xf32>
    %2 = tpu.iota {dimensions = array<i32: 0>} : vector<32x64xi32>
    %c1_i32 = arith.constant 1 : i32
    %3 = vector.broadcast %c1_i32 : i32 to vector<32x64xi32>
    %4 = arith.cmpi sge, %2, %3 : vector<32x64xi32>
    %c13_i32 = arith.constant 13 : i32
    %5 = vector.broadcast %c13_i32 : i32 to vector<32x64xi32>
    %6 = arith.cmpi slt, %2, %5 : vector<32x64xi32>
    %7 = arith.andi %4, %6 : vector<32x64xi1>
    %c13_i32_2 = arith.constant 13 : i32
    %8 = vector.broadcast %c13_i32_2 : i32 to vector<32x64xi32>
    %9 = arith.cmpi sge, %2, %8 : vector<32x64xi32>
    %c25_i32 = arith.constant 25 : i32
    %10 = vector.broadcast %c25_i32 : i32 to vector<32x64xi32>
    %11 = arith.cmpi slt, %2, %10 : vector<32x64xi32>
    %12 = arith.andi %9, %11 : vector<32x64xi1>
    %cst = arith.constant -1.000000e+00 : f32
    %cst_3 = arith.constant 0.000000e+00 : f32
    %13 = vector.broadcast %cst : f32 to vector<32x64xf32>
    %14 = vector.broadcast %cst_3 : f32 to vector<32x64xf32>
    %15 = arith.select %12, %13, %14 : vector<32x64xi1>, vector<32x64xf32>
    %cst_4 = arith.constant 1.000000e+00 : f32
    %16 = vector.broadcast %cst_4 : f32 to vector<32x64xf32>
    %17 = arith.select %7, %16, %15 : vector<32x64xi1>, vector<32x64xf32>
    %18 = tpu.concatenate %1, %17 in 1 : vector<32x64xf32>, vector<32x64xf32> -> vector<32x128xf32>
    %19 = arith.index_cast %arg0 : i32 to index
    %20 = memref.load %arg1[%19] : memref<2xi32, #tpu.memory_space<smem>>
    %21 = arith.index_cast %arg0 : i32 to index
    %22 = memref.load %arg2[%21] : memref<2xi32, #tpu.memory_space<smem>>
    %23 = tpu.iota {dimensions = array<i32: 1>} : vector<1x32xi32>
    %c0_i32 = arith.constant 0 : i32
    %24 = vector.broadcast %c0_i32 : i32 to vector<1x32xi32>
    %25 = arith.cmpi eq, %23, %24 : vector<1x32xi32>
    %c1_i32_5 = arith.constant 1 : i32
    %26 = vector.broadcast %c1_i32_5 : i32 to vector<1x32xi32>
    %27 = arith.cmpi sge, %23, %26 : vector<1x32xi32>
    %c13_i32_6 = arith.constant 13 : i32
    %28 = vector.broadcast %c13_i32_6 : i32 to vector<1x32xi32>
    %29 = arith.cmpi slt, %23, %28 : vector<1x32xi32>
    %30 = arith.andi %27, %29 : vector<1x32xi1>
    %c1_i32_7 = arith.constant 1 : i32
    %31 = arith.addi %20, %c1_i32_7 : i32
    %32 = vector.broadcast %31 : i32 to vector<1x32xi32>
    %33 = arith.cmpi slt, %23, %32 : vector<1x32xi32>
    %34 = arith.andi %30, %33 : vector<1x32xi1>
    %35 = arith.ori %25, %34 : vector<1x32xi1>
    %c13_i32_8 = arith.constant 13 : i32
    %36 = vector.broadcast %c13_i32_8 : i32 to vector<1x32xi32>
    %37 = arith.cmpi sge, %23, %36 : vector<1x32xi32>
    %c1_i32_9 = arith.constant 1 : i32
    %38 = arith.addi %22, %c1_i32_9 : i32
    %c12_i32 = arith.constant 12 : i32
    %39 = arith.addi %38, %c12_i32 : i32
    %40 = vector.broadcast %39 : i32 to vector<1x32xi32>
    %41 = arith.cmpi slt, %23, %40 : vector<1x32xi32>
    %42 = arith.andi %37, %41 : vector<1x32xi1>
    %43 = arith.ori %35, %42 : vector<1x32xi1>
    %cst_10 = arith.constant -1.000000e+30 : f32
    %cst_11 = arith.constant 0.000000e+00 : f32
    %44 = vector.broadcast %cst_10 : f32 to vector<1x32xf32>
    %45 = vector.broadcast %cst_11 : f32 to vector<1x32xf32>
    %46 = arith.select %43, %44, %45 : vector<1x32xi1>, vector<1x32xf32>
    %c0_12 = arith.constant 0 : index
    %c0_13 = arith.constant 0 : index
    %c0_14 = arith.constant 0 : index
    %47 = vector.load %arg4[%c0_12, %c0_13, %c0_14] : memref<2x128x128xf32, #tpu.memory_space<vmem>>, vector<1x128x128xf32>
    %48 = vector.shape_cast %47 : vector<1x128x128xf32> to vector<128x128xf32>
    %cst_15 = arith.constant dense<0.000000e+00> : vector<32x128xf32>
    %49 = tpu.matmul %18, %48, %cst_15 {dimension_numbers = #tpu.dot_dimension_numbers<[1], [0], [0], [1], [0, 0, 1, 1], [], []>} : vector<32x128xf32>, vector<128x128xf32>, vector<32x128xf32> -> vector<32x128xf32>
    %c0_16 = arith.constant 0 : index
    %c0_17 = arith.constant 0 : index
    %c0_18 = arith.constant 0 : index
    %50 = vector.load %arg5[%c0_16, %c0_17, %c0_18] : memref<2x1x128xf32, #tpu.memory_space<vmem>>, vector<1x1x128xf32>
    %51 = vector.shape_cast %50 : vector<1x1x128xf32> to vector<1x128xf32>
    %52 = vector.broadcast %51 : vector<1x128xf32> to vector<32x128xf32>
    %53 = arith.addf %49, %52 : vector<32x128xf32>
    %c0_19 = arith.constant 0 : index
    %c0_20 = arith.constant 0 : index
    %c0_21 = arith.constant 0 : index
    %54 = vector.load %arg6[%c0_19, %c0_20, %c0_21] : memref<2x128x128xf32, #tpu.memory_space<vmem>>, vector<1x128x128xf32>
    %55 = vector.shape_cast %54 : vector<1x128x128xf32> to vector<128x128xf32>
    %cst_22 = arith.constant dense<0.000000e+00> : vector<32x128xf32>
    %56 = tpu.matmul %18, %55, %cst_22 {dimension_numbers = #tpu.dot_dimension_numbers<[1], [0], [0], [1], [0, 0, 1, 1], [], []>} : vector<32x128xf32>, vector<128x128xf32>, vector<32x128xf32> -> vector<32x128xf32>
    %c0_23 = arith.constant 0 : index
    %c0_24 = arith.constant 0 : index
    %c0_25 = arith.constant 0 : index
    %57 = vector.load %arg7[%c0_23, %c0_24, %c0_25] : memref<2x1x128xf32, #tpu.memory_space<vmem>>, vector<1x1x128xf32>
    %58 = vector.shape_cast %57 : vector<1x1x128xf32> to vector<1x128xf32>
    %59 = vector.broadcast %58 : vector<1x128xf32> to vector<32x128xf32>
    %60 = arith.addf %56, %59 : vector<32x128xf32>
    %c0_26 = arith.constant 0 : index
    %c0_27 = arith.constant 0 : index
    %c0_28 = arith.constant 0 : index
    %61 = vector.load %arg8[%c0_26, %c0_27, %c0_28] : memref<2x128x128xf32, #tpu.memory_space<vmem>>, vector<1x128x128xf32>
    %62 = vector.shape_cast %61 : vector<1x128x128xf32> to vector<128x128xf32>
    %cst_29 = arith.constant dense<0.000000e+00> : vector<32x128xf32>
    %63 = tpu.matmul %18, %62, %cst_29 {dimension_numbers = #tpu.dot_dimension_numbers<[1], [0], [0], [1], [0, 0, 1, 1], [], []>} : vector<32x128xf32>, vector<128x128xf32>, vector<32x128xf32> -> vector<32x128xf32>
    %c0_30 = arith.constant 0 : index
    %c0_31 = arith.constant 0 : index
    %c0_32 = arith.constant 0 : index
    %64 = vector.load %arg9[%c0_30, %c0_31, %c0_32] : memref<2x1x128xf32, #tpu.memory_space<vmem>>, vector<1x1x128xf32>
    %65 = vector.shape_cast %64 : vector<1x1x128xf32> to vector<1x128xf32>
    %66 = vector.broadcast %65 : vector<1x128xf32> to vector<32x128xf32>
    %67 = arith.addf %63, %66 : vector<32x128xf32>
    %c0_33 = arith.constant 0 : index
    %c0_34 = arith.constant 0 : index
    %c0_35 = arith.constant 0 : index
    %68 = vector.load %arg10[%c0_33, %c0_34, %c0_35] : memref<2x128x128xf32, #tpu.memory_space<vmem>>, vector<1x128x128xf32>
    %69 = vector.shape_cast %68 : vector<1x128x128xf32> to vector<128x128xf32>
    %cst_36 = arith.constant 0.000000e+00 : f32
    %70 = vector.broadcast %cst_36 : f32 to vector<32x128xf32>
    %71 = vector.extract_strided_slice %53 {offsets = [0, 0], sizes = [32, 32], strides = [1, 1]} : vector<32x128xf32> to vector<32x32xf32>
    %72 = vector.extract_strided_slice %60 {offsets = [0, 0], sizes = [32, 32], strides = [1, 1]} : vector<32x128xf32> to vector<32x32xf32>
    %73 = vector.extract_strided_slice %67 {offsets = [0, 0], sizes = [32, 32], strides = [1, 1]} : vector<32x128xf32> to vector<32x32xf32>
    %cst_37 = arith.constant dense<0.000000e+00> : vector<32x32xf32>
    %74 = tpu.matmul %71, %72, %cst_37 {dimension_numbers = #tpu.dot_dimension_numbers<[1], [1], [0], [0], [0, 0, 1, 0], [], []>} : vector<32x32xf32>, vector<32x32xf32>, vector<32x32xf32> -> vector<32x32xf32>
    %cst_38 = arith.constant 0.176776692 : f32
    %75 = vector.broadcast %cst_38 : f32 to vector<32x32xf32>
    %76 = arith.mulf %74, %75 : vector<32x32xf32>
    %77 = vector.broadcast %46 : vector<1x32xf32> to vector<32x32xf32>
    %78 = arith.addf %76, %77 : vector<32x32xf32>
    %cst_39 = arith.constant dense<0xFF800000> : vector<32xf32>
    %79 = vector.multi_reduction <maximumf>, %78, %cst_39 [1] : vector<32x32xf32> to vector<32xf32>
    %80 = vector.shape_cast %79 : vector<32xf32> to vector<32x1xf32>
    %81 = vector.broadcast %80 : vector<32x1xf32> to vector<32x32xf32>
    %82 = arith.subf %78, %81 : vector<32x32xf32>
    %83 = math.exp %82 : vector<32x32xf32>
    %cst_40 = arith.constant dense<0.000000e+00> : vector<32xf32>
    %84 = vector.multi_reduction <add>, %83, %cst_40 [1] : vector<32x32xf32> to vector<32xf32>
    %85 = vector.shape_cast %84 : vector<32xf32> to vector<32x1xf32>
    %86 = tpu.reciprocal %85 {approx = true} : vector<32x1xf32> -> vector<32x1xf32>
    %87 = vector.broadcast %86 : vector<32x1xf32> to vector<32x32xf32>
    %88 = arith.mulf %83, %87 : vector<32x32xf32>
    %cst_41 = arith.constant dense<0.000000e+00> : vector<32x32xf32>
    %89 = tpu.matmul %88, %73, %cst_41 {dimension_numbers = #tpu.dot_dimension_numbers<[1], [0], [0], [1], [0, 0, 1, 1], [], []>} : vector<32x32xf32>, vector<32x32xf32>, vector<32x32xf32> -> vector<32x32xf32>
    %90 = vector.extract_strided_slice %69 {offsets = [0, 0], sizes = [32, 128], strides = [1, 1]} : vector<128x128xf32> to vector<32x128xf32>
    %cst_42 = arith.constant dense<0.000000e+00> : vector<32x128xf32>
    %91 = tpu.matmul %89, %90, %cst_42 {dimension_numbers = #tpu.dot_dimension_numbers<[1], [0], [0], [1], [0, 0, 1, 1], [], []>} : vector<32x32xf32>, vector<32x128xf32>, vector<32x128xf32> -> vector<32x128xf32>
    %92 = arith.addf %70, %91 : vector<32x128xf32>
    %93 = vector.extract_strided_slice %53 {offsets = [0, 32], sizes = [32, 32], strides = [1, 1]} : vector<32x128xf32> to vector<32x32xf32>
    %94 = vector.extract_strided_slice %60 {offsets = [0, 32], sizes = [32, 32], strides = [1, 1]} : vector<32x128xf32> to vector<32x32xf32>
    %95 = vector.extract_strided_slice %67 {offsets = [0, 32], sizes = [32, 32], strides = [1, 1]} : vector<32x128xf32> to vector<32x32xf32>
    %cst_43 = arith.constant dense<0.000000e+00> : vector<32x32xf32>
    %96 = tpu.matmul %93, %94, %cst_43 {dimension_numbers = #tpu.dot_dimension_numbers<[1], [1], [0], [0], [0, 0, 1, 0], [], []>} : vector<32x32xf32>, vector<32x32xf32>, vector<32x32xf32> -> vector<32x32xf32>
    %cst_44 = arith.constant 0.176776692 : f32
    %97 = vector.broadcast %cst_44 : f32 to vector<32x32xf32>
    %98 = arith.mulf %96, %97 : vector<32x32xf32>
    %99 = vector.broadcast %46 : vector<1x32xf32> to vector<32x32xf32>
    %100 = arith.addf %98, %99 : vector<32x32xf32>
    %cst_45 = arith.constant dense<0xFF800000> : vector<32xf32>
    %101 = vector.multi_reduction <maximumf>, %100, %cst_45 [1] : vector<32x32xf32> to vector<32xf32>
    %102 = vector.shape_cast %101 : vector<32xf32> to vector<32x1xf32>
    %103 = vector.broadcast %102 : vector<32x1xf32> to vector<32x32xf32>
    %104 = arith.subf %100, %103 : vector<32x32xf32>
    %105 = math.exp %104 : vector<32x32xf32>
    %cst_46 = arith.constant dense<0.000000e+00> : vector<32xf32>
    %106 = vector.multi_reduction <add>, %105, %cst_46 [1] : vector<32x32xf32> to vector<32xf32>
    %107 = vector.shape_cast %106 : vector<32xf32> to vector<32x1xf32>
    %108 = tpu.reciprocal %107 {approx = true} : vector<32x1xf32> -> vector<32x1xf32>
    %109 = vector.broadcast %108 : vector<32x1xf32> to vector<32x32xf32>
    %110 = arith.mulf %105, %109 : vector<32x32xf32>
    %cst_47 = arith.constant dense<0.000000e+00> : vector<32x32xf32>
    %111 = tpu.matmul %110, %95, %cst_47 {dimension_numbers = #tpu.dot_dimension_numbers<[1], [0], [0], [1], [0, 0, 1, 1], [], []>} : vector<32x32xf32>, vector<32x32xf32>, vector<32x32xf32> -> vector<32x32xf32>
    %112 = vector.extract_strided_slice %69 {offsets = [32, 0], sizes = [32, 128], strides = [1, 1]} : vector<128x128xf32> to vector<32x128xf32>
    %cst_48 = arith.constant dense<0.000000e+00> : vector<32x128xf32>
    %113 = tpu.matmul %111, %112, %cst_48 {dimension_numbers = #tpu.dot_dimension_numbers<[1], [0], [0], [1], [0, 0, 1, 1], [], []>} : vector<32x32xf32>, vector<32x128xf32>, vector<32x128xf32> -> vector<32x128xf32>
    %114 = arith.addf %92, %113 : vector<32x128xf32>
    %115 = vector.extract_strided_slice %53 {offsets = [0, 64], sizes = [32, 32], strides = [1, 1]} : vector<32x128xf32> to vector<32x32xf32>
    %116 = vector.extract_strided_slice %60 {offsets = [0, 64], sizes = [32, 32], strides = [1, 1]} : vector<32x128xf32> to vector<32x32xf32>
    %117 = vector.extract_strided_slice %67 {offsets = [0, 64], sizes = [32, 32], strides = [1, 1]} : vector<32x128xf32> to vector<32x32xf32>
    %cst_49 = arith.constant dense<0.000000e+00> : vector<32x32xf32>
    %118 = tpu.matmul %115, %116, %cst_49 {dimension_numbers = #tpu.dot_dimension_numbers<[1], [1], [0], [0], [0, 0, 1, 0], [], []>} : vector<32x32xf32>, vector<32x32xf32>, vector<32x32xf32> -> vector<32x32xf32>
    %cst_50 = arith.constant 0.176776692 : f32
    %119 = vector.broadcast %cst_50 : f32 to vector<32x32xf32>
    %120 = arith.mulf %118, %119 : vector<32x32xf32>
    %121 = vector.broadcast %46 : vector<1x32xf32> to vector<32x32xf32>
    %122 = arith.addf %120, %121 : vector<32x32xf32>
    %cst_51 = arith.constant dense<0xFF800000> : vector<32xf32>
    %123 = vector.multi_reduction <maximumf>, %122, %cst_51 [1] : vector<32x32xf32> to vector<32xf32>
    %124 = vector.shape_cast %123 : vector<32xf32> to vector<32x1xf32>
    %125 = vector.broadcast %124 : vector<32x1xf32> to vector<32x32xf32>
    %126 = arith.subf %122, %125 : vector<32x32xf32>
    %127 = math.exp %126 : vector<32x32xf32>
    %cst_52 = arith.constant dense<0.000000e+00> : vector<32xf32>
    %128 = vector.multi_reduction <add>, %127, %cst_52 [1] : vector<32x32xf32> to vector<32xf32>
    %129 = vector.shape_cast %128 : vector<32xf32> to vector<32x1xf32>
    %130 = tpu.reciprocal %129 {approx = true} : vector<32x1xf32> -> vector<32x1xf32>
    %131 = vector.broadcast %130 : vector<32x1xf32> to vector<32x32xf32>
    %132 = arith.mulf %127, %131 : vector<32x32xf32>
    %cst_53 = arith.constant dense<0.000000e+00> : vector<32x32xf32>
    %133 = tpu.matmul %132, %117, %cst_53 {dimension_numbers = #tpu.dot_dimension_numbers<[1], [0], [0], [1], [0, 0, 1, 1], [], []>} : vector<32x32xf32>, vector<32x32xf32>, vector<32x32xf32> -> vector<32x32xf32>
    %134 = vector.extract_strided_slice %69 {offsets = [64, 0], sizes = [32, 128], strides = [1, 1]} : vector<128x128xf32> to vector<32x128xf32>
    %cst_54 = arith.constant dense<0.000000e+00> : vector<32x128xf32>
    %135 = tpu.matmul %133, %134, %cst_54 {dimension_numbers = #tpu.dot_dimension_numbers<[1], [0], [0], [1], [0, 0, 1, 1], [], []>} : vector<32x32xf32>, vector<32x128xf32>, vector<32x128xf32> -> vector<32x128xf32>
    %136 = arith.addf %114, %135 : vector<32x128xf32>
    %137 = vector.extract_strided_slice %53 {offsets = [0, 96], sizes = [32, 32], strides = [1, 1]} : vector<32x128xf32> to vector<32x32xf32>
    %138 = vector.extract_strided_slice %60 {offsets = [0, 96], sizes = [32, 32], strides = [1, 1]} : vector<32x128xf32> to vector<32x32xf32>
    %139 = vector.extract_strided_slice %67 {offsets = [0, 96], sizes = [32, 32], strides = [1, 1]} : vector<32x128xf32> to vector<32x32xf32>
    %cst_55 = arith.constant dense<0.000000e+00> : vector<32x32xf32>
    %140 = tpu.matmul %137, %138, %cst_55 {dimension_numbers = #tpu.dot_dimension_numbers<[1], [1], [0], [0], [0, 0, 1, 0], [], []>} : vector<32x32xf32>, vector<32x32xf32>, vector<32x32xf32> -> vector<32x32xf32>
    %cst_56 = arith.constant 0.176776692 : f32
    %141 = vector.broadcast %cst_56 : f32 to vector<32x32xf32>
    %142 = arith.mulf %140, %141 : vector<32x32xf32>
    %143 = vector.broadcast %46 : vector<1x32xf32> to vector<32x32xf32>
    %144 = arith.addf %142, %143 : vector<32x32xf32>
    %cst_57 = arith.constant dense<0xFF800000> : vector<32xf32>
    %145 = vector.multi_reduction <maximumf>, %144, %cst_57 [1] : vector<32x32xf32> to vector<32xf32>
    %146 = vector.shape_cast %145 : vector<32xf32> to vector<32x1xf32>
    %147 = vector.broadcast %146 : vector<32x1xf32> to vector<32x32xf32>
    %148 = arith.subf %144, %147 : vector<32x32xf32>
    %149 = math.exp %148 : vector<32x32xf32>
    %cst_58 = arith.constant dense<0.000000e+00> : vector<32xf32>
    %150 = vector.multi_reduction <add>, %149, %cst_58 [1] : vector<32x32xf32> to vector<32xf32>
    %151 = vector.shape_cast %150 : vector<32xf32> to vector<32x1xf32>
    %152 = tpu.reciprocal %151 {approx = true} : vector<32x1xf32> -> vector<32x1xf32>
    %153 = vector.broadcast %152 : vector<32x1xf32> to vector<32x32xf32>
    %154 = arith.mulf %149, %153 : vector<32x32xf32>
    %cst_59 = arith.constant dense<0.000000e+00> : vector<32x32xf32>
    %155 = tpu.matmul %154, %139, %cst_59 {dimension_numbers = #tpu.dot_dimension_numbers<[1], [0], [0], [1], [0, 0, 1, 1], [], []>} : vector<32x32xf32>, vector<32x32xf32>, vector<32x32xf32> -> vector<32x32xf32>
    %156 = vector.extract_strided_slice %69 {offsets = [96, 0], sizes = [32, 128], strides = [1, 1]} : vector<128x128xf32> to vector<32x128xf32>
    %cst_60 = arith.constant dense<0.000000e+00> : vector<32x128xf32>
    %157 = tpu.matmul %155, %156, %cst_60 {dimension_numbers = #tpu.dot_dimension_numbers<[1], [0], [0], [1], [0, 0, 1, 1], [], []>} : vector<32x32xf32>, vector<32x128xf32>, vector<32x128xf32> -> vector<32x128xf32>
    %158 = arith.addf %136, %157 : vector<32x128xf32>
    %c0_61 = arith.constant 0 : index
    %c0_62 = arith.constant 0 : index
    %c0_63 = arith.constant 0 : index
    %159 = vector.load %arg11[%c0_61, %c0_62, %c0_63] : memref<2x1x128xf32, #tpu.memory_space<vmem>>, vector<1x1x128xf32>
    %160 = vector.shape_cast %159 : vector<1x1x128xf32> to vector<1x128xf32>
    %161 = vector.broadcast %160 : vector<1x128xf32> to vector<32x128xf32>
    %162 = arith.addf %158, %161 : vector<32x128xf32>
    %163 = arith.addf %18, %162 : vector<32x128xf32>
    %c0_64 = arith.constant 0 : index
    %c0_65 = arith.constant 0 : index
    %c0_66 = arith.constant 0 : index
    %164 = vector.load %arg12[%c0_64, %c0_65, %c0_66] : memref<2x1x128xf32, #tpu.memory_space<vmem>>, vector<1x1x128xf32>
    %165 = vector.shape_cast %164 : vector<1x1x128xf32> to vector<1x128xf32>
    %c0_67 = arith.constant 0 : index
    %c0_68 = arith.constant 0 : index
    %c0_69 = arith.constant 0 : index
    %166 = vector.load %arg13[%c0_67, %c0_68, %c0_69] : memref<2x1x128xf32, #tpu.memory_space<vmem>>, vector<1x1x128xf32>
    %167 = vector.shape_cast %166 : vector<1x1x128xf32> to vector<1x128xf32>
    %cst_70 = arith.constant dense<0.000000e+00> : vector<32xf32>
    %168 = vector.multi_reduction <add>, %163, %cst_70 [1] : vector<32x128xf32> to vector<32xf32>
    %169 = vector.shape_cast %168 : vector<32xf32> to vector<32x1xf32>
    %cst_71 = arith.constant 1.280000e+02 : f32
    %170 = vector.broadcast %cst_71 : f32 to vector<32x1xf32>
    %171 = arith.divf %169, %170 : vector<32x1xf32>
    %172 = vector.broadcast %171 : vector<32x1xf32> to vector<32x128xf32>
    %173 = arith.subf %163, %172 : vector<32x128xf32>
    %174 = arith.mulf %173, %173 : vector<32x128xf32>
    %cst_72 = arith.constant dense<0.000000e+00> : vector<32xf32>
    %175 = vector.multi_reduction <add>, %174, %cst_72 [1] : vector<32x128xf32> to vector<32xf32>
    %176 = vector.shape_cast %175 : vector<32xf32> to vector<32x1xf32>
    %cst_73 = arith.constant 1.280000e+02 : f32
    %177 = vector.broadcast %cst_73 : f32 to vector<32x1xf32>
    %178 = arith.divf %176, %177 : vector<32x1xf32>
    %179 = vector.broadcast %171 : vector<32x1xf32> to vector<32x128xf32>
    %180 = arith.subf %163, %179 : vector<32x128xf32>
    %cst_74 = arith.constant 9.99999974E-6 : f32
    %181 = vector.broadcast %cst_74 : f32 to vector<32x1xf32>
    %182 = arith.addf %178, %181 : vector<32x1xf32>
    %183 = math.rsqrt %182 : vector<32x1xf32>
    %184 = vector.broadcast %183 : vector<32x1xf32> to vector<32x128xf32>
    %185 = arith.mulf %180, %184 : vector<32x128xf32>
    %186 = vector.broadcast %165 : vector<1x128xf32> to vector<32x128xf32>
    %187 = arith.mulf %185, %186 : vector<32x128xf32>
    %188 = vector.broadcast %167 : vector<1x128xf32> to vector<32x128xf32>
    %189 = arith.addf %187, %188 : vector<32x128xf32>
    %c0_75 = arith.constant 0 : index
    %c0_76 = arith.constant 0 : index
    %c0_77 = arith.constant 0 : index
    %190 = vector.load %arg14[%c0_75, %c0_76, %c0_77] : memref<2x128x256xf32, #tpu.memory_space<vmem>>, vector<1x128x256xf32>
    %191 = vector.shape_cast %190 : vector<1x128x256xf32> to vector<128x256xf32>
    %cst_78 = arith.constant dense<0.000000e+00> : vector<32x256xf32>
    %192 = tpu.matmul %189, %191, %cst_78 {dimension_numbers = #tpu.dot_dimension_numbers<[1], [0], [0], [1], [0, 0, 1, 1], [], []>} : vector<32x128xf32>, vector<128x256xf32>, vector<32x256xf32> -> vector<32x256xf32>
    %c0_79 = arith.constant 0 : index
    %c0_80 = arith.constant 0 : index
    %c0_81 = arith.constant 0 : index
    %193 = vector.load %arg15[%c0_79, %c0_80, %c0_81] : memref<2x1x256xf32, #tpu.memory_space<vmem>>, vector<1x1x256xf32>
    %194 = vector.shape_cast %193 : vector<1x1x256xf32> to vector<1x256xf32>
    %195 = vector.broadcast %194 : vector<1x256xf32> to vector<32x256xf32>
    %196 = arith.addf %192, %195 : vector<32x256xf32>
    %cst_82 = arith.constant 0.000000e+00 : f32
    %197 = vector.broadcast %cst_82 : f32 to vector<32x256xf32>
    %198 = arith.maximumf %196, %197 : vector<32x256xf32>
    %c0_83 = arith.constant 0 : index
    %c0_84 = arith.constant 0 : index
    %c0_85 = arith.constant 0 : index
    %199 = vector.load %arg16[%c0_83, %c0_84, %c0_85] : memref<2x256x128xf32, #tpu.memory_space<vmem>>, vector<1x256x128xf32>
    %200 = vector.shape_cast %199 : vector<1x256x128xf32> to vector<256x128xf32>
    %cst_86 = arith.constant dense<0.000000e+00> : vector<32x128xf32>
    %201 = tpu.matmul %198, %200, %cst_86 {dimension_numbers = #tpu.dot_dimension_numbers<[1], [0], [0], [1], [0, 0, 1, 1], [], []>} : vector<32x256xf32>, vector<256x128xf32>, vector<32x128xf32> -> vector<32x128xf32>
    %c0_87 = arith.constant 0 : index
    %c0_88 = arith.constant 0 : index
    %c0_89 = arith.constant 0 : index
    %202 = vector.load %arg17[%c0_87, %c0_88, %c0_89] : memref<2x1x128xf32, #tpu.memory_space<vmem>>, vector<1x1x128xf32>
    %203 = vector.shape_cast %202 : vector<1x1x128xf32> to vector<1x128xf32>
    %204 = vector.broadcast %203 : vector<1x128xf32> to vector<32x128xf32>
    %205 = arith.addf %201, %204 : vector<32x128xf32>
    %206 = arith.addf %189, %205 : vector<32x128xf32>
    %c0_90 = arith.constant 0 : index
    %c0_91 = arith.constant 0 : index
    %c0_92 = arith.constant 0 : index
    %207 = vector.load %arg18[%c0_90, %c0_91, %c0_92] : memref<2x1x128xf32, #tpu.memory_space<vmem>>, vector<1x1x128xf32>
    %208 = vector.shape_cast %207 : vector<1x1x128xf32> to vector<1x128xf32>
    %c0_93 = arith.constant 0 : index
    %c0_94 = arith.constant 0 : index
    %c0_95 = arith.constant 0 : index
    %209 = vector.load %arg19[%c0_93, %c0_94, %c0_95] : memref<2x1x128xf32, #tpu.memory_space<vmem>>, vector<1x1x128xf32>
    %210 = vector.shape_cast %209 : vector<1x1x128xf32> to vector<1x128xf32>
    %cst_96 = arith.constant dense<0.000000e+00> : vector<32xf32>
    %211 = vector.multi_reduction <add>, %206, %cst_96 [1] : vector<32x128xf32> to vector<32xf32>
    %212 = vector.shape_cast %211 : vector<32xf32> to vector<32x1xf32>
    %cst_97 = arith.constant 1.280000e+02 : f32
    %213 = vector.broadcast %cst_97 : f32 to vector<32x1xf32>
    %214 = arith.divf %212, %213 : vector<32x1xf32>
    %215 = vector.broadcast %214 : vector<32x1xf32> to vector<32x128xf32>
    %216 = arith.subf %206, %215 : vector<32x128xf32>
    %217 = arith.mulf %216, %216 : vector<32x128xf32>
    %cst_98 = arith.constant dense<0.000000e+00> : vector<32xf32>
    %218 = vector.multi_reduction <add>, %217, %cst_98 [1] : vector<32x128xf32> to vector<32xf32>
    %219 = vector.shape_cast %218 : vector<32xf32> to vector<32x1xf32>
    %cst_99 = arith.constant 1.280000e+02 : f32
    %220 = vector.broadcast %cst_99 : f32 to vector<32x1xf32>
    %221 = arith.divf %219, %220 : vector<32x1xf32>
    %222 = vector.broadcast %214 : vector<32x1xf32> to vector<32x128xf32>
    %223 = arith.subf %206, %222 : vector<32x128xf32>
    %cst_100 = arith.constant 9.99999974E-6 : f32
    %224 = vector.broadcast %cst_100 : f32 to vector<32x1xf32>
    %225 = arith.addf %221, %224 : vector<32x1xf32>
    %226 = math.rsqrt %225 : vector<32x1xf32>
    %227 = vector.broadcast %226 : vector<32x1xf32> to vector<32x128xf32>
    %228 = arith.mulf %223, %227 : vector<32x128xf32>
    %229 = vector.broadcast %208 : vector<1x128xf32> to vector<32x128xf32>
    %230 = arith.mulf %228, %229 : vector<32x128xf32>
    %231 = vector.broadcast %210 : vector<1x128xf32> to vector<32x128xf32>
    %232 = arith.addf %230, %231 : vector<32x128xf32>
    %c1 = arith.constant 1 : index
    %c0_101 = arith.constant 0 : index
    %c0_102 = arith.constant 0 : index
    %233 = vector.load %arg4[%c1, %c0_101, %c0_102] : memref<2x128x128xf32, #tpu.memory_space<vmem>>, vector<1x128x128xf32>
    %234 = vector.shape_cast %233 : vector<1x128x128xf32> to vector<128x128xf32>
    %cst_103 = arith.constant dense<0.000000e+00> : vector<32x128xf32>
    %235 = tpu.matmul %232, %234, %cst_103 {dimension_numbers = #tpu.dot_dimension_numbers<[1], [0], [0], [1], [0, 0, 1, 1], [], []>} : vector<32x128xf32>, vector<128x128xf32>, vector<32x128xf32> -> vector<32x128xf32>
    %c1_104 = arith.constant 1 : index
    %c0_105 = arith.constant 0 : index
    %c0_106 = arith.constant 0 : index
    %236 = vector.load %arg5[%c1_104, %c0_105, %c0_106] : memref<2x1x128xf32, #tpu.memory_space<vmem>>, vector<1x1x128xf32>
    %237 = vector.shape_cast %236 : vector<1x1x128xf32> to vector<1x128xf32>
    %238 = vector.broadcast %237 : vector<1x128xf32> to vector<32x128xf32>
    %239 = arith.addf %235, %238 : vector<32x128xf32>
    %c1_107 = arith.constant 1 : index
    %c0_108 = arith.constant 0 : index
    %c0_109 = arith.constant 0 : index
    %240 = vector.load %arg6[%c1_107, %c0_108, %c0_109] : memref<2x128x128xf32, #tpu.memory_space<vmem>>, vector<1x128x128xf32>
    %241 = vector.shape_cast %240 : vector<1x128x128xf32> to vector<128x128xf32>
    %cst_110 = arith.constant dense<0.000000e+00> : vector<32x128xf32>
    %242 = tpu.matmul %232, %241, %cst_110 {dimension_numbers = #tpu.dot_dimension_numbers<[1], [0], [0], [1], [0, 0, 1, 1], [], []>} : vector<32x128xf32>, vector<128x128xf32>, vector<32x128xf32> -> vector<32x128xf32>
    %c1_111 = arith.constant 1 : index
    %c0_112 = arith.constant 0 : index
    %c0_113 = arith.constant 0 : index
    %243 = vector.load %arg7[%c1_111, %c0_112, %c0_113] : memref<2x1x128xf32, #tpu.memory_space<vmem>>, vector<1x1x128xf32>
    %244 = vector.shape_cast %243 : vector<1x1x128xf32> to vector<1x128xf32>
    %245 = vector.broadcast %244 : vector<1x128xf32> to vector<32x128xf32>
    %246 = arith.addf %242, %245 : vector<32x128xf32>
    %c1_114 = arith.constant 1 : index
    %c0_115 = arith.constant 0 : index
    %c0_116 = arith.constant 0 : index
    %247 = vector.load %arg8[%c1_114, %c0_115, %c0_116] : memref<2x128x128xf32, #tpu.memory_space<vmem>>, vector<1x128x128xf32>
    %248 = vector.shape_cast %247 : vector<1x128x128xf32> to vector<128x128xf32>
    %cst_117 = arith.constant dense<0.000000e+00> : vector<32x128xf32>
    %249 = tpu.matmul %232, %248, %cst_117 {dimension_numbers = #tpu.dot_dimension_numbers<[1], [0], [0], [1], [0, 0, 1, 1], [], []>} : vector<32x128xf32>, vector<128x128xf32>, vector<32x128xf32> -> vector<32x128xf32>
    %c1_118 = arith.constant 1 : index
    %c0_119 = arith.constant 0 : index
    %c0_120 = arith.constant 0 : index
    %250 = vector.load %arg9[%c1_118, %c0_119, %c0_120] : memref<2x1x128xf32, #tpu.memory_space<vmem>>, vector<1x1x128xf32>
    %251 = vector.shape_cast %250 : vector<1x1x128xf32> to vector<1x128xf32>
    %252 = vector.broadcast %251 : vector<1x128xf32> to vector<32x128xf32>
    %253 = arith.addf %249, %252 : vector<32x128xf32>
    %c1_121 = arith.constant 1 : index
    %c0_122 = arith.constant 0 : index
    %c0_123 = arith.constant 0 : index
    %254 = vector.load %arg10[%c1_121, %c0_122, %c0_123] : memref<2x128x128xf32, #tpu.memory_space<vmem>>, vector<1x128x128xf32>
    %255 = vector.shape_cast %254 : vector<1x128x128xf32> to vector<128x128xf32>
    %cst_124 = arith.constant 0.000000e+00 : f32
    %256 = vector.broadcast %cst_124 : f32 to vector<32x128xf32>
    %257 = vector.extract_strided_slice %239 {offsets = [0, 0], sizes = [32, 32], strides = [1, 1]} : vector<32x128xf32> to vector<32x32xf32>
    %258 = vector.extract_strided_slice %246 {offsets = [0, 0], sizes = [32, 32], strides = [1, 1]} : vector<32x128xf32> to vector<32x32xf32>
    %259 = vector.extract_strided_slice %253 {offsets = [0, 0], sizes = [32, 32], strides = [1, 1]} : vector<32x128xf32> to vector<32x32xf32>
    %cst_125 = arith.constant dense<0.000000e+00> : vector<32x32xf32>
    %260 = tpu.matmul %257, %258, %cst_125 {dimension_numbers = #tpu.dot_dimension_numbers<[1], [1], [0], [0], [0, 0, 1, 0], [], []>} : vector<32x32xf32>, vector<32x32xf32>, vector<32x32xf32> -> vector<32x32xf32>
    %cst_126 = arith.constant 0.176776692 : f32
    %261 = vector.broadcast %cst_126 : f32 to vector<32x32xf32>
    %262 = arith.mulf %260, %261 : vector<32x32xf32>
    %263 = vector.broadcast %46 : vector<1x32xf32> to vector<32x32xf32>
    %264 = arith.addf %262, %263 : vector<32x32xf32>
    %cst_127 = arith.constant dense<0xFF800000> : vector<32xf32>
    %265 = vector.multi_reduction <maximumf>, %264, %cst_127 [1] : vector<32x32xf32> to vector<32xf32>
    %266 = vector.shape_cast %265 : vector<32xf32> to vector<32x1xf32>
    %267 = vector.broadcast %266 : vector<32x1xf32> to vector<32x32xf32>
    %268 = arith.subf %264, %267 : vector<32x32xf32>
    %269 = math.exp %268 : vector<32x32xf32>
    %cst_128 = arith.constant dense<0.000000e+00> : vector<32xf32>
    %270 = vector.multi_reduction <add>, %269, %cst_128 [1] : vector<32x32xf32> to vector<32xf32>
    %271 = vector.shape_cast %270 : vector<32xf32> to vector<32x1xf32>
    %272 = tpu.reciprocal %271 {approx = true} : vector<32x1xf32> -> vector<32x1xf32>
    %273 = vector.broadcast %272 : vector<32x1xf32> to vector<32x32xf32>
    %274 = arith.mulf %269, %273 : vector<32x32xf32>
    %cst_129 = arith.constant dense<0.000000e+00> : vector<32x32xf32>
    %275 = tpu.matmul %274, %259, %cst_129 {dimension_numbers = #tpu.dot_dimension_numbers<[1], [0], [0], [1], [0, 0, 1, 1], [], []>} : vector<32x32xf32>, vector<32x32xf32>, vector<32x32xf32> -> vector<32x32xf32>
    %276 = vector.extract_strided_slice %255 {offsets = [0, 0], sizes = [32, 128], strides = [1, 1]} : vector<128x128xf32> to vector<32x128xf32>
    %cst_130 = arith.constant dense<0.000000e+00> : vector<32x128xf32>
    %277 = tpu.matmul %275, %276, %cst_130 {dimension_numbers = #tpu.dot_dimension_numbers<[1], [0], [0], [1], [0, 0, 1, 1], [], []>} : vector<32x32xf32>, vector<32x128xf32>, vector<32x128xf32> -> vector<32x128xf32>
    %278 = arith.addf %256, %277 : vector<32x128xf32>
    %279 = vector.extract_strided_slice %239 {offsets = [0, 32], sizes = [32, 32], strides = [1, 1]} : vector<32x128xf32> to vector<32x32xf32>
    %280 = vector.extract_strided_slice %246 {offsets = [0, 32], sizes = [32, 32], strides = [1, 1]} : vector<32x128xf32> to vector<32x32xf32>
    %281 = vector.extract_strided_slice %253 {offsets = [0, 32], sizes = [32, 32], strides = [1, 1]} : vector<32x128xf32> to vector<32x32xf32>
    %cst_131 = arith.constant dense<0.000000e+00> : vector<32x32xf32>
    %282 = tpu.matmul %279, %280, %cst_131 {dimension_numbers = #tpu.dot_dimension_numbers<[1], [1], [0], [0], [0, 0, 1, 0], [], []>} : vector<32x32xf32>, vector<32x32xf32>, vector<32x32xf32> -> vector<32x32xf32>
    %cst_132 = arith.constant 0.176776692 : f32
    %283 = vector.broadcast %cst_132 : f32 to vector<32x32xf32>
    %284 = arith.mulf %282, %283 : vector<32x32xf32>
    %285 = vector.broadcast %46 : vector<1x32xf32> to vector<32x32xf32>
    %286 = arith.addf %284, %285 : vector<32x32xf32>
    %cst_133 = arith.constant dense<0xFF800000> : vector<32xf32>
    %287 = vector.multi_reduction <maximumf>, %286, %cst_133 [1] : vector<32x32xf32> to vector<32xf32>
    %288 = vector.shape_cast %287 : vector<32xf32> to vector<32x1xf32>
    %289 = vector.broadcast %288 : vector<32x1xf32> to vector<32x32xf32>
    %290 = arith.subf %286, %289 : vector<32x32xf32>
    %291 = math.exp %290 : vector<32x32xf32>
    %cst_134 = arith.constant dense<0.000000e+00> : vector<32xf32>
    %292 = vector.multi_reduction <add>, %291, %cst_134 [1] : vector<32x32xf32> to vector<32xf32>
    %293 = vector.shape_cast %292 : vector<32xf32> to vector<32x1xf32>
    %294 = tpu.reciprocal %293 {approx = true} : vector<32x1xf32> -> vector<32x1xf32>
    %295 = vector.broadcast %294 : vector<32x1xf32> to vector<32x32xf32>
    %296 = arith.mulf %291, %295 : vector<32x32xf32>
    %cst_135 = arith.constant dense<0.000000e+00> : vector<32x32xf32>
    %297 = tpu.matmul %296, %281, %cst_135 {dimension_numbers = #tpu.dot_dimension_numbers<[1], [0], [0], [1], [0, 0, 1, 1], [], []>} : vector<32x32xf32>, vector<32x32xf32>, vector<32x32xf32> -> vector<32x32xf32>
    %298 = vector.extract_strided_slice %255 {offsets = [32, 0], sizes = [32, 128], strides = [1, 1]} : vector<128x128xf32> to vector<32x128xf32>
    %cst_136 = arith.constant dense<0.000000e+00> : vector<32x128xf32>
    %299 = tpu.matmul %297, %298, %cst_136 {dimension_numbers = #tpu.dot_dimension_numbers<[1], [0], [0], [1], [0, 0, 1, 1], [], []>} : vector<32x32xf32>, vector<32x128xf32>, vector<32x128xf32> -> vector<32x128xf32>
    %300 = arith.addf %278, %299 : vector<32x128xf32>
    %301 = vector.extract_strided_slice %239 {offsets = [0, 64], sizes = [32, 32], strides = [1, 1]} : vector<32x128xf32> to vector<32x32xf32>
    %302 = vector.extract_strided_slice %246 {offsets = [0, 64], sizes = [32, 32], strides = [1, 1]} : vector<32x128xf32> to vector<32x32xf32>
    %303 = vector.extract_strided_slice %253 {offsets = [0, 64], sizes = [32, 32], strides = [1, 1]} : vector<32x128xf32> to vector<32x32xf32>
    %cst_137 = arith.constant dense<0.000000e+00> : vector<32x32xf32>
    %304 = tpu.matmul %301, %302, %cst_137 {dimension_numbers = #tpu.dot_dimension_numbers<[1], [1], [0], [0], [0, 0, 1, 0], [], []>} : vector<32x32xf32>, vector<32x32xf32>, vector<32x32xf32> -> vector<32x32xf32>
    %cst_138 = arith.constant 0.176776692 : f32
    %305 = vector.broadcast %cst_138 : f32 to vector<32x32xf32>
    %306 = arith.mulf %304, %305 : vector<32x32xf32>
    %307 = vector.broadcast %46 : vector<1x32xf32> to vector<32x32xf32>
    %308 = arith.addf %306, %307 : vector<32x32xf32>
    %cst_139 = arith.constant dense<0xFF800000> : vector<32xf32>
    %309 = vector.multi_reduction <maximumf>, %308, %cst_139 [1] : vector<32x32xf32> to vector<32xf32>
    %310 = vector.shape_cast %309 : vector<32xf32> to vector<32x1xf32>
    %311 = vector.broadcast %310 : vector<32x1xf32> to vector<32x32xf32>
    %312 = arith.subf %308, %311 : vector<32x32xf32>
    %313 = math.exp %312 : vector<32x32xf32>
    %cst_140 = arith.constant dense<0.000000e+00> : vector<32xf32>
    %314 = vector.multi_reduction <add>, %313, %cst_140 [1] : vector<32x32xf32> to vector<32xf32>
    %315 = vector.shape_cast %314 : vector<32xf32> to vector<32x1xf32>
    %316 = tpu.reciprocal %315 {approx = true} : vector<32x1xf32> -> vector<32x1xf32>
    %317 = vector.broadcast %316 : vector<32x1xf32> to vector<32x32xf32>
    %318 = arith.mulf %313, %317 : vector<32x32xf32>
    %cst_141 = arith.constant dense<0.000000e+00> : vector<32x32xf32>
    %319 = tpu.matmul %318, %303, %cst_141 {dimension_numbers = #tpu.dot_dimension_numbers<[1], [0], [0], [1], [0, 0, 1, 1], [], []>} : vector<32x32xf32>, vector<32x32xf32>, vector<32x32xf32> -> vector<32x32xf32>
    %320 = vector.extract_strided_slice %255 {offsets = [64, 0], sizes = [32, 128], strides = [1, 1]} : vector<128x128xf32> to vector<32x128xf32>
    %cst_142 = arith.constant dense<0.000000e+00> : vector<32x128xf32>
    %321 = tpu.matmul %319, %320, %cst_142 {dimension_numbers = #tpu.dot_dimension_numbers<[1], [0], [0], [1], [0, 0, 1, 1], [], []>} : vector<32x32xf32>, vector<32x128xf32>, vector<32x128xf32> -> vector<32x128xf32>
    %322 = arith.addf %300, %321 : vector<32x128xf32>
    %323 = vector.extract_strided_slice %239 {offsets = [0, 96], sizes = [32, 32], strides = [1, 1]} : vector<32x128xf32> to vector<32x32xf32>
    %324 = vector.extract_strided_slice %246 {offsets = [0, 96], sizes = [32, 32], strides = [1, 1]} : vector<32x128xf32> to vector<32x32xf32>
    %325 = vector.extract_strided_slice %253 {offsets = [0, 96], sizes = [32, 32], strides = [1, 1]} : vector<32x128xf32> to vector<32x32xf32>
    %cst_143 = arith.constant dense<0.000000e+00> : vector<32x32xf32>
    %326 = tpu.matmul %323, %324, %cst_143 {dimension_numbers = #tpu.dot_dimension_numbers<[1], [1], [0], [0], [0, 0, 1, 0], [], []>} : vector<32x32xf32>, vector<32x32xf32>, vector<32x32xf32> -> vector<32x32xf32>
    %cst_144 = arith.constant 0.176776692 : f32
    %327 = vector.broadcast %cst_144 : f32 to vector<32x32xf32>
    %328 = arith.mulf %326, %327 : vector<32x32xf32>
    %329 = vector.broadcast %46 : vector<1x32xf32> to vector<32x32xf32>
    %330 = arith.addf %328, %329 : vector<32x32xf32>
    %cst_145 = arith.constant dense<0xFF800000> : vector<32xf32>
    %331 = vector.multi_reduction <maximumf>, %330, %cst_145 [1] : vector<32x32xf32> to vector<32xf32>
    %332 = vector.shape_cast %331 : vector<32xf32> to vector<32x1xf32>
    %333 = vector.broadcast %332 : vector<32x1xf32> to vector<32x32xf32>
    %334 = arith.subf %330, %333 : vector<32x32xf32>
    %335 = math.exp %334 : vector<32x32xf32>
    %cst_146 = arith.constant dense<0.000000e+00> : vector<32xf32>
    %336 = vector.multi_reduction <add>, %335, %cst_146 [1] : vector<32x32xf32> to vector<32xf32>
    %337 = vector.shape_cast %336 : vector<32xf32> to vector<32x1xf32>
    %338 = tpu.reciprocal %337 {approx = true} : vector<32x1xf32> -> vector<32x1xf32>
    %339 = vector.broadcast %338 : vector<32x1xf32> to vector<32x32xf32>
    %340 = arith.mulf %335, %339 : vector<32x32xf32>
    %cst_147 = arith.constant dense<0.000000e+00> : vector<32x32xf32>
    %341 = tpu.matmul %340, %325, %cst_147 {dimension_numbers = #tpu.dot_dimension_numbers<[1], [0], [0], [1], [0, 0, 1, 1], [], []>} : vector<32x32xf32>, vector<32x32xf32>, vector<32x32xf32> -> vector<32x32xf32>
    %342 = vector.extract_strided_slice %255 {offsets = [96, 0], sizes = [32, 128], strides = [1, 1]} : vector<128x128xf32> to vector<32x128xf32>
    %cst_148 = arith.constant dense<0.000000e+00> : vector<32x128xf32>
    %343 = tpu.matmul %341, %342, %cst_148 {dimension_numbers = #tpu.dot_dimension_numbers<[1], [0], [0], [1], [0, 0, 1, 1], [], []>} : vector<32x32xf32>, vector<32x128xf32>, vector<32x128xf32> -> vector<32x128xf32>
    %344 = arith.addf %322, %343 : vector<32x128xf32>
    %c1_149 = arith.constant 1 : index
    %c0_150 = arith.constant 0 : index
    %c0_151 = arith.constant 0 : index
    %345 = vector.load %arg11[%c1_149, %c0_150, %c0_151] : memref<2x1x128xf32, #tpu.memory_space<vmem>>, vector<1x1x128xf32>
    %346 = vector.shape_cast %345 : vector<1x1x128xf32> to vector<1x128xf32>
    %347 = vector.broadcast %346 : vector<1x128xf32> to vector<32x128xf32>
    %348 = arith.addf %344, %347 : vector<32x128xf32>
    %349 = arith.addf %232, %348 : vector<32x128xf32>
    %c1_152 = arith.constant 1 : index
    %c0_153 = arith.constant 0 : index
    %c0_154 = arith.constant 0 : index
    %350 = vector.load %arg12[%c1_152, %c0_153, %c0_154] : memref<2x1x128xf32, #tpu.memory_space<vmem>>, vector<1x1x128xf32>
    %351 = vector.shape_cast %350 : vector<1x1x128xf32> to vector<1x128xf32>
    %c1_155 = arith.constant 1 : index
    %c0_156 = arith.constant 0 : index
    %c0_157 = arith.constant 0 : index
    %352 = vector.load %arg13[%c1_155, %c0_156, %c0_157] : memref<2x1x128xf32, #tpu.memory_space<vmem>>, vector<1x1x128xf32>
    %353 = vector.shape_cast %352 : vector<1x1x128xf32> to vector<1x128xf32>
    %cst_158 = arith.constant dense<0.000000e+00> : vector<32xf32>
    %354 = vector.multi_reduction <add>, %349, %cst_158 [1] : vector<32x128xf32> to vector<32xf32>
    %355 = vector.shape_cast %354 : vector<32xf32> to vector<32x1xf32>
    %cst_159 = arith.constant 1.280000e+02 : f32
    %356 = vector.broadcast %cst_159 : f32 to vector<32x1xf32>
    %357 = arith.divf %355, %356 : vector<32x1xf32>
    %358 = vector.broadcast %357 : vector<32x1xf32> to vector<32x128xf32>
    %359 = arith.subf %349, %358 : vector<32x128xf32>
    %360 = arith.mulf %359, %359 : vector<32x128xf32>
    %cst_160 = arith.constant dense<0.000000e+00> : vector<32xf32>
    %361 = vector.multi_reduction <add>, %360, %cst_160 [1] : vector<32x128xf32> to vector<32xf32>
    %362 = vector.shape_cast %361 : vector<32xf32> to vector<32x1xf32>
    %cst_161 = arith.constant 1.280000e+02 : f32
    %363 = vector.broadcast %cst_161 : f32 to vector<32x1xf32>
    %364 = arith.divf %362, %363 : vector<32x1xf32>
    %365 = vector.broadcast %357 : vector<32x1xf32> to vector<32x128xf32>
    %366 = arith.subf %349, %365 : vector<32x128xf32>
    %cst_162 = arith.constant 9.99999974E-6 : f32
    %367 = vector.broadcast %cst_162 : f32 to vector<32x1xf32>
    %368 = arith.addf %364, %367 : vector<32x1xf32>
    %369 = math.rsqrt %368 : vector<32x1xf32>
    %370 = vector.broadcast %369 : vector<32x1xf32> to vector<32x128xf32>
    %371 = arith.mulf %366, %370 : vector<32x128xf32>
    %372 = vector.broadcast %351 : vector<1x128xf32> to vector<32x128xf32>
    %373 = arith.mulf %371, %372 : vector<32x128xf32>
    %374 = vector.broadcast %353 : vector<1x128xf32> to vector<32x128xf32>
    %375 = arith.addf %373, %374 : vector<32x128xf32>
    %c1_163 = arith.constant 1 : index
    %c0_164 = arith.constant 0 : index
    %c0_165 = arith.constant 0 : index
    %376 = vector.load %arg14[%c1_163, %c0_164, %c0_165] : memref<2x128x256xf32, #tpu.memory_space<vmem>>, vector<1x128x256xf32>
    %377 = vector.shape_cast %376 : vector<1x128x256xf32> to vector<128x256xf32>
    %cst_166 = arith.constant dense<0.000000e+00> : vector<32x256xf32>
    %378 = tpu.matmul %375, %377, %cst_166 {dimension_numbers = #tpu.dot_dimension_numbers<[1], [0], [0], [1], [0, 0, 1, 1], [], []>} : vector<32x128xf32>, vector<128x256xf32>, vector<32x256xf32> -> vector<32x256xf32>
    %c1_167 = arith.constant 1 : index
    %c0_168 = arith.constant 0 : index
    %c0_169 = arith.constant 0 : index
    %379 = vector.load %arg15[%c1_167, %c0_168, %c0_169] : memref<2x1x256xf32, #tpu.memory_space<vmem>>, vector<1x1x256xf32>
    %380 = vector.shape_cast %379 : vector<1x1x256xf32> to vector<1x256xf32>
    %381 = vector.broadcast %380 : vector<1x256xf32> to vector<32x256xf32>
    %382 = arith.addf %378, %381 : vector<32x256xf32>
    %cst_170 = arith.constant 0.000000e+00 : f32
    %383 = vector.broadcast %cst_170 : f32 to vector<32x256xf32>
    %384 = arith.maximumf %382, %383 : vector<32x256xf32>
    %c1_171 = arith.constant 1 : index
    %c0_172 = arith.constant 0 : index
    %c0_173 = arith.constant 0 : index
    %385 = vector.load %arg16[%c1_171, %c0_172, %c0_173] : memref<2x256x128xf32, #tpu.memory_space<vmem>>, vector<1x256x128xf32>
    %386 = vector.shape_cast %385 : vector<1x256x128xf32> to vector<256x128xf32>
    %cst_174 = arith.constant dense<0.000000e+00> : vector<32x128xf32>
    %387 = tpu.matmul %384, %386, %cst_174 {dimension_numbers = #tpu.dot_dimension_numbers<[1], [0], [0], [1], [0, 0, 1, 1], [], []>} : vector<32x256xf32>, vector<256x128xf32>, vector<32x128xf32> -> vector<32x128xf32>
    %c1_175 = arith.constant 1 : index
    %c0_176 = arith.constant 0 : index
    %c0_177 = arith.constant 0 : index
    %388 = vector.load %arg17[%c1_175, %c0_176, %c0_177] : memref<2x1x128xf32, #tpu.memory_space<vmem>>, vector<1x1x128xf32>
    %389 = vector.shape_cast %388 : vector<1x1x128xf32> to vector<1x128xf32>
    %390 = vector.broadcast %389 : vector<1x128xf32> to vector<32x128xf32>
    %391 = arith.addf %387, %390 : vector<32x128xf32>
    %392 = arith.addf %375, %391 : vector<32x128xf32>
    %c1_178 = arith.constant 1 : index
    %c0_179 = arith.constant 0 : index
    %c0_180 = arith.constant 0 : index
    %393 = vector.load %arg18[%c1_178, %c0_179, %c0_180] : memref<2x1x128xf32, #tpu.memory_space<vmem>>, vector<1x1x128xf32>
    %394 = vector.shape_cast %393 : vector<1x1x128xf32> to vector<1x128xf32>
    %c1_181 = arith.constant 1 : index
    %c0_182 = arith.constant 0 : index
    %c0_183 = arith.constant 0 : index
    %395 = vector.load %arg19[%c1_181, %c0_182, %c0_183] : memref<2x1x128xf32, #tpu.memory_space<vmem>>, vector<1x1x128xf32>
    %396 = vector.shape_cast %395 : vector<1x1x128xf32> to vector<1x128xf32>
    %cst_184 = arith.constant dense<0.000000e+00> : vector<32xf32>
    %397 = vector.multi_reduction <add>, %392, %cst_184 [1] : vector<32x128xf32> to vector<32xf32>
    %398 = vector.shape_cast %397 : vector<32xf32> to vector<32x1xf32>
    %cst_185 = arith.constant 1.280000e+02 : f32
    %399 = vector.broadcast %cst_185 : f32 to vector<32x1xf32>
    %400 = arith.divf %398, %399 : vector<32x1xf32>
    %401 = vector.broadcast %400 : vector<32x1xf32> to vector<32x128xf32>
    %402 = arith.subf %392, %401 : vector<32x128xf32>
    %403 = arith.mulf %402, %402 : vector<32x128xf32>
    %cst_186 = arith.constant dense<0.000000e+00> : vector<32xf32>
    %404 = vector.multi_reduction <add>, %403, %cst_186 [1] : vector<32x128xf32> to vector<32xf32>
    %405 = vector.shape_cast %404 : vector<32xf32> to vector<32x1xf32>
    %cst_187 = arith.constant 1.280000e+02 : f32
    %406 = vector.broadcast %cst_187 : f32 to vector<32x1xf32>
    %407 = arith.divf %405, %406 : vector<32x1xf32>
    %408 = vector.broadcast %400 : vector<32x1xf32> to vector<32x128xf32>
    %409 = arith.subf %392, %408 : vector<32x128xf32>
    %cst_188 = arith.constant 9.99999974E-6 : f32
    %410 = vector.broadcast %cst_188 : f32 to vector<32x1xf32>
    %411 = arith.addf %407, %410 : vector<32x1xf32>
    %412 = math.rsqrt %411 : vector<32x1xf32>
    %413 = vector.broadcast %412 : vector<32x1xf32> to vector<32x128xf32>
    %414 = arith.mulf %409, %413 : vector<32x128xf32>
    %415 = vector.broadcast %394 : vector<1x128xf32> to vector<32x128xf32>
    %416 = arith.mulf %414, %415 : vector<32x128xf32>
    %417 = vector.broadcast %396 : vector<1x128xf32> to vector<32x128xf32>
    %418 = arith.addf %416, %417 : vector<32x128xf32>
    %c0_189 = arith.constant 0 : index
    %c0_190 = arith.constant 0 : index
    %c0_191 = arith.constant 0 : index
    %419 = vector.load %arg20[%c0_189, %c0_190, %c0_191] : memref<1x32x128xf32, #tpu.memory_space<vmem>>, vector<1x32x128xf32>
    %420 = vector.shape_cast %419 : vector<1x32x128xf32> to vector<32x128xf32>
    %421 = vector.shape_cast %418 : vector<32x128xf32> to vector<1x32x128xf32>
    tpu.vector_store %arg20[%c0_189, %c0_190, %c0_191], %421 {strides = array<i32>} : memref<1x32x128xf32, #tpu.memory_space<vmem>>, vector<1x32x128xf32>,
    return
  }
  func.func @transform_0(%arg0: i32, %arg1: memref<2xi32, #tpu.memory_space<smem>>, %arg2: memref<2xi32, #tpu.memory_space<smem>>) -> (i32, i32, i32) {
    %c0_i32 = arith.constant 0 : i32
    %c0_i32_0 = arith.constant 0 : i32
    %c0_i32_1 = arith.constant 0 : i32
    return %arg0, %c0_i32, %c0_i32_0 : i32, i32, i32
  }
  func.func @transform_1(%arg0: i32, %arg1: memref<2xi32, #tpu.memory_space<smem>>, %arg2: memref<2xi32, #tpu.memory_space<smem>>) -> (i32, i32, i32) {
    %c0_i32 = arith.constant 0 : i32
    %c0_i32_0 = arith.constant 0 : i32
    %c0_i32_1 = arith.constant 0 : i32
    %c0_i32_2 = arith.constant 0 : i32
    return %c0_i32, %c0_i32_0, %c0_i32_1 : i32, i32, i32
  }
  func.func @transform_2(%arg0: i32, %arg1: memref<2xi32, #tpu.memory_space<smem>>, %arg2: memref<2xi32, #tpu.memory_space<smem>>) -> (i32, i32, i32) {
    %c0_i32 = arith.constant 0 : i32
    %c0_i32_0 = arith.constant 0 : i32
    %c0_i32_1 = arith.constant 0 : i32
    %c0_i32_2 = arith.constant 0 : i32
    return %c0_i32, %c0_i32_0, %c0_i32_1 : i32, i32, i32
  }
  func.func @transform_3(%arg0: i32, %arg1: memref<2xi32, #tpu.memory_space<smem>>, %arg2: memref<2xi32, #tpu.memory_space<smem>>) -> (i32, i32, i32) {
    %c0_i32 = arith.constant 0 : i32
    %c0_i32_0 = arith.constant 0 : i32
    %c0_i32_1 = arith.constant 0 : i32
    %c0_i32_2 = arith.constant 0 : i32
    return %c0_i32, %c0_i32_0, %c0_i32_1 : i32, i32, i32
  }
  func.func @transform_4(%arg0: i32, %arg1: memref<2xi32, #tpu.memory_space<smem>>, %arg2: memref<2xi32, #tpu.memory_space<smem>>) -> (i32, i32, i32) {
    %c0_i32 = arith.constant 0 : i32
    %c0_i32_0 = arith.constant 0 : i32
    %c0_i32_1 = arith.constant 0 : i32
    %c0_i32_2 = arith.constant 0 : i32
    return %c0_i32, %c0_i32_0, %c0_i32_1 : i32, i32, i32
  }
  func.func @transform_5(%arg0: i32, %arg1: memref<2xi32, #tpu.memory_space<smem>>, %arg2: memref<2xi32, #tpu.memory_space<smem>>) -> (i32, i32, i32) {
    %c0_i32 = arith.constant 0 : i32
    %c0_i32_0 = arith.constant 0 : i32
    %c0_i32_1 = arith.constant 0 : i32
    %c0_i32_2 = arith.constant 0 : i32
    return %c0_i32, %c0_i32_0, %c0_i32_1 : i32, i32, i32
  }
  func.func @transform_6(%arg0: i32, %arg1: memref<2xi32, #tpu.memory_space<smem>>, %arg2: memref<2xi32, #tpu.memory_space<smem>>) -> (i32, i32, i32) {
    %c0_i32 = arith.constant 0 : i32
    %c0_i32_0 = arith.constant 0 : i32
    %c0_i32_1 = arith.constant 0 : i32
    %c0_i32_2 = arith.constant 0 : i32
    return %c0_i32, %c0_i32_0, %c0_i32_1 : i32, i32, i32
  }
  func.func @transform_7(%arg0: i32, %arg1: memref<2xi32, #tpu.memory_space<smem>>, %arg2: memref<2xi32, #tpu.memory_space<smem>>) -> (i32, i32, i32) {
    %c0_i32 = arith.constant 0 : i32
    %c0_i32_0 = arith.constant 0 : i32
    %c0_i32_1 = arith.constant 0 : i32
    %c0_i32_2 = arith.constant 0 : i32
    return %c0_i32, %c0_i32_0, %c0_i32_1 : i32, i32, i32
  }
  func.func @transform_8(%arg0: i32, %arg1: memref<2xi32, #tpu.memory_space<smem>>, %arg2: memref<2xi32, #tpu.memory_space<smem>>) -> (i32, i32, i32) {
    %c0_i32 = arith.constant 0 : i32
    %c0_i32_0 = arith.constant 0 : i32
    %c0_i32_1 = arith.constant 0 : i32
    %c0_i32_2 = arith.constant 0 : i32
    return %c0_i32, %c0_i32_0, %c0_i32_1 : i32, i32, i32
  }
  func.func @transform_9(%arg0: i32, %arg1: memref<2xi32, #tpu.memory_space<smem>>, %arg2: memref<2xi32, #tpu.memory_space<smem>>) -> (i32, i32, i32) {
    %c0_i32 = arith.constant 0 : i32
    %c0_i32_0 = arith.constant 0 : i32
    %c0_i32_1 = arith.constant 0 : i32
    %c0_i32_2 = arith.constant 0 : i32
    return %c0_i32, %c0_i32_0, %c0_i32_1 : i32, i32, i32
  }
  func.func @transform_10(%arg0: i32, %arg1: memref<2xi32, #tpu.memory_space<smem>>, %arg2: memref<2xi32, #tpu.memory_space<smem>>) -> (i32, i32, i32) {
    %c0_i32 = arith.constant 0 : i32
    %c0_i32_0 = arith.constant 0 : i32
    %c0_i32_1 = arith.constant 0 : i32
    %c0_i32_2 = arith.constant 0 : i32
    return %c0_i32, %c0_i32_0, %c0_i32_1 : i32, i32, i32
  }
  func.func @transform_11(%arg0: i32, %arg1: memref<2xi32, #tpu.memory_space<smem>>, %arg2: memref<2xi32, #tpu.memory_space<smem>>) -> (i32, i32, i32) {
    %c0_i32 = arith.constant 0 : i32
    %c0_i32_0 = arith.constant 0 : i32
    %c0_i32_1 = arith.constant 0 : i32
    %c0_i32_2 = arith.constant 0 : i32
    return %c0_i32, %c0_i32_0, %c0_i32_1 : i32, i32, i32
  }
  func.func @transform_12(%arg0: i32, %arg1: memref<2xi32, #tpu.memory_space<smem>>, %arg2: memref<2xi32, #tpu.memory_space<smem>>) -> (i32, i32, i32) {
    %c0_i32 = arith.constant 0 : i32
    %c0_i32_0 = arith.constant 0 : i32
    %c0_i32_1 = arith.constant 0 : i32
    %c0_i32_2 = arith.constant 0 : i32
    return %c0_i32, %c0_i32_0, %c0_i32_1 : i32, i32, i32
  }
  func.func @transform_13(%arg0: i32, %arg1: memref<2xi32, #tpu.memory_space<smem>>, %arg2: memref<2xi32, #tpu.memory_space<smem>>) -> (i32, i32, i32) {
    %c0_i32 = arith.constant 0 : i32
    %c0_i32_0 = arith.constant 0 : i32
    %c0_i32_1 = arith.constant 0 : i32
    %c0_i32_2 = arith.constant 0 : i32
    return %c0_i32, %c0_i32_0, %c0_i32_1 : i32, i32, i32
  }
  func.func @transform_14(%arg0: i32, %arg1: memref<2xi32, #tpu.memory_space<smem>>, %arg2: memref<2xi32, #tpu.memory_space<smem>>) -> (i32, i32, i32) {
    %c0_i32 = arith.constant 0 : i32
    %c0_i32_0 = arith.constant 0 : i32
    %c0_i32_1 = arith.constant 0 : i32
    %c0_i32_2 = arith.constant 0 : i32
    return %c0_i32, %c0_i32_0, %c0_i32_1 : i32, i32, i32
  }
  func.func @transform_15(%arg0: i32, %arg1: memref<2xi32, #tpu.memory_space<smem>>, %arg2: memref<2xi32, #tpu.memory_space<smem>>) -> (i32, i32, i32) {
    %c0_i32 = arith.constant 0 : i32
    %c0_i32_0 = arith.constant 0 : i32
    %c0_i32_1 = arith.constant 0 : i32
    %c0_i32_2 = arith.constant 0 : i32
    return %c0_i32, %c0_i32_0, %c0_i32_1 : i32, i32, i32
  }
  func.func @transform_16(%arg0: i32, %arg1: memref<2xi32, #tpu.memory_space<smem>>, %arg2: memref<2xi32, #tpu.memory_space<smem>>) -> (i32, i32, i32) {
    %c0_i32 = arith.constant 0 : i32
    %c0_i32_0 = arith.constant 0 : i32
    %c0_i32_1 = arith.constant 0 : i32
    %c0_i32_2 = arith.constant 0 : i32
    return %c0_i32, %c0_i32_0, %c0_i32_1 : i32, i32, i32
  }
  func.func @transform_17(%arg0: i32, %arg1: memref<2xi32, #tpu.memory_space<smem>>, %arg2: memref<2xi32, #tpu.memory_space<smem>>) -> (i32, i32, i32) {
    %c0_i32 = arith.constant 0 : i32
    %c0_i32_0 = arith.constant 0 : i32
    %c0_i32_1 = arith.constant 0 : i32
    return %arg0, %c0_i32, %c0_i32_0 : i32, i32, i32
  }
}

</mosaic_0001>

<bundles_post_ra>
// kernel: transformer_embedding_reference_set.1
= control target key start
LH: loop header
LB: loop body
LE: loop exit
PB: predicated region body
PF: predicated region fallthrough
CT: control target
= control target key end

     0   :  { %s8715_s0 = inlined_call_operand.vmem [shape: s32[2], index: 0, kind: input, shape index: {}]   ;;  %s8716_s2 = inlined_call_operand.vmem [shape: f32[2,32,64], index: 2, kind: input, shape index: {}]   ;;  %s8717_s3 = inlined_call_operand.vmem [shape: f32[2,128,128], index: 3, kind: input, shape index: {}]   ;;  %s8718_s4 = inlined_call_operand.vmem [shape: f32[2,1,128], index: 4, kind: input, shape index: {}]   ;;  %s8719_s5 = inlined_call_operand.hbm [shape: f32[2,128,128], index: 5, kind: input, shape index: {}]   ;;  %s8720_s6 = inlined_call_operand.vmem [shape: f32[2,1,128], index: 6, kind: input, shape index: {}]   ;;  %s8721_s7 = inlined_call_operand.hbm [shape: f32[2,128,128], index: 7, kind: input, shape index: {}]   ;;  %s8722_s8 = inlined_call_operand.vmem [shape: f32[2,1,128], index: 8, kind: input, shape index: {}]   ;;  %s8723_s9 = inlined_call_operand.hbm [shape: f32[2,128,128], index: 9, kind: input, shape index: {}]   ;;  %s8724_s10 = inlined_call_operand.vmem [shape: f32[2,1,128], index: 10, kind: input, shape index: {}]   ;;  %s8725_s11 = inlined_call_operand.vmem [shape: f32[2,1,128], index: 11, kind: input, shape index: {}]   ;;  %s8726_s12 = inlined_call_operand.vmem [shape: f32[2,1,128], index: 12, kind: input, shape index: {}]   ;;  %s8727_s13 = inlined_call_operand.hbm [shape: f32[2,128,256], index: 13, kind: input, shape index: {}]   ;;  %s8728_s14 = inlined_call_operand.vmem [shape: f32[2,1,256], index: 14, kind: input, shape index: {}]   ;;  %s8729_s15 = inlined_call_operand.hbm [shape: f32[2,256,128], index: 15, kind: input, shape index: {}]   ;;  %s8730_s16 = inlined_call_operand.vmem [shape: f32[2,1,128], index: 16, kind: input, shape index: {}]   ;;  %s8731_s17 = inlined_call_operand.vmem [shape: f32[2,1,128], index: 17, kind: input, shape index: {}]   ;;  %s8732_s18 = inlined_call_operand.vmem [shape: f32[2,1,128], index: 18, kind: input, shape index: {}]   ;;  %s8733_s19 = inlined_call_operand.vmem [shape: f32[2,32,128], index: 19, kind: output, shape index: {}]   ;;  %s8734_s1 = inlined_call_operand.vmem [shape: s32[2], index: 1, kind: input, shape index: {}]  }
   0x1   :  { %8745 = sst [smem:[#allocation18_spill]] %s8715_s0  ;;  %s28_s22 = sshll.u32 %s8734_s1, 4  ;;  %s29_s22 = int_to_ptr.vmem [resolvable:$true] %s28_s22 }
   0x2   :  { %8746 = sst [smem:[#allocation19_spill]] %s8716_s2  ;;  %s8752_s20 = sld [smem:[#allocation18_spill]] }
   0x3   :  { %8747 = sst [smem:[#allocation20_spill]] %s8717_s3 }
   0x4   :  { %8748 = sst [smem:[#allocation21_spill]] %s8718_s4 }
   0x5   :  { %8749 = sst [smem:[#allocation22_spill]] %s8721_s7 }
   0x6   :  { %8750 = sst [smem:[#allocation23_spill]] %s8728_s14 }
   0x7   :  { %8751 = sst [smem:[#allocation24_spill]] %s8733_s19 }
   0x8   :  { %s24_s14 = sshll.u32 %s8752_s20, 4  ;;  %s25_s14 = int_to_ptr.vmem [resolvable:$true] %s24_s14 }
   0x9   :  { %s7399_s3 = scalar_lea.vmem %s25_s14, 16  ;;  %p7404_p1 = scmp.lt.s32.totalorder %s25_s14, %s25_s14 }
   0xa   :  { %p7400_p0 = scmp.ne.s32.totalorder %s25_s14, %s7399_s3  ;;  %p7405_p2 = scmp.lt.s32.totalorder %s7399_s3, %s7399_s3 }
   0xc   :  { %p7406_p3 = por %p7405_p2, %p7404_p1 }
   0xe   :  { %p7407_p4 = pnand %p7406_p3, %p7400_p0 }
  0x10   :  { %7410 = shalt.err (!%p7407_p4)  }
  0x11   :  { %s7585_s23 = smov [#allocation3]   ;;  %s7411_s24 = scalar_lea.vmem %s29_s22, 16 }
  0x12   :  { %27 = dma.vmem_to_smem %s25_s14, 16, %s7585_s23, [#allocation2] }
  0x13   :  { %p7412_p5 = scmp.ne.s32.totalorder %s29_s22, %s7411_s24  ;;  %p7416_p6 = scmp.lt.s32.totalorder %s29_s22, %s29_s22 }
  0x14   :  { %p7417_p7 = scmp.lt.s32.totalorder %s7411_s24, %s7411_s24 }
  0x16   :  { %p7418_p8 = por %p7417_p7, %p7416_p6 }
  0x18   :  { %p7419_p9 = pnand %p7418_p8, %p7412_p5 }
  0x1a   :  { %7422 = shalt.err (!%p7419_p9)  }
  0x1b   :  { %s7586_s25 = smov [#allocation4]  }
  0x1c   :  { %31 = dma.vmem_to_smem %s29_s22, 16, %s7586_s25, [#allocation2] }
  0x1d   :  { %7567 = dma.done.wait [#allocation2], 32 }
  0x1e   :  { %7568 = vsyncadd [#allocation2], 4294967264 }
  0x1f   :  { %33 = sfence }
  0x20   :  { %34 = vsyncpa [#allocation6], 0 }
  0x21   :  { %35 = vsyncpa [#allocation8], 0 }
  0x22   :  { %36 = vsyncpa [#allocation11], 0  ;;  %s7706_s1 = smov 0  }
  0x23 LB: > { %8753 = sst [smem:[#allocation17_spill]] %s7583_s1  ;;  %s7712_s14 = sadd.s32 4294967295, %s7583_s1   ;;  %s7583_s1 = sphi %s7706_s1, %s42_s1  }
  0x24   : > { %p5325_p10 = scmp.ge.s32.totalorder %s7583_s1, 1  ;;  %p435_p11 = scmp.lt.s32.totalorder %s7583_s1, 3 }
  0x25   : > { %p8743_p12 = scmp.eq.s32.totalorder %s7712_s14, 0  ;;  %s7587_s26 = smov [#allocation7]  }
  0x26   : > { %p7717_p13 = pnand %p5325_p10, %p435_p11  ;;  %s469_s27 = sshll.u32 %s7587_s26, 4  ;;  %s7721_s27 = int_to_ptr.vmem [resolvable:$true] %s469_s27 }
  0x27   : > { %s7588_s28 = smov [#allocation10]   ;;  %s7589_s30 = smov [#allocation5]  }
  0x28   : > { %s8754_s4 = scalar_select %p7717_p13, 1, 0 }
  0x29   : > { %p7070_p0 = pneg %p7717_p13  ;;  %s507_s29 = sshll.u32 %s7588_s28, 4  ;;  %s7725_s29 = int_to_ptr.vmem [resolvable:$true] %s507_s29 }
  0x2a   : > { %s7733_s20 = sshll.u32 %s7589_s30, 4  ;;  %s8756_s7 = sld [smem:[#allocation22_spill]]  ;;  %s454_s20 = int_to_ptr.vmem [resolvable:$true] %s7733_s20 }
  0x2b   : > { %p7729_p1 = pnand %p8743_p12, %p7070_p0 }
  0x2d   : > { %p7743_p3 = pneg %p7729_p1 }
  0x30   : > { %s7423_s22 = scalar_lea.hbm %s8756_s7, 4096 }
  0x31   : > { %p7424_p2 = scmp.ne.s32.totalorder %s8756_s7, %s7423_s22  ;;  %p7430_p6 = scmp.lt.u32.totalorder %s7423_s22, %s8756_s7 }
  0x33   : > { %p7426_p4 = pnand %p7743_p3, %p7424_p2 }
  0x35   : > { %p7427_p5 = pneg %p7426_p4 }
  0x37   : > { %p7432_p7 = pnand %p7430_p6, %p7427_p5 }
  0x39   : > { %7435 = shalt.err (!%p7432_p7)
}
  0x3a   : > { %s7436_s28 = scalar_lea.vmem %s7721_s27, 4096  ;;  %p7444_p11 = scmp.lt.s32.totalorder %s7721_s27, %s7721_s27 }
  0x3b   : > { %p7437_p8 = scmp.ne.s32.totalorder %s7721_s27, %s7436_s28  ;;  %p7445_p0 = scmp.lt.s32.totalorder %s7436_s28, %s7436_s28 }
  0x3d   : > { %p7439_p9 = pnand %p7437_p8, %p7743_p3  ;;  %p7446_p2 = por %p7445_p0, %p7444_p11 }
  0x3f   : > { %p7440_p10 = pneg %p7439_p9 }
  0x41   : > { %p7447_p4 = pnand %p7446_p2, %p7440_p10 }
  0x43   : > { %7450 = shalt.err (!%p7447_p4)
}
  0x44   : > { %s8739_s30 = smov 128   ;;  %s8741_s21 = smov 8  }
  0x45   : > { %7076 = dma.hbm_to_vmem [thread:$0]  (!%p7729_p1), %s8756_s7, 4096, %s7721_s27, [#allocation8], %s8739_s30, %s8739_s30, %s8741_s21  }
  0x46   : > { %s7451_s25 = scalar_lea.hbm %s8727_s13, 8192 }
  0x47   : > { %p7452_p5 = scmp.ne.s32.totalorder %s8727_s13, %s7451_s25  ;;  %p7458_p8 = scmp.lt.u32.totalorder %s7451_s25, %s8727_s13 }
  0x49   : > { %p7454_p6 = pnand %p7452_p5, %p7743_p3 }
  0x4b   : > { %p7455_p7 = pneg %p7454_p6 }
  0x4d   : > { %p7460_p9 = pnand %p7458_p8, %p7455_p7 }
  0x4f   : > { %7463 = shalt.err (!%p7460_p9)
}
  0x50   : > { %s7464_s27 = scalar_lea.vmem %s7725_s29, 8192  ;;  %p7472_p2 = scmp.lt.s32.totalorder %s7725_s29, %s7725_s29 }
  0x51   : > { %p7465_p10 = scmp.ne.s32.totalorder %s7725_s29, %s7464_s27  ;;  %p7473_p4 = scmp.lt.s32.totalorder %s7464_s27, %s7464_s27 }
  0x53   : > { %p7467_p11 = pnand %p7465_p10, %p7743_p3  ;;  %p7474_p5 = por %p7473_p4, %p7472_p2 }
  0x55   : > { %p7468_p0 = pneg %p7467_p11 }
  0x57   : > { %p7475_p6 = pnand %p7474_p5, %p7468_p0 }
  0x59   : > { %7478 = shalt.err (!%p7475_p6)
}
  0x5a   : > { %s7592_s2 = smov 256   ;;  %s7593_s19 = smov 16  }
  0x5b   : > { %7082 = dma.hbm_to_vmem [thread:$0]  (!%p7729_p1), %s8727_s13, 8192, %s7725_s29, [#allocation11], %s7592_s2, %s7592_s2, %s7593_s19  }
  0x5c   : > { %s7594_s3 = smov [#allocation9]   ;;  %s7479_s28 = scalar_lea.hbm %s8719_s5, 4096 }
  0x5d   : > { %s485_s23 = sshll.u32 %s7594_s3, 4  ;;  %p7480_p7 = scmp.ne.s32.totalorder %s8719_s5, %s7479_s28  ;;  %s486_s23 = int_to_ptr.vmem [resolvable:$true] %s485_s23 }
  0x5e   : > { %p7486_p10 = scmp.lt.u32.totalorder %s7479_s28, %s8719_s5 }
  0x5f   : > { %p7482_p8 = pnand %p7480_p7, %p7743_p3 }
  0x61   : > { %p7483_p9 = pneg %p7482_p8 }
  0x63   : > { %p7488_p11 = pnand %p7486_p10, %p7483_p9 }
  0x65   : > { %7491 = shalt.err (!%p7488_p11)
}
  0x66   : > { %s7492_s29 = scalar_lea.vmem %s454_s20, 4096  ;;  %p7500_p5 = scmp.lt.s32.totalorder %s454_s20, %s454_s20 }
  0x67   : > { %p7493_p0 = scmp.ne.s32.totalorder %s454_s20, %s7492_s29  ;;  %p7501_p6 = scmp.lt.s32.totalorder %s7492_s29, %s7492_s29 }
  0x69   : > { %p7495_p2 = pnand %p7493_p0, %p7743_p3  ;;  %p7502_p12 = por %p7501_p6, %p7500_p5 }
  0x6b   : > { %p7496_p4 = pneg %p7495_p2 }
  0x6d   : > { %p7503_p13 = pnand %p7502_p12, %p7496_p4 }
  0x6f   : > { %7506 = shalt.err (!%p7503_p13)
}
  0x70   : > { %s8758_s30 = smov 8   ;;  %s8759_s2 = smov 128  }
  0x71   : > { %7073 = dma.hbm_to_vmem [thread:$0]  (!%p7729_p1), %s8719_s5, 4096, %s454_s20, [#allocation6], %s8759_s2, %s8759_s2, %s8758_s30  }
  0x72   : > { %s7507_s22 = scalar_lea.hbm %s8723_s9, 4096 }
  0x73   : > { %p7508_p12 = scmp.ne.s32.totalorder %s8723_s9, %s7507_s22  ;;  %p7514_p8 = scmp.lt.u32.totalorder %s7507_s22, %s8723_s9 }
  0x75   : > { %p7510_p13 = pnand %p7508_p12, %p7743_p3 }
  0x77   : > { %p7511_p7 = pneg %p7510_p13 }
  0x79   : > { %p7516_p9 = pnand %p7514_p8, %p7511_p7 }
  0x7b   : > { %7519 = shalt.err (!%p7516_p9)
}
  0x7c   : > { %s7520_s27 = scalar_lea.vmem %s486_s23, 4096  ;;  %p7528_p2 = scmp.lt.s32.totalorder %s486_s23, %s486_s23 }
  0x7d   : > { %p7521_p10 = scmp.ne.s32.totalorder %s486_s23, %s7520_s27  ;;  %p7529_p4 = scmp.lt.s32.totalorder %s7520_s27, %s7520_s27 }
  0x7f   : > { %p7523_p11 = pnand %p7521_p10, %p7743_p3  ;;  %p7530_p5 = por %p7529_p4, %p7528_p2 }
  0x81   : > { %p7524_p0 = pneg %p7523_p11 }
  0x83   : > { %p7531_p6 = pnand %p7530_p5, %p7524_p0 }
  0x85   : > { %7534 = shalt.err (!%p7531_p6)
}
  0x86   : > { %7079 = dma.hbm_to_vmem [thread:$0]  (!%p7729_p1), %s8723_s9, 4096, %s486_s23, [#allocation8], %s8759_s2, %s8759_s2, %s8758_s30  }
  0x87   : > { %s7595_s7 = smov [#allocation12]   ;;  %s7535_s22 = scalar_lea.hbm %s8729_s15, 8192 }
  0x88   : > { %s523_s21 = sshll.u32 %s7595_s7, 4  ;;  %p7536_p12 = scmp.ne.s32.totalorder %s8729_s15, %s7535_s22  ;;  %s524_s21 = int_to_ptr.vmem [resolvable:$true] %s523_s21 }
  0x89   : > { %p7542_p8 = scmp.lt.u32.totalorder %s7535_s22, %s8729_s15 }
  0x8a   : > { %p7538_p13 = pnand %p7536_p12, %p7743_p3 }
  0x8c   : > { %p7539_p7 = pneg %p7538_p13 }
  0x8e   : > { %p7544_p9 = pnand %p7542_p8, %p7539_p7 }
  0x90   : > { %7547 = shalt.err (!%p7544_p9)
}
  0x91   : > { %s7548_s23 = scalar_lea.vmem %s524_s21, 8192  ;;  %p7556_p2 = scmp.lt.s32.totalorder %s524_s21, %s524_s21 }
  0x92   : > { %p7549_p10 = scmp.ne.s32.totalorder %s524_s21, %s7548_s23  ;;  %p7557_p4 = scmp.lt.s32.totalorder %s7548_s23, %s7548_s23 }
  0x94   : > { %p7551_p11 = pnand %p7549_p10, %p7743_p3  ;;  %p7558_p5 = por %p7557_p4, %p7556_p2 }
  0x96   : > { %p7552_p0 = pneg %p7551_p11 }
  0x98   : > { %p7559_p6 = pnand %p7558_p5, %p7552_p0 }
  0x9a   : > { %7562 = shalt.err (!%p7559_p6)
}
  0x9b   : > { %7085 = dma.hbm_to_vmem [thread:$0]  (!%p7729_p1), %s8729_s15, 8192, %s524_s21, [#allocation11], %s8759_s2, %s8759_s2, %s8758_s30  }
  0x9c   : > { %p8760_p12 = scmp.ne.s32.totalorder %s8754_s4, 0 }
  0x9d   : > { %p8761_p3 = scmp.eq.s32.totalorder (!%p8760_p12), %s7712_s14, 0 }
  0x9e   : > { %556 = sbr.rel (%p8760_p12) target bundleno = 6783 (0x1a7f), region = 88 }
  0xa5   : > { %7570 = dma.done.wait (%p8761_p3), [#allocation6], 4096   ;;  %p8762_p13 = pmov %p8761_p3 }
  0xa6   : > { %p8763_p7 = pmov %p8761_p3 }
  0xa7   : > { %7572 = vsyncadd (%p8762_p13), [#allocation6], 4294963200 }
  0xa8   : > { %7574 = dma.done.wait (%p8763_p7), [#allocation8], 8192   ;;  %p8764_p8 = pmov %p8761_p3 }
  0xa9   : > { %p8765_p9 = pmov %p8761_p3 }
  0xaa   : > { %7576 = vsyncadd (%p8764_p8), [#allocation8], 4294959104 }
  0xab   : > { %7578 = dma.done.wait (%p8765_p9), [#allocation11], 16384   ;;  %p8766_p1 = pmov %p8761_p3 }
  0xac   : > { %p624_p10 = scmp.lt.s32.totalorder %s7712_s14, 1  ;;  %v638_v0 = vlaneseq  ;;  %v808_v1 = vld [vmem:[#allocation5] sm:$0xff]  ;;  %v809_v2 = vld [vmem:[#allocation5 + $0x8] sm:$0xff]  ;;  %v810_v3 = vld [vmem:[#allocation5 + $0x10] sm:$0xff]  ;;  %s8767_s30 = sld [smem:[#allocation20_spill]]  ;;  %v7596_v21 = vmov 0.0  }
  0xad   : > { %7580 = vsyncadd (%p8766_p1), [#allocation11], 4294950912  ;;  %v6514_v4 = vpack.c.bf16 %v809_v2, %v808_v1  ;;  %v811_v5 = vld [vmem:[#allocation5 + $0x18] sm:$0xff]  ;;  %v812_v8 = vld [vmem:[#allocation5 + $0x20] sm:$0xff]  ;;  %s8768_s20 = sld [smem:[#allocation19_spill]]  ;;  %vm675_vm1 = vcmask 523264  }
  0xae   : > { %s7870_s4 = scalar_select %p624_p10, %s7712_s14, 1  ;;  %v7873_v6 = vshrl.u32 %v638_v0, 7  ;;  %v6518_v7 = vpack.c.bf16 %v811_v5, %v810_v3  ;;  %v813_v9 = vld [vmem:[#allocation5 + $0x28] sm:$0xff]  ;;  %v814_v19 = vld [vmem:[#allocation5 + $0x30] sm:$0xff]  ;;  %v815_v20 = vld [vmem:[#allocation5 + $0x38] sm:$0xff]  ;;  %vm1040_vm5 = vcmask 261120  }
  0xaf   : > { %6515 = vmatprep.subr.bf16.mxu1 %v6514_v4  ;;  %v6522_v15 = vpack.c.bf16 %v813_v9, %v812_v8  ;;  %v6526_v25 = vpack.c.bf16 %v815_v20, %v814_v19  ;;  %v816_v29 = vld [vmem:[#allocation5 + $0x40] sm:$0xff]  ;;  %v817_v30 = vld [vmem:[#allocation5 + $0x48] sm:$0xff]  ;;  %v818_v35 = vld [vmem:[#allocation5 + $0x50] sm:$0xff]  ;;  %s8769_s26 = sld [smem:[#allocation21_spill]]  ;;  %s7597_s29 = smov 96  }
  0xb0   : > { %s5516_s2 = sshll.u32 %s7870_s4, 5  ;;  %vm643_vm0 = vcmp.ge.s32.totalorder %v7873_v6, 1  ;;  %6517 = vmatpush3.bf16.msra.mxu1 %v6514_v4  ;;  %v6530_v32 = vpack.c.bf16 %v817_v30, %v816_v29  ;;  %v819_v36 = vld [vmem:[#allocation5 + $0x58] sm:$0xff]  ;;  %v820_v41 = vld [vmem:[#allocation5 + $0x60] sm:$0xff]  ;;  %v821_v42 = vld [vmem:[#allocation5 + $0x68] sm:$0xff]  ;;  %v640_v43 = vadd.s32 8, %v7873_v6 }
  0xb1   : > { %6519 = vmatprep.subr.bf16.mxu1 %v6518_v7  ;;  %v671_v22 = vsel %vm643_vm0, 1.0, %v7596_v21  ;;  %v6534_v38 = vpack.c.bf16 %v819_v36, %v818_v35  ;;  %v6538_v45 = vpack.c.bf16 %v821_v42, %v820_v41  ;;  %v822_v48 = vld [vmem:[#allocation5 + $0x70] sm:$0xff]  ;;  %v823_v49 = vld [vmem:[#allocation5 + $0x78] sm:$0xff]  ;;  %v642_v55 = vadd.s32 24, %v7873_v6  ;;  %v5343_v2 = vld [vmem:[%s8720_s6] ss:$0 sm:$0xff] }
  0xb2   : > { %v700_v10 = vld [vmem:[%s8767_s30] sm:$0xff]  ;;  %v701_v11 = vld [vmem:[%s8767_s30 + $0x8] sm:$0xff]  ;;  %v702_v13 = vld [vmem:[%s8767_s30 + $0x10] sm:$0xff]  ;;  %vm656_vm2 = vcmp.ge.s32.totalorder %v640_v43, 13  ;;  %v6542_v51 = vpack.c.bf16 %v823_v49, %v822_v48  ;;  %vm648_vm3 = vcmp.lt.s32.totalorder %v640_v43, 13  ;;  %s680_s28 = sld [smem:[#allocation3 + %s7712_s14]] }
  0xb3   : > { %v6482_v12 = vpack.c.bf16 %v701_v11, %v700_v10  ;;  %v703_v14 = vld [vmem:[%s8767_s30 + $0x18] sm:$0xff]  ;;  %v704_v17 = vld [vmem:[%s8767_s30 + $0x20] sm:$0xff]  ;;  %v705_v18 = vld [vmem:[%s8767_s30 + $0x28] sm:$0xff]  ;;  %s7900_s0 = scalar_lea.vmem %s8768_s20, %s5516_s2  ;;  %v668_v54 = vsel %vm656_vm2, -1.0, %v7596_v21  ;;  %vm662_vm4 = vcmp.lt.s32.totalorder %v642_v55, 25  ;;  %s681_s23 = sld [smem:[#allocation4 + %s7712_s14]] }
  0xb4   : > { %v6486_v16 = vpack.c.bf16 %v703_v14, %v702_v13  ;;  %6521 = vmatpush3.bf16.msra.mxu1 %v6518_v7  ;;  %v6490_v23 = vpack.c.bf16 %v705_v18, %v704_v17  ;;  %v634_v24 = vld [vmem:[%s7900_s0] sm:$0xff]  ;;  %v706_v26 = vld [vmem:[%s8767_s30 + $0x30] sm:$0xff]  ;;  %v707_v27 = vld [vmem:[%s8767_s30 + $0x38] sm:$0xff]  ;;  %v672_v58 = vsel %vm648_vm3, 1.0, %v668_v54  ;;  %v670_v63 = vsel %vm662_vm4, -1.0, %v7596_v21  ;;  %s7598_s7 = smov 64  }
  0xb5   : > { %6483 = vmatprep.subr.bf16.mxu0 %v6482_v12  ;;  %6523 = vmatprep.subr.bf16.mxu1 %v6522_v15  ;;  %v7911_v28 = vsel %vm675_vm1, %v634_v24, %v671_v22  ;;  %v6494_v31 = vpack.c.bf16 %v707_v27, %v706_v26  ;;  %v708_v33 = vld [vmem:[%s8767_s30 + $0x40] sm:$0xff]  ;;  %v709_v34 = vld [vmem:[%s8767_s30 + $0x48] sm:$0xff]  ;;  %v710_v39 = vld [vmem:[%s8767_s30 + $0x50] sm:$0xff]  ;;  %s7599_s21 = smov 32  }
  0xb6   : > { %6485 = vmatpush3.bf16.msra.mxu0 %v6482_v12  ;;  %5988 = vmatprep.mubr.f32.mxu1 %v7911_v28  ;;  %v6498_v37 = vpack.c.bf16 %v709_v34, %v708_v33  ;;  %v711_v40 = vld [vmem:[%s8767_s30 + $0x58] sm:$0xff]  ;;  %v712_v46 = vld [vmem:[%s8767_s30 + $0x60] sm:$0xff]  ;;  %v713_v47 = vld [vmem:[%s8767_s30 + $0x68] sm:$0xff] }
  0xb7   : > { %6487 = vmatprep.subr.bf16.mxu0 %v6486_v16  ;;  %5950 = vmatprep.mubr.f32.mxu0 %v7911_v28  ;;  %v6502_v44 = vpack.c.bf16 %v711_v40, %v710_v39  ;;  %v6506_v50 = vpack.c.bf16 %v713_v47, %v712_v46  ;;  %v714_v52 = vld [vmem:[%s8767_s30 + $0x70] sm:$0xff]  ;;  %v715_v53 = vld [vmem:[%s8767_s30 + $0x78] sm:$0xff]  ;;  %v635_v57 = vld [vmem:[%s7900_s0 + $0x8] sm:$0xff] }
  0xb8   : > { %6525 = vmatpush3.bf16.msra.mxu1 %v6522_v15  ;;  %v6510_v56 = vpack.c.bf16 %v715_v53, %v714_v52  ;;  %v636_v59 = vld [vmem:[%s7900_s0 + $0x10] sm:$0xff]  ;;  %v7945_v60 = vsel %vm675_vm1, %v635_v57, %v672_v58  ;;  %v637_v62 = vld [vmem:[%s7900_s0 + $0x18] sm:$0xff]  ;;  %v5342_v8 = vld [vmem:[%s8769_s26] ss:$0 sm:$0xff]  ;;  %v683_v52 = vand.u32 127, %v638_v0  ;;  %s688_s27 = sadd.s32 1, %s680_s28 }
  0xb9   : > { %6527 = vmatprep.subr.bf16.mxu1 %v6526_v25  ;;  %v7948_v61 = vsel %vm675_vm1, %v636_v59, -1.0  ;;  %v7955_v1 = vsel %vm675_vm1, %v637_v62, %v670_v63  ;;  %vm7970_vm6 = vmpackc.low %vm1040_vm5, %vm1040_vm5  ;;  %v916_v27 = vld [vmem:[#allocation7] sm:$0xff]  ;;  %v917_v29 = vld [vmem:[#allocation7 + $0x8] sm:$0xff]  ;;  %v689_v53 = vstv %s688_s27  ;;  %s694_s20 = sadd.s32 13, %s681_s23  ;;  %s8772_s27 = sld [smem:[#allocation23_spill]] }
  0xba   : > { %6489 = vmatpush3.bf16.msra.mxu0 %v6486_v16  ;;  %v918_v30 = vld [vmem:[#allocation7 + $0x10] sm:$0xff]  ;;  %v920_v34 = vld [vmem:[#allocation7 + $0x20] sm:$0xff]  ;;  %v921_v35 = vld [vmem:[#allocation7 + $0x28] sm:$0xff]  ;;  %vm685_vm7 = vcmp.ge.s32.totalorder %v683_v52, 1  ;;  %vm686_vm8 = vcmp.lt.s32.totalorder %v683_v52, 13  ;;  %vm690_vm10 = vcmp.lt.s32.totalorder %v683_v52, %v689_v53  ;;  %v695_v54 = vstv %s694_s20 }
  0xbb   : > { %6491 = vmatprep.subr.bf16.mxu0 %v6490_v23  ;;  %v6554_v36 = vpack.c.bf16 %v921_v35, %v920_v34  ;;  %v924_v40 = vld [vmem:[#allocation7 + $0x40] sm:$0xff]  ;;  %v925_v41 = vld [vmem:[#allocation7 + $0x48] sm:$0xff]  ;;  %v926_v43 = vld [vmem:[#allocation7 + $0x50] sm:$0xff]  ;;  %vm684_vm11 = vcmp.eq.s32.totalorder %v683_v52, 0  ;;  %vm693_vm13 = vcmp.ge.s32.totalorder %v683_v52, 13  ;;  %vm696_vm14 = vcmp.lt.s32.totalorder %v683_v52, %v695_v54 }
  0xbc   : > { %6529 = vmatpush3.bf16.msra.mxu1 %v6526_v25  ;;  %v6562_v42 = vpack.c.bf16 %v925_v41, %v924_v40  ;;  %v928_v46 = vld [vmem:[#allocation7 + $0x60] sm:$0xff]  ;;  %v929_v47 = vld [vmem:[#allocation7 + $0x68] sm:$0xff]  ;;  %v930_v49 = vld [vmem:[#allocation7 + $0x70] sm:$0xff] }
  0xbd   : > { %6531 = vmatprep.subr.bf16.mxu1 %v6530_v32  ;;  %v6570_v48 = vpack.c.bf16 %v929_v47, %v928_v46  ;;  %vm687_vm9 = vmand %vm685_vm7, %vm686_vm8 }
  0xbe   : > { %6493 = vmatpush3.bf16.msra.mxu0 %v6490_v23  ;;  %vm691_vm12 = vmand %vm687_vm9, %vm690_vm10 }
  0xbf   : > { %6495 = vmatprep.subr.bf16.mxu0 %v6494_v31  ;;  %vm692_vm15 = vmor %vm684_vm11, %vm691_vm12 }
  0xc0   : > { %6533 = vmatpush3.bf16.msra.mxu1 %v6530_v32  ;;  %v919_v32 = vld [vmem:[#allocation7 + $0x18] sm:$0xff]  ;;  %vm697_vm0 = vmand %vm693_vm13, %vm696_vm14 }
  0xc1   : > { %6535 = vmatprep.subr.bf16.mxu1 %v6534_v38  ;;  %v6550_v33 = vpack.c.bf16 %v919_v32, %v918_v30  ;;  %vm698_vm1 = vmor %vm692_vm15, %vm697_vm0 }
  0xc2   : > { %6497 = vmatpush3.bf16.msra.mxu0 %v6494_v31  ;;  %v6546_v31 = vpack.c.bf16 %v917_v29, %v916_v27 }
  0xc3   : > { %6499 = vmatprep.subr.bf16.mxu0 %v6498_v37 }
  0xc4   : > { %6537 = vmatpush3.bf16.msra.mxu1 %v6534_v38  ;;  %v923_v38 = vld [vmem:[#allocation7 + $0x38] sm:$0xff] }
  0xc5   : > { %6539 = vmatprep.subr.bf16.mxu1 %v6538_v45 }
  0xc6   : > { %6501 = vmatpush3.bf16.msra.mxu0 %v6498_v37  ;;  %v922_v37 = vld [vmem:[#allocation7 + $0x30] sm:$0xff] }
  0xc7   : > { %6503 = vmatprep.subr.bf16.mxu0 %v6502_v44  ;;  %v6558_v39 = vpack.c.bf16 %v923_v38, %v922_v37 }
  0xc8   : > { %6541 = vmatpush3.bf16.msra.mxu1 %v6538_v45 }
  0xc9   : > { %6543 = vmatprep.subr.bf16.mxu1 %v6542_v51 }
  0xca   : > { %6505 = vmatpush3.bf16.msra.mxu0 %v6502_v44  ;;  %v927_v44 = vld [vmem:[#allocation7 + $0x58] sm:$0xff] }
  0xcb   : > { %6507 = vmatprep.subr.bf16.mxu0 %v6506_v50  ;;  %v6566_v45 = vpack.c.bf16 %v927_v44, %v926_v43  ;;  %v5344_v44 = vld [vmem:[%s8722_s8] ss:$0 sm:$0xff] }
  0xcc   : > { %6545 = vmatpush3.bf16.msra.mxu1 %v6542_v51 }
  0xce   : > { %6509 = vmatpush3.bf16.msra.mxu0 %v6506_v50  ;;  %v931_v50 = vld [vmem:[#allocation7 + $0x78] sm:$0xff] }
  0xcf   : > { %6511 = vmatprep.subr.bf16.mxu0 %v6510_v56  ;;  %5989 = vmatmul.mubr.f32.vlgmr.msra.gmra.mrb[0].mxu1 %v7945_v60  ;;  %v6574_v51 = vpack.c.bf16 %v931_v50, %v930_v49 }
  0xd0   : > { %5991 = vmatprep.mubr.f32.mxu1 %v7948_v61 }
  0xd2   : > { %6513 = vmatpush3.bf16.msra.mxu0 %v6510_v56  ;;  %v8009_v56 = vsel %vm698_vm1, -1e+30, %v7596_v21 }
  0xd3   : > { %5992 = vmatmul.mubr.f32.gmra.mrb[2].mxu1 %v7955_v1  ;;  %6547 = vmatprep.subr.bf16.mxu0 %v6546_v31 }
  0xd5   : > { %5951 = vmatmul.mubr.f32.vlgmr.msra.gmra.mrb[0].mxu0 %v7945_v60 }
  0xd6   : > { %5953 = vmatprep.mubr.f32.mxu0 %v7948_v61  ;;  %6549 = vmatpush3.bf16.msra.mxu0 %v6546_v31 }
  0xd7   : > { %6551 = vmatprep.subr.bf16.mxu0 %v6550_v33 }
  0xd9   : > { %5954 = vmatmul.mubr.f32.gmra.mrb[2].mxu0 %v7955_v1 }
  0xda   : > { %6026 = vmatprep.mubr.f32.mxu0 %v7911_v28  ;;  %6553 = vmatpush3.bf16.msra.mxu0 %v6550_v33 }
  0xdb   : > { %6555 = vmatprep.subr.bf16.mxu0 %v6554_v36 }
  0xde   : > { %6557 = vmatpush3.bf16.msra.mxu0 %v6554_v36 }
  0xdf   : > { %6559 = vmatprep.subr.bf16.mxu0 %v6558_v39 }
  0xe2   : > { %6561 = vmatpush3.bf16.msra.mxu0 %v6558_v39 }
  0xe3   : > { %6563 = vmatprep.subr.bf16.mxu0 %v6562_v42 }
  0xe6   : > { %6565 = vmatpush3.bf16.msra.mxu0 %v6562_v42 }
  0xe7   : > { %6567 = vmatprep.subr.bf16.mxu0 %v6566_v45 }
  0xea   : > { %6569 = vmatpush3.bf16.msra.mxu0 %v6566_v45 }
  0xeb   : > { %6571 = vmatprep.subr.bf16.mxu0 %v6570_v48 }
  0xee   : > { %6573 = vmatpush3.bf16.msra.mxu0 %v6570_v48 }
  0xef   : > { %6575 = vmatprep.subr.bf16.mxu0 %v6574_v51 }
  0xf2   : > { %6577 = vmatpush3.bf16.msra.mxu0 %v6574_v51 }
  0xf5   : > { %6027 = vmatmul.mubr.f32.vlgmr.msra.gmra.mrb[4].mxu0 %v7945_v60 }
  0xf6   : > { %6029 = vmatprep.mubr.f32.mxu0 %v7948_v61 }
  0xf9   : > { %6030 = vmatmul.mubr.f32.gmra.mrb[6].mxu0 %v7955_v1 }
 0x1a2   : > { %v5990_v3 = vpop.f32.mrb[0].mxu1 }
 0x1a3   : > { %v903_v4 = vadd.f32 %v5990_v3, %v5343_v2  ;;  %v897_v5 = vpop.f32.mrb[1].mxu1 }
 0x1a4   : > { %v898_v7 = vadd.f32 %v5343_v2, %v897_v5 }
 0x1a6   : > { %v6578_v11 = vpack.c.bf16 %v903_v4, %v898_v7  ;;  %v5993_v12 = vpop.f32.mrb[2].mxu1  ;;  %v7974_v14 = vpack.i.bf16 %v903_v4, %v898_v7 }
 0x1a7   : > { %v913_v15 = vadd.f32 %v5993_v12, %v5343_v2  ;;  %v907_v16 = vpop.f32.mrb[3].mxu1 }
 0x1a8   : > { %v5952_v10 = vpop.f32.mrb[0].mxu0  ;;  %6580 = vmatprep.subr.msk.bf16.mxu1 %vm7970_vm6, %v6578_v11  ;;  %v908_v18 = vadd.f32 %v5343_v2, %v907_v16 }
 0x1a9   : > { %v789_v13 = vpop.f32.mrb[1].mxu0  ;;  %6583 = vmatpush3.bf16.xpose.msk.msra.mxu1 %vm7970_vm6, %v6578_v11  ;;  %v7992_v25 = vadd.f32 %v5952_v10, %v5342_v8 }
 0x1aa   : > { %v7976_v17 = vadd.f32 %v5342_v8, %v789_v13  ;;  %v6584_v20 = vpack.c.bf16 %v913_v15, %v908_v18  ;;  %v7984_v23 = vpack.i.bf16 %v913_v15, %v908_v18 }
 0x1ac   : > { %6040 = vmatprep.mubr.msk.f32.mxu1 %vm1040_vm5, %v7976_v17  ;;  %v5955_v19 = vpop.f32.mrb[2].mxu0  ;;  %6586 = vmatprep.subr.msk.bf16.mxu1 %vm7970_vm6, %v6584_v20 }
 0x1ad   : > { %v799_v22 = vpop.f32.mrb[3].mxu0  ;;  %v7994_v26 = vadd.f32 %v5955_v19, %v5342_v8 }
 0x1ae   : > { %v7990_v24 = vadd.f32 %v5342_v8, %v799_v22 }
 0x1b1   : > { %6589 = vmatpush3.bf16.xpose.msk.msra.mxu1 %vm7970_vm6, %v6584_v20 }
 0x1b8   : > { %6041 = vmatmul.mubr.msk.f32.vlgmr.msra.gmra.mrb[4].mxu1 %vm1040_vm5, %v7992_v25 }
 0x1b9   : > { %6043 = vmatprep.mubr.msk.f32.mxu1 %vm1040_vm5, %v7990_v24 }
 0x1bc   : > { %6044 = vmatmul.mubr.msk.f32.gmra.mrb[6].mxu1 %vm1040_vm5, %v7994_v26 }
 0x1c8   : > { %v6028_v13 = vpop.f32.mrb[4].mxu0 }
 0x1c9   : > { %v1005_v15 = vpop.f32.mrb[5].mxu0  ;;  %v1011_v45 = vadd.f32 %v6028_v13, %v5344_v44 }
 0x1ca   : > { %v1006_v46 = vadd.f32 %v5344_v44, %v1005_v15 }
 0x1cc   : > { %v6031_v16 = vpop.f32.mrb[6].mxu0  ;;  %v6590_v49 = vpack.c.bf16 %v1011_v45, %v1006_v46  ;;  %v8026_v51 = vpack.i.bf16 %v1011_v45, %v1006_v46 }
 0x1cd   : > { %v1021_v47 = vadd.f32 %v6031_v16, %v5344_v44  ;;  %v1015_v48 = vpop.f32.mrb[7].mxu0 }
 0x1ce   : > { %v1016_v50 = vadd.f32 %v5344_v44, %v1015_v48  ;;  %6591 = vmatprep.subr.bf16.mxu1 %v6590_v49 }
 0x1cf   : > { %6593 = vmatpush3.bf16.msra.mxu1 %v6590_v49 }
 0x1d0   : > { %v6594_v52 = vpack.c.bf16 %v1021_v47, %v1016_v50  ;;  %v8028_v53 = vpack.i.bf16 %v1021_v47, %v1016_v50 }
 0x1d2   : > { %6595 = vmatprep.subr.bf16.mxu1 %v6594_v52 }
 0x1d3   : > { %6597 = vmatpush3.bf16.msra.mxu1 %v6594_v52 }
 0x28b   : > { %v6042_v55 = vpop.f32.mrb[4].mxu1 }
 0x28c   : > { %v1131_v0 = vpop.f32.mrb[5].mxu1  ;;  %v1151_v57 = vmul.f32 0.17677669, %v6042_v55 }
 0x28d   : > { %v1150_v58 = vmul.f32 0.17677669, %v1131_v0 }
 0x28e   : > { %v1155_v5 = vadd.f32 %v1151_v57, %v8009_v56 }
 0x28f   : > { %v6045_v59 = vpop.f32.mrb[6].mxu1  ;;  %v1154_v62 = vadd.f32 %v1150_v58, %v8009_v56 }
 0x290   : > { %v1141_v63 = vpop.f32.mrb[7].mxu1  ;;  %v1153_v2 = vmul.f32 0.17677669, %v6045_v59  ;;  %v1161_v8 = vsel %vm1040_vm5, %v1155_v5, -inf }
 0x291   : > { %v1152_v3 = vmul.f32 0.17677669, %v1141_v63  ;;  %v1158_v4 = vsel %vm1040_vm5, %v1154_v62, -inf }
 0x292   : > { %1159 = vmax.xlane.f32.xlu0 %v1158_v4  ;;  %v1157_v11 = vadd.f32 %v1153_v2, %v8009_v56 }
 0x293   : > { %v1156_v7 = vadd.f32 %v1152_v3, %v8009_v56 }
 0x294   : > { %v1167_v12 = vsel %vm1040_vm5, %v1157_v11, -inf }
 0x295   : > { %v1164_v10 = vsel %vm1040_vm5, %v1156_v7, -inf }
 0x296   : > { %1162 = vmax.xlane.f32.xlu0 %v1161_v8  ;;  %1165 = vmax.xlane.f32.xlu1 %v1164_v10 }
 0x29a   : > { %1168 = vmax.xlane.f32.xlu1 %v1167_v12 }
 0x31f   : > { %v1160_v18 = vpop.xlane.xlu0 %1159 }
 0x320   : > { %v1170_v19 = vsub.f32 %v1154_v62, %v1160_v18 }
 0x322   : > { %v1174_v20 = vmul.f32 1.442695, %v1170_v19 }
 0x323   : > { %v1163_v22 = vpop.xlane.xlu0 %1162  ;;  %v1166_v27 = vpop.xlane.xlu1 %1165 }
 0x324   : > { %7239 = vpow2.f32 %v1174_v20  ;;  %v1171_v29 = vsub.f32 %v1155_v5, %v1163_v22  ;;  %v1172_v30 = vsub.f32 %v1156_v7, %v1166_v27 }
 0x326   : > { %v1176_v31 = vmul.f32 1.442695, %v1171_v29  ;;  %v1178_v32 = vmul.f32 1.442695, %v1172_v30 }
 0x327   : > { %v1169_v33 = vpop.xlane.xlu1 %1168 }
 0x328   : > { %7241 = vpow2.f32 %v1176_v31  ;;  %v1173_v34 = vsub.f32 %v1157_v11, %v1169_v33 }
 0x329   : > { %7243 = vpow2.f32 %v1178_v32 }
 0x32a   : > { %v1180_v35 = vmul.f32 1.442695, %v1173_v34 }
 0x32c   : > { %7245 = vpow2.f32 %v1180_v35 }
 0x32e   : > { %v7240_v36 = vpop.eup %7239 }
 0x32f   : > { %v1182_v37 = vsel %vm1040_vm5, %v7240_v36, 0.0 }
 0x330   : > { %1183 = vadd.xlane.f32.xlu0 %v1182_v37 }
 0x332   : > { %v7242_v38 = vpop.eup %7241 }
 0x333   : > { %v7244_v39 = vpop.eup %7243  ;;  %v1185_v40 = vsel %vm1040_vm5, %v7242_v38, 0.0 }
 0x334   : > { %1186 = vadd.xlane.f32.xlu1 %v1185_v40  ;;  %v1188_v41 = vsel %vm1040_vm5, %v7244_v39, 0.0 }
 0x335   : > { %1189 = vadd.xlane.f32.xlu0 %v1188_v41 }
 0x336   : > { %v7246_v42 = vpop.eup %7245 }
 0x337   : > { %v1191_v43 = vsel %vm1040_vm5, %v7246_v42, 0.0 }
 0x338   : > { %1192 = vadd.xlane.f32.xlu1 %v1191_v43 }
 0x349   : > { %7125 = vrot.lane.b32.xlu1 %v7984_v23, %s7597_s29 }
 0x34b   : > { %7120 = vrot.lane.b32.xlu0 %v7974_v14, %s7597_s29 }
 0x34d   : > { %1299 = vrot.lane.b32.xlu1 %v7976_v17, %s7597_s29 }
 0x34f   : > { %1303 = vrot.lane.b32.xlu0 %v7990_v24, %s7597_s29 }
 0x351   : > { %1301 = vrot.lane.b32.xlu1 %v7992_v25, %s7597_s29 }
 0x355   : > { %1305 = vrot.lane.b32.xlu1 %v7994_v26, %s7597_s29 }
 0x3bd   : > { %v1184_v54 = vpop.xlane.xlu0 %1183 }
 0x3be   : > { %7247 = vrcp.f32 %v1184_v54 }
 0x3c1   : > { %v1187_v55 = vpop.xlane.xlu1 %1186 }
 0x3c2   : > { %v1190_v0 = vpop.xlane.xlu0 %1189  ;;  %7249 = vrcp.f32 %v1187_v55 }
 0x3c3   : > { %7251 = vrcp.f32 %v1190_v0 }
 0x3c5   : > { %v1193_v57 = vpop.xlane.xlu1 %1192 }
 0x3c6   : > { %v7121_v58 = vpop.permute.xlu0 %7120  ;;  %7253 = vrcp.f32 %v1193_v57 }
 0x3c7   : > { %v7123_v59 = vunpack.i.h.bf16 %v7121_v58  ;;  %v7122_v62 = vunpack.i.l.bf16 %v7121_v58 }
 0x3c8   : > { %v7248_v63 = vpop.eup %7247 }
 0x3c9   : > { %v6598_v2 = vpack.c.bf16 %v7123_v59, %v7122_v62  ;;  %v7126_v3 = vpop.permute.xlu1 %7125  ;;  %v1198_v4 = vmul.f32 %v7248_v63, %v7240_v36 }
 0x3ca   : > { %v7128_v5 = vunpack.i.h.bf16 %v7126_v3  ;;  %v7127_v7 = vunpack.i.l.bf16 %v7126_v3  ;;  %v1304_v20 = vpop.permute.xlu0 %1303 }
 0x3cb   : > { %6600 = vmatprep.subr.msk.bf16.mxu1 %vm7970_vm6, %v6598_v2  ;;  %6054 = vmatprep.mubr.msk.f32.mxu1 %vm1040_vm5, %v1198_v4 }
 0x3cc   : > { %v7250_v8 = vpop.eup %7249  ;;  %v6604_v13 = vpack.c.bf16 %v7128_v5, %v7127_v7 }
 0x3cd   : > { %v7252_v10 = vpop.eup %7251  ;;  %v1199_v11 = vmul.f32 %v7250_v8, %v7242_v38  ;;  %v1300_v18 = vpop.permute.xlu1 %1299 }
 0x3ce   : > { %v1200_v12 = vmul.f32 %v7252_v10, %v7244_v39 }
 0x3cf   : > { %6055 = vmatmul.mubr.msk.f32.vlgmr.msra.gmra.mrb[8].mxu1 %vm1040_vm5, %v1199_v11 }
 0x3d0   : > { %v7254_v15 = vpop.eup %7253  ;;  %6603 = vmatpush3.bf16.xpose.msk.msra.mxu1 %vm7970_vm6, %v6598_v2  ;;  %6057 = vmatprep.mubr.msk.f32.mxu1 %vm1040_vm5, %v1200_v12  ;;  %v1028_v12 = vld [vmem:[#allocation9 + $0x20] sm:$0xff] }
 0x3d1   : > { %6606 = vmatprep.subr.msk.bf16.mxu1 %vm7970_vm6, %v6604_v13  ;;  %v1201_v16 = vmul.f32 %v7254_v15, %v7246_v42  ;;  %v1302_v19 = vpop.permute.xlu1 %1301  ;;  %v1030_v15 = vld [vmem:[#allocation9 + $0x30] sm:$0xff] }
 0x3d3   : > { %6058 = vmatmul.mubr.msk.f32.gmra.mrb[10].mxu1 %vm1040_vm5, %v1201_v16 }
 0x3d4   : > { %6068 = vmatprep.mubr.msk.f32.mxu1 %vm1040_vm5, %v1300_v18 }
 0x3d5   : > { %v1306_v22 = vpop.permute.xlu1 %1305 }
 0x3d8   : > { %6609 = vmatpush3.bf16.xpose.msk.msra.mxu1 %vm7970_vm6, %v6604_v13  ;;  %v1029_v13 = vld [vmem:[#allocation9 + $0x28] sm:$0xff] }
 0x3d9   : > { %v6618_v16 = vpack.c.bf16 %v1029_v13, %v1028_v12  ;;  %v1024_v12 = vld [vmem:[#allocation9] sm:$0xff]  ;;  %v1025_v13 = vld [vmem:[#allocation9 + $0x8] sm:$0xff] }
 0x3db   : > { %6619 = vmatprep.subr.bf16.mxu0 %v6618_v16 }
 0x3dc   : > { %6621 = vmatpush3.bf16.msra.mxu0 %v6618_v16  ;;  %v1026_v16 = vld [vmem:[#allocation9 + $0x10] sm:$0xff] }
 0x3df   : > { %6069 = vmatmul.mubr.msk.f32.vlgmr.msra.gmra.mrb[12].mxu1 %vm1040_vm5, %v1302_v19 }
 0x3e0   : > { %6071 = vmatprep.mubr.msk.f32.mxu1 %vm1040_vm5, %v1304_v20 }
 0x3e3   : > { %6072 = vmatmul.mubr.msk.f32.gmra.mrb[14].mxu1 %vm1040_vm5, %v1306_v22 }
 0x4a2   : > { %v8058_v27 = vpop.f32.mrb[8].mxu1 }
 0x4a3   : > { %v8060_v29 = vpop.f32.mrb[9].mxu1 }
 0x4a6   : > { %v8062_v30 = vpop.f32.mrb[10].mxu1 }
 0x4a7   : > { %v8064_v31 = vpop.f32.mrb[11].mxu1 }
 0x4b2   : > { %v6070_v32 = vpop.f32.mrb[12].mxu1 }
 0x4b3   : > { %v1417_v33 = vmul.f32 0.17677669, %v6070_v32  ;;  %v1397_v34 = vpop.f32.mrb[13].mxu1 }
 0x4b4   : > { %v1416_v35 = vmul.f32 0.17677669, %v1397_v34 }
 0x4b5   : > { %v1421_v36 = vadd.f32 %v1417_v33, %v8009_v56 }
 0x4b6   : > { %v6073_v37 = vpop.f32.mrb[14].mxu1  ;;  %v1420_v38 = vadd.f32 %v1416_v35, %v8009_v56 }
 0x4b7   : > { %v1407_v39 = vpop.f32.mrb[15].mxu1  ;;  %v1427_v40 = vsel %vm1040_vm5, %v1421_v36, -inf  ;;  %v1419_v41 = vmul.f32 0.17677669, %v6073_v37 }
 0x4b8   : > { %v1418_v42 = vmul.f32 0.17677669, %v1407_v39  ;;  %1428 = vmax.xlane.f32.xlu1 %v1427_v40  ;;  %v1424_v43 = vsel %vm1040_vm5, %v1420_v38, -inf }
 0x4b9   : > { %1425 = vmax.xlane.f32.xlu0 %v1424_v43  ;;  %v1423_v46 = vadd.f32 %v1419_v41, %v8009_v56 }
 0x4ba   : > { %v1422_v44 = vadd.f32 %v1418_v42, %v8009_v56 }
 0x4bb   : > { %v1433_v47 = vsel %vm1040_vm5, %v1423_v46, -inf }
 0x4bc   : > { %v1430_v45 = vsel %vm1040_vm5, %v1422_v44, -inf }
 0x4bd   : > { %1431 = vmax.xlane.f32.xlu0 %v1430_v45 }
 0x4c1   : > { %1434 = vmax.xlane.f32.xlu0 %v1433_v47 }
 0x545   : > { %v1429_v48 = vpop.xlane.xlu1 %1428 }
 0x546   : > { %v1437_v49 = vsub.f32 %v1421_v36, %v1429_v48  ;;  %v1426_v50 = vpop.xlane.xlu0 %1425 }
 0x547   : > { %v1436_v52 = vsub.f32 %v1420_v38, %v1426_v50 }
 0x548   : > { %v1442_v54 = vmul.f32 1.442695, %v1437_v49 }
 0x549   : > { %v1440_v55 = vmul.f32 1.442695, %v1436_v52 }
 0x54a   : > { %7255 = vpow2.f32 %v1442_v54  ;;  %v1432_v62 = vpop.xlane.xlu0 %1431 }
 0x54b   : > { %7257 = vpow2.f32 %v1440_v55  ;;  %v1438_v63 = vsub.f32 %v1422_v44, %v1432_v62 }
 0x54d   : > { %v1444_v2 = vmul.f32 1.442695, %v1438_v63 }
 0x54e   : > { %v1435_v3 = vpop.xlane.xlu0 %1434 }
 0x54f   : > { %v1439_v4 = vsub.f32 %v1423_v46, %v1435_v3  ;;  %7259 = vpow2.f32 %v1444_v2 }
 0x551   : > { %v1446_v5 = vmul.f32 1.442695, %v1439_v4 }
 0x553   : > { %7261 = vpow2.f32 %v1446_v5 }
 0x554   : > { %v8074_v0 = vpop.eup %7255 }
 0x555   : > { %v8076_v57 = vpop.eup %7257  ;;  %v1451_v58 = vsel %vm1040_vm5, %v8074_v0, 0.0 }
 0x556   : > { %1452 = vadd.xlane.f32.xlu1 %v1451_v58  ;;  %v1448_v59 = vsel %vm1040_vm5, %v8076_v57, 0.0 }
 0x557   : > { %1449 = vadd.xlane.f32.xlu0 %v1448_v59 }
 0x559   : > { %v8090_v7 = vpop.eup %7259 }
 0x55a   : > { %v1454_v8 = vsel %vm1040_vm5, %v8090_v7, 0.0 }
 0x55d   : > { %v8094_v10 = vpop.eup %7261 }
 0x55e   : > { %v1457_v11 = vsel %vm1040_vm5, %v8094_v10, 0.0 }
 0x567   : > { %7135 = vrot.lane.b32.xlu1 %v8028_v53, %s7597_s29 }
 0x56b   : > { %7140 = vrot.lane.b32.xlu1 %v7974_v14, %s7598_s7 }
 0x56d   : > { %7130 = vrot.lane.b32.xlu0 %v8026_v51, %s7597_s29 }
 0x56f   : > { %7145 = vrot.lane.b32.xlu1 %v7984_v23, %s7598_s7 }
 0x58c   : > { %1455 = vadd.xlane.f32.xlu0 %v1454_v8 }
 0x593   : > { %1458 = vadd.xlane.f32.xlu1 %v1457_v11 }
 0x5a2   : > { %1775 = vrot.lane.b32.xlu0 %v7976_v17, %s7598_s7 }
 0x5a4   : > { %1777 = vrot.lane.b32.xlu1 %v7992_v25, %s7598_s7 }
 0x5a6   : > { %1779 = vrot.lane.b32.xlu0 %v7990_v24, %s7598_s7 }
 0x5a8   : > { %1781 = vrot.lane.b32.xlu1 %v7994_v26, %s7598_s7 }
 0x5aa   : > { %7150 = vrot.lane.b32.xlu0 %v7974_v14, %s7599_s21  ;;  %v1031_v14 = vld [vmem:[#allocation9 + $0x38] sm:$0xff] }
 0x5ab   : > { %v6622_v18 = vpack.c.bf16 %v1031_v14, %v1030_v15  ;;  %v6626_v15 = vpack.c.bf16 %v1025_v13, %v1024_v12  ;;  %v1027_v14 = vld [vmem:[#allocation9 + $0x18] sm:$0xff] }
 0x5ac   : > { %7155 = vrot.lane.b32.xlu1 %v7984_v23, %s7599_s21 }
 0x5ad   : > { %6623 = vmatprep.subr.bf16.mxu0 %v6622_v18 }
 0x5ae   : > { %2154 = vrot.lane.b32.xlu0 %v7976_v17, %s7599_s21  ;;  %6625 = vmatpush3.bf16.msra.mxu0 %v6622_v18 }
 0x5af   : > { %6627 = vmatprep.subr.bf16.mxu0 %v6626_v15 }
 0x5b0   : > { %2156 = vrot.lane.b32.xlu1 %v7992_v25, %s7599_s21 }
 0x5b2   : > { %2158 = vrot.lane.b32.xlu0 %v7990_v24, %s7599_s21 }
 0x5b4   : > { %2160 = vrot.lane.b32.xlu1 %v7994_v26, %s7599_s21 }
 0x5e3   : > { %v1453_v17 = vpop.xlane.xlu1 %1452 }
 0x5e4   : > { %v1450_v23 = vpop.xlane.xlu0 %1449 }
 0x5e5   : > { %7263 = vrcp.f32 %v1450_v23  ;;  %v6630_v23 = vpack.c.bf16 %v1027_v14, %v1026_v16 }
 0x5e6   : > { %7265 = vrcp.f32 %v1453_v17 }
 0x5e7   : > { %v7136_v25 = vpop.permute.xlu1 %7135 }
 0x5e8   : > { %v7131_v19 = vpop.permute.xlu0 %7130  ;;  %v7138_v24 = vunpack.i.h.bf16 %v7136_v25  ;;  %v7137_v20 = vunpack.i.l.bf16 %v7136_v25 }
 0x5e9   : > { %v7133_v22 = vunpack.i.h.bf16 %v7131_v19  ;;  %v7132_v26 = vunpack.i.l.bf16 %v7131_v19 }
 0x5ea   : > { %v6614_v36 = vpack.c.bf16 %v7138_v24, %v7137_v20 }
 0x5eb   : > { %v7141_v32 = vpop.permute.xlu1 %7140  ;;  %v6610_v33 = vpack.c.bf16 %v7133_v22, %v7132_v26 }
 0x5ec   : > { %v7143_v34 = vunpack.i.h.bf16 %v7141_v32  ;;  %v7142_v35 = vunpack.i.l.bf16 %v7141_v32 }
 0x5ed   : > { %6611 = vmatprep.subr.bf16.mxu1 %v6610_v33 }
 0x5ee   : > { %6613 = vmatpush3.bf16.msra.mxu1 %v6610_v33  ;;  %v6634_v40 = vpack.c.bf16 %v7143_v34, %v7142_v35 }
 0x5ef   : > { %v7264_v37 = vpop.eup %7263  ;;  %6615 = vmatprep.subr.bf16.mxu1 %v6614_v36  ;;  %v7146_v42 = vpop.permute.xlu1 %7145 }
 0x5f0   : > { %v7266_v38 = vpop.eup %7265  ;;  %v1464_v39 = vmul.f32 %v7264_v37, %v8076_v57  ;;  %v7148_v43 = vunpack.i.h.bf16 %v7146_v42  ;;  %v7147_v44 = vunpack.i.l.bf16 %v7146_v42 }
 0x5f1   : > { %v1465_v41 = vmul.f32 %v7266_v38, %v8074_v0 }
 0x5f2   : > { %6617 = vmatpush3.bf16.msra.mxu1 %v6614_v36  ;;  %6082 = vmatprep.mubr.msk.f32.mxu1 %vm1040_vm5, %v1464_v39  ;;  %v6640_v45 = vpack.c.bf16 %v7148_v43, %v7147_v44 }
 0x5f3   : > { %6636 = vmatprep.subr.msk.bf16.mxu1 %vm7970_vm6, %v6634_v40 }
 0x5f5   : > { %6083 = vmatmul.mubr.msk.f32.vlgmr.msra.gmra.mrb[16].mxu1 %vm1040_vm5, %v1465_v41 }
 0x5fb   : > { %6639 = vmatpush3.bf16.xpose.msk.msra.mxu1 %vm7970_vm6, %v6634_v40 }
 0x5fc   : > { %6642 = vmatprep.subr.msk.bf16.mxu1 %vm7970_vm6, %v6640_v45 }
 0x603   : > { %6645 = vmatpush3.bf16.xpose.msk.msra.mxu1 %vm7970_vm6, %v6640_v45 }
 0x619   : > { %v1456_v46 = vpop.xlane.xlu0 %1455 }
 0x61a   : > { %7267 = vrcp.f32 %v1456_v46 }
 0x61d   : > { %v1776_v47 = vpop.permute.xlu0 %1775 }
 0x620   : > { %v1459_v48 = vpop.xlane.xlu1 %1458 }
 0x621   : > { %7269 = vrcp.f32 %v1459_v48  ;;  %v1780_v49 = vpop.permute.xlu0 %1779 }
 0x624   : > { %v7268_v50 = vpop.eup %7267  ;;  %v1778_v52 = vpop.permute.xlu1 %1777 }
 0x625   : > { %v7151_v54 = vpop.permute.xlu0 %7150  ;;  %v1466_v55 = vmul.f32 %v7268_v50, %v8090_v7 }
 0x626   : > { %v7153_v0 = vunpack.i.h.bf16 %v7151_v54  ;;  %v7152_v57 = vunpack.i.l.bf16 %v7151_v54 }
 0x627   : > { %6085 = vmatprep.mubr.msk.f32.mxu1 %vm1040_vm5, %v1466_v55 }
 0x628   : > { %v6662_v58 = vpack.c.bf16 %v7153_v0, %v7152_v57  ;;  %v1782_v59 = vpop.permute.xlu1 %1781 }
 0x629   : > { %v2155_v7 = vpop.permute.xlu0 %2154 }
 0x62a   : > { %6664 = vmatprep.subr.msk.bf16.mxu1 %vm7970_vm6, %v6662_v58 }
 0x62b   : > { %v7270_v62 = vpop.eup %7269 }
 0x62c   : > { %v7156_v63 = vpop.permute.xlu1 %7155  ;;  %v1467_v2 = vmul.f32 %v7270_v62, %v8094_v10 }
 0x62d   : > { %v7158_v3 = vunpack.i.h.bf16 %v7156_v63  ;;  %v7157_v4 = vunpack.i.l.bf16 %v7156_v63  ;;  %v2159_v10 = vpop.permute.xlu0 %2158 }
 0x62e   : > { %6086 = vmatmul.mubr.msk.f32.gmra.mrb[18].mxu1 %vm1040_vm5, %v1467_v2 }
 0x62f   : > { %6124 = vmatprep.mubr.msk.f32.mxu1 %vm1040_vm5, %v1776_v47  ;;  %v6668_v5 = vpack.c.bf16 %v7158_v3, %v7157_v4 }
 0x630   : > { %v2157_v8 = vpop.permute.xlu1 %2156 }
 0x632   : > { %6125 = vmatmul.mubr.msk.f32.vlgmr.msra.gmra.mrb[20].mxu1 %vm1040_vm5, %v1778_v52 }
 0x633   : > { %6667 = vmatpush3.bf16.xpose.msk.msra.mxu1 %vm7970_vm6, %v6662_v58  ;;  %6127 = vmatprep.mubr.msk.f32.mxu1 %vm1040_vm5, %v1780_v49 }
 0x634   : > { %6670 = vmatprep.subr.msk.bf16.mxu1 %vm7970_vm6, %v6668_v5  ;;  %v2161_v11 = vpop.permute.xlu1 %2160 }
 0x636   : > { %6128 = vmatmul.mubr.msk.f32.gmra.mrb[22].mxu1 %vm1040_vm5, %v1782_v59 }
 0x637   : > { %6166 = vmatprep.mubr.msk.f32.mxu1 %vm1040_vm5, %v2155_v7 }
 0x63b   : > { %6673 = vmatpush3.bf16.xpose.msk.msra.mxu1 %vm7970_vm6, %v6668_v5 }
 0x642   : > { %6167 = vmatmul.mubr.msk.f32.vlgmr.msra.gmra.mrb[24].mxu1 %vm1040_vm5, %v2157_v8 }
 0x643   : > { %6169 = vmatprep.mubr.msk.f32.mxu1 %vm1040_vm5, %v2159_v10 }
 0x646   : > { %6170 = vmatmul.mubr.msk.f32.gmra.mrb[26].mxu1 %vm1040_vm5, %v2161_v11 }
 0x647   : > { %2723 = vmatprep.mubr.f32.mxu1 %v7596_v21 }
 0x6c8   : > { %v6084_v18 = vpop.f32.mrb[16].mxu1 }
 0x6c9   : > { %v1562_v17 = vpop.f32.mrb[17].mxu1 }
 0x6ca   : > { %6096 = vmatprep.mubr.msk.f32.mxu0 %vm1040_vm5, %v1562_v17 }
 0x6cb   : > { %6097 = vmatmul.mubr.msk.f32.vlgmr.msra.gmra.mrb[8].mxu0 %vm1040_vm5, %v6084_v18 }
 0x6cc   : > { %6629 = vmatpush3.bf16.msra.mxu0 %v6626_v15 }
 0x6cd   : > { %6631 = vmatprep.subr.bf16.mxu0 %v6630_v23 }
 0x6d0   : > { %6633 = vmatpush3.bf16.msra.mxu0 %v6630_v23 }
 0x701   : > { %v6087_v25 = vpop.f32.mrb[18].mxu1 }
 0x702   : > { %v1572_v19 = vpop.f32.mrb[19].mxu1 }
 0x703   : > { %6099 = vmatprep.mubr.msk.f32.mxu0 %vm1040_vm5, %v1572_v19 }
 0x704   : > { %6100 = vmatmul.mubr.msk.f32.gmra.mrb[10].mxu0 %vm1040_vm5, %v6087_v25 }
 0x705   : > { %6110 = vmatprep.mubr.msk.f32.mxu0 %vm1040_vm5, %v8060_v29  ;;  %v6126_v24 = vpop.f32.mrb[20].mxu1 }
 0x706   : > { %v1893_v20 = vmul.f32 0.17677669, %v6126_v24  ;;  %v1873_v22 = vpop.f32.mrb[21].mxu1 }
 0x707   : > { %v1892_v26 = vmul.f32 0.17677669, %v1873_v22 }
 0x708   : > { %6111 = vmatmul.mubr.msk.f32.vlgmr.msra.gmra.mrb[8].mxu0 %vm1040_vm5, %v8058_v27  ;;  %v1897_v32 = vadd.f32 %v1893_v20, %v8009_v56 }
 0x709   : > { %6113 = vmatprep.mubr.msk.f32.mxu0 %vm1040_vm5, %v8064_v31  ;;  %v6129_v33 = vpop.f32.mrb[22].mxu1  ;;  %v1896_v34 = vadd.f32 %v1892_v26, %v8009_v56 }
 0x70a   : > { %v1883_v35 = vpop.f32.mrb[23].mxu1  ;;  %v1903_v36 = vsel %vm1040_vm5, %v1897_v32, -inf  ;;  %v1895_v37 = vmul.f32 0.17677669, %v6129_v33 }
 0x70b   : > { %v1894_v29 = vmul.f32 0.17677669, %v1883_v35  ;;  %1904 = vmax.xlane.f32.xlu1 %v1903_v36  ;;  %v1900_v38 = vsel %vm1040_vm5, %v1896_v34, -inf }
 0x70c   : > { %1901 = vmax.xlane.f32.xlu0 %v1900_v38  ;;  %6114 = vmatmul.mubr.msk.f32.gmra.mrb[10].mxu0 %vm1040_vm5, %v8062_v30  ;;  %v1899_v31 = vadd.f32 %v1895_v37, %v8009_v56 }
 0x70d   : > { %v1898_v27 = vadd.f32 %v1894_v29, %v8009_v56 }
 0x70e   : > { %v1909_v40 = vsel %vm1040_vm5, %v1899_v31, -inf }
 0x70f   : > { %v1906_v39 = vsel %vm1040_vm5, %v1898_v27, -inf }
 0x710   : > { %1907 = vmax.xlane.f32.xlu0 %v1906_v39 }
 0x714   : > { %1910 = vmax.xlane.f32.xlu0 %v1909_v40 }
 0x715   : > { %v6168_v41 = vpop.f32.mrb[24].mxu1 }
 0x716   : > { %v2252_v42 = vpop.f32.mrb[25].mxu1  ;;  %v2272_v7 = vmul.f32 0.17677669, %v6168_v41 }
 0x717   : > { %v2271_v8 = vmul.f32 0.17677669, %v2252_v42 }
 0x718   : > { %v2276_v11 = vadd.f32 %v2272_v7, %v8009_v56 }
 0x719   : > { %v6171_v43 = vpop.f32.mrb[26].mxu1  ;;  %v2275_v16 = vadd.f32 %v2271_v8, %v8009_v56  ;;  %v1034_v8 = vld [vmem:[#allocation9 + $0x50] sm:$0xff] }
 0x71a   : > { %v2262_v44 = vpop.f32.mrb[27].mxu1  ;;  %v2274_v12 = vmul.f32 0.17677669, %v6171_v43  ;;  %v2282_v13 = vsel %vm1040_vm5, %v2276_v11, -inf }
 0x71b   : > { %v2273_v10 = vmul.f32 0.17677669, %v2262_v44  ;;  %v2279_v18 = vsel %vm1040_vm5, %v2275_v16, -inf }
 0x71c   : > { %v2278_v17 = vadd.f32 %v2274_v12, %v8009_v56 }
 0x71d   : > { %v2277_v15 = vadd.f32 %v2273_v10, %v8009_v56  ;;  %v1035_v10 = vld [vmem:[#allocation9 + $0x58] sm:$0xff] }
 0x71e   : > { %v2288_v23 = vsel %vm1040_vm5, %v2278_v17, -inf }
 0x71f   : > { %v2285_v14 = vsel %vm1040_vm5, %v2277_v15, -inf }
 0x798   : > { %v1905_v45 = vpop.xlane.xlu1 %1904 }
 0x799   : > { %v1913_v46 = vsub.f32 %v1897_v32, %v1905_v45  ;;  %v1902_v47 = vpop.xlane.xlu0 %1901 }
 0x79a   : > { %v1912_v48 = vsub.f32 %v1896_v34, %v1902_v47 }
 0x79b   : > { %v1918_v49 = vmul.f32 1.442695, %v1913_v46 }
 0x79c   : > { %v1916_v30 = vmul.f32 1.442695, %v1912_v48 }
 0x79d   : > { %7271 = vpow2.f32 %v1918_v49  ;;  %v1908_v50 = vpop.xlane.xlu0 %1907 }
 0x79e   : > { %7273 = vpow2.f32 %v1916_v30  ;;  %v1914_v52 = vsub.f32 %v1898_v27, %v1908_v50 }
 0x7a0   : > { %v1920_v54 = vmul.f32 1.442695, %v1914_v52 }
 0x7a1   : > { %v1911_v55 = vpop.xlane.xlu0 %1910 }
 0x7a2   : > { %7275 = vpow2.f32 %v1920_v54  ;;  %v1915_v0 = vsub.f32 %v1899_v31, %v1911_v55 }
 0x7a4   : > { %v1922_v57 = vmul.f32 1.442695, %v1915_v0 }
 0x7a6   : > { %7277 = vpow2.f32 %v1922_v57 }
 0x7a7   : > { %v7272_v58 = vpop.eup %7271 }
 0x7a8   : > { %v7274_v59 = vpop.eup %7273  ;;  %v1927_v62 = vsel %vm1040_vm5, %v7272_v58, 0.0 }
 0x7a9   : > { %1928 = vadd.xlane.f32.xlu1 %v1927_v62  ;;  %v1924_v63 = vsel %vm1040_vm5, %v7274_v59, 0.0 }
 0x7aa   : > { %1925 = vadd.xlane.f32.xlu0 %v1924_v63 }
 0x7ac   : > { %v7276_v2 = vpop.eup %7275 }
 0x7ad   : > { %v1930_v3 = vsel %vm1040_vm5, %v7276_v2, 0.0 }
 0x7ae   : > { %1931 = vadd.xlane.f32.xlu0 %v1930_v3 }
 0x7b0   : > { %v7278_v4 = vpop.eup %7277 }
 0x7b1   : > { %v1933_v5 = vsel %vm1040_vm5, %v7278_v4, 0.0 }
 0x7b2   : > { %1934 = vadd.xlane.f32.xlu1 %v1933_v5  ;;  %v1033_v5 = vld [vmem:[#allocation9 + $0x48] sm:$0xff] }
 0x7c3   : > { %7165 = vrot.lane.b32.xlu1 %v8028_v53, %s7598_s7 }
 0x7c4   : > { %7160 = vrot.lane.b32.xlu0 %v8026_v51, %s7598_s7 }
 0x7e3   : > { %2283 = vmax.xlane.f32.xlu0 %v2282_v13 }
 0x7e7   : > { %2286 = vmax.xlane.f32.xlu0 %v2285_v14  ;;  %2280 = vmax.xlane.f32.xlu1 %v2279_v18 }
 0x7eb   : > { %2289 = vmax.xlane.f32.xlu1 %v2288_v23 }
 0x836   : > { %v1929_v19 = vpop.xlane.xlu1 %1928 }
 0x837   : > { %v1926_v25 = vpop.xlane.xlu0 %1925 }
 0x838   : > { %7279 = vrcp.f32 %v1926_v25 }
 0x839   : > { %7281 = vrcp.f32 %v1929_v19 }
 0x83b   : > { %v1932_v24 = vpop.xlane.xlu0 %1931 }
 0x83c   : > { %7283 = vrcp.f32 %v1932_v24 }
 0x83f   : > { %v1935_v20 = vpop.xlane.xlu1 %1934  ;;  %v7161_v22 = vpop.permute.xlu0 %7160 }
 0x840   : > { %v7163_v26 = vunpack.i.h.bf16 %v7161_v22  ;;  %v7162_v32 = vunpack.i.l.bf16 %v7161_v22  ;;  %7285 = vrcp.f32 %v1935_v20  ;;  %v1037_v22 = vld [vmem:[#allocation9 + $0x68] sm:$0xff] }
 0x842   : > { %v7280_v33 = vpop.eup %7279  ;;  %v6646_v34 = vpack.c.bf16 %v7163_v26, %v7162_v32 }
 0x843   : > { %v7166_v35 = vpop.permute.xlu1 %7165  ;;  %v1940_v36 = vmul.f32 %v7280_v33, %v7274_v59  ;;  %v7282_v27 = vpop.eup %7281 }
 0x844   : > { %v7168_v37 = vunpack.i.h.bf16 %v7166_v35  ;;  %v7167_v29 = vunpack.i.l.bf16 %v7166_v35  ;;  %6647 = vmatprep.subr.bf16.mxu0 %v6646_v34  ;;  %v1941_v31 = vmul.f32 %v7282_v27, %v7272_v58 }
 0x845   : > { %6649 = vmatpush3.bf16.msra.mxu0 %v6646_v34  ;;  %6138 = vmatprep.mubr.msk.f32.mxu0 %vm1040_vm5, %v1940_v36 }
 0x846   : > { %v6650_v38 = vpack.c.bf16 %v7168_v37, %v7167_v29  ;;  %v7284_v39 = vpop.eup %7283  ;;  %v1038_v29 = vld [vmem:[#allocation9 + $0x70] sm:$0xff] }
 0x847   : > { %v1942_v41 = vmul.f32 %v7284_v39, %v7276_v2 }
 0x848   : > { %6651 = vmatprep.subr.bf16.mxu0 %v6650_v38 }
 0x849   : > { %6653 = vmatpush3.bf16.msra.mxu0 %v6650_v38  ;;  %v1039_v38 = vld [vmem:[#allocation9 + $0x78] sm:$0xff] }
 0x84a   : > { %v7286_v40 = vpop.eup %7285 }
 0x84b   : > { %v1943_v42 = vmul.f32 %v7286_v40, %v7278_v4  ;;  %v1032_v4 = vld [vmem:[#allocation9 + $0x40] sm:$0xff] }
 0x84c   : > { %6139 = vmatmul.mubr.msk.f32.vlgmr.msra.gmra.mrb[12].mxu0 %vm1040_vm5, %v1941_v31  ;;  %v6654_v7 = vpack.c.bf16 %v1033_v5, %v1032_v4  ;;  %v6686_v31 = vpack.c.bf16 %v1039_v38, %v1038_v29  ;;  %v2617_v5 = vld [vmem:[#allocation10 + $0x10] sm:$0xff]  ;;  %v2630_v29 = vld [vmem:[#allocation10 + $0x78] sm:$0xff] }
 0x84d   : > { %6141 = vmatprep.mubr.msk.f32.mxu0 %vm1040_vm5, %v1942_v41 }
 0x84e   : > { %6655 = vmatprep.subr.bf16.mxu0 %v6654_v7 }
 0x84f   : > { %6657 = vmatpush3.bf16.msra.mxu0 %v6654_v7  ;;  %v2622_v7 = vld [vmem:[#allocation10 + $0x38] sm:$0xff] }
 0x850   : > { %6142 = vmatmul.mubr.msk.f32.gmra.mrb[14].mxu0 %vm1040_vm5, %v1943_v42 }
 0x870   : > { %v2284_v43 = vpop.xlane.xlu0 %2283 }
 0x871   : > { %v2292_v44 = vsub.f32 %v2276_v11, %v2284_v43  ;;  %v6658_v11 = vpack.c.bf16 %v1035_v10, %v1034_v8  ;;  %v2619_v10 = vld [vmem:[#allocation10 + $0x20] sm:$0xff] }
 0x873   : > { %v2297_v45 = vmul.f32 1.442695, %v2292_v44  ;;  %6659 = vmatprep.subr.bf16.mxu0 %v6658_v11 }
 0x874   : > { %v2281_v46 = vpop.xlane.xlu1 %2280  ;;  %v2287_v47 = vpop.xlane.xlu0 %2286  ;;  %6661 = vmatpush3.bf16.msra.mxu0 %v6658_v11  ;;  %v2621_v11 = vld [vmem:[#allocation10 + $0x30] sm:$0xff] }
 0x875   : > { %7287 = vpow2.f32 %v2297_v45  ;;  %v2291_v48 = vsub.f32 %v2275_v16, %v2281_v46  ;;  %v2293_v49 = vsub.f32 %v2277_v15, %v2287_v47  ;;  %v5409_v47 = vld [vmem:[%s8724_s10] ss:$0 sm:$0xff] }
 0x877   : > { %v2295_v30 = vmul.f32 1.442695, %v2291_v48  ;;  %v2299_v50 = vmul.f32 1.442695, %v2293_v49 }
 0x878   : > { %v2290_v52 = vpop.xlane.xlu1 %2289 }
 0x879   : > { %7289 = vpow2.f32 %v2295_v30  ;;  %v2294_v54 = vsub.f32 %v2278_v17, %v2290_v52 }
 0x87a   : > { %7291 = vpow2.f32 %v2299_v50 }
 0x87b   : > { %v2301_v55 = vmul.f32 1.442695, %v2294_v54 }
 0x87d   : > { %7293 = vpow2.f32 %v2301_v55 }
 0x87f   : > { %v7288_v0 = vpop.eup %7287 }
 0x880   : > { %v2306_v57 = vsel %vm1040_vm5, %v7288_v0, 0.0 }
 0x881   : > { %2307 = vadd.xlane.f32.xlu1 %v2306_v57 }
 0x883   : > { %v7290_v58 = vpop.eup %7289 }
 0x884   : > { %v2303_v59 = vsel %vm1040_vm5, %v7290_v58, 0.0  ;;  %v7292_v62 = vpop.eup %7291 }
 0x885   : > { %2304 = vadd.xlane.f32.xlu0 %v2303_v59  ;;  %v2309_v3 = vsel %vm1040_vm5, %v7292_v62, 0.0 }
 0x887   : > { %v8193_v63 = vpop.eup %7293 }
 0x888   : > { %v2312_v2 = vsel %vm1040_vm5, %v8193_v63, 0.0 }
 0x889   : > { %2313 = vadd.xlane.f32.xlu1 %v2312_v2  ;;  %2310 = vadd.xlane.f32.xlu0 %v2309_v3  ;;  %v2618_v2 = vld [vmem:[#allocation10 + $0x18] sm:$0xff]  ;;  %v2615_v3 = vld [vmem:[#allocation10] sm:$0xff] }
 0x88a   : > { %v6692_v8 = vpack.c.bf16 %v2617_v5, %v2615_v3  ;;  %v2645_v3 = vld [vmem:[#allocation10 + $0xf0] sm:$0xff]  ;;  %v2772_v5 = vld [vmem:[#allocation12 + $0x80] sm:$0xff] }
 0x89a   : > { %7175 = vrot.lane.b32.xlu1 %v8028_v53, %s7599_s21 }
 0x89f   : > { %7170 = vrot.lane.b32.xlu0 %v8026_v51, %s7599_s21  ;;  %v1036_v51 = vld [vmem:[#allocation9 + $0x60] sm:$0xff] }
 0x8a0   : > { %v6682_v35 = vpack.c.bf16 %v1037_v22, %v1036_v51 }
 0x90e   : > { %v2308_v12 = vpop.xlane.xlu1 %2307 }
 0x912   : > { %v2305_v13 = vpop.xlane.xlu0 %2304 }
 0x913   : > { %7295 = vrcp.f32 %v2305_v13  ;;  %v2626_v13 = vld [vmem:[#allocation10 + $0x58] sm:$0xff] }
 0x914   : > { %7297 = vrcp.f32 %v2308_v12  ;;  %v2624_v12 = vld [vmem:[#allocation10 + $0x48] sm:$0xff] }
 0x916   : > { %v2314_v15 = vpop.xlane.xlu1 %2313  ;;  %v2311_v16 = vpop.xlane.xlu0 %2310 }
 0x917   : > { %7299 = vrcp.f32 %v2311_v16  ;;  %v2625_v16 = vld [vmem:[#allocation10 + $0x50] sm:$0xff] }
 0x918   : > { %7301 = vrcp.f32 %v2314_v15  ;;  %v2623_v15 = vld [vmem:[#allocation10 + $0x40] sm:$0xff] }
 0x91a   : > { %v7171_v14 = vpop.permute.xlu0 %7170  ;;  %v7176_v18 = vpop.permute.xlu1 %7175 }
 0x91b   : > { %v7173_v17 = vunpack.i.h.bf16 %v7171_v14  ;;  %v7172_v53 = vunpack.i.l.bf16 %v7171_v14  ;;  %v7178_v25 = vunpack.i.h.bf16 %v7176_v18  ;;  %v7177_v19 = vunpack.i.l.bf16 %v7176_v18 }
 0x91c   : > { %v6700_v14 = vpack.c.bf16 %v2625_v16, %v2623_v15  ;;  %v2776_v15 = vld [vmem:[#allocation12 + $0xa0] sm:$0xff]  ;;  %v2777_v16 = vld [vmem:[#allocation12 + $0xa8] sm:$0xff] }
 0x91d   : > { %v6674_v23 = vpack.c.bf16 %v7173_v17, %v7172_v53  ;;  %v7296_v26 = vpop.eup %7295  ;;  %v6678_v32 = vpack.c.bf16 %v7178_v25, %v7177_v19 }
 0x91e   : > { %v7298_v36 = vpop.eup %7297  ;;  %v2319_v37 = vmul.f32 %v7296_v26, %v7290_v58 }
 0x91f   : > { %v6140_v24 = vpop.f32.mrb[12].mxu0  ;;  %6675 = vmatprep.subr.bf16.mxu0 %v6674_v23  ;;  %v2320_v39 = vmul.f32 %v7298_v36, %v7288_v0 }
 0x920   : > { %v2034_v20 = vpop.f32.mrb[13].mxu0 }
 0x921   : > { %6152 = vmatprep.mubr.msk.f32.mxu0 %vm1040_vm5, %v2034_v20  ;;  %v7300_v27 = vpop.eup %7299 }
 0x922   : > { %6153 = vmatmul.mubr.msk.f32.vlgmr.msra.gmra.mrb[8].mxu0 %vm1040_vm5, %v6140_v24  ;;  %v7302_v40 = vpop.eup %7301  ;;  %v2321_v41 = vmul.f32 %v7300_v27, %v7292_v62  ;;  %v2627_v27 = vld [vmem:[#allocation10 + $0x60] sm:$0xff] }
 0x923   : > { %6677 = vmatpush3.bf16.msra.mxu0 %v6674_v23  ;;  %v6143_v33 = vpop.f32.mrb[14].mxu0  ;;  %v2322_v42 = vmul.f32 %v7302_v40, %v8193_v63  ;;  %v2616_v63 = vld [vmem:[#allocation10 + $0x8] sm:$0xff] }
 0x924   : > { %6679 = vmatprep.subr.bf16.mxu0 %v6678_v32  ;;  %v2044_v34 = vpop.f32.mrb[15].mxu0  ;;  %v6690_v4 = vpack.c.bf16 %v2618_v2, %v2616_v63  ;;  %v2632_v40 = vld [vmem:[#allocation10 + $0x88] sm:$0xff]  ;;  %v2643_v63 = vld [vmem:[#allocation10 + $0xe0] sm:$0xff] }
 0x925   : > { %6155 = vmatprep.mubr.msk.f32.mxu0 %vm1040_vm5, %v2044_v34 }
 0x926   : > { %6156 = vmatmul.mubr.msk.f32.gmra.mrb[10].mxu0 %vm1040_vm5, %v6143_v33  ;;  %6691 = vmatprep.subr.bf16.mxu1 %v6690_v4  ;;  %v6720_v4 = vpack.c.bf16 %v2645_v3, %v2643_v63 }
 0x927   : > { %6681 = vmatpush3.bf16.msra.mxu0 %v6678_v32  ;;  %6180 = vmatprep.mubr.msk.f32.mxu0 %vm1040_vm5, %v2319_v37  ;;  %v2628_v37 = vld [vmem:[#allocation10 + $0x68] sm:$0xff] }
 0x928   : > { %6683 = vmatprep.subr.bf16.mxu0 %v6682_v35  ;;  %6693 = vmatpush1.bf16.msra.mxu1 %v6692_v8  ;;  %v6702_v38 = vpack.c.bf16 %v2630_v29, %v2628_v37  ;;  %v2764_v29 = vld [vmem:[#allocation12 + $0x40] sm:$0xff] }
 0x92a   : > { %6181 = vmatmul.mubr.msk.f32.vlgmr.msra.gmra.mrb[16].mxu0 %vm1040_vm5, %v2320_v39  ;;  %v2629_v39 = vld [vmem:[#allocation10 + $0x70] sm:$0xff] }
 0x92b   : > { %6183 = vmatprep.mubr.msk.f32.mxu0 %vm1040_vm5, %v2321_v41  ;;  %6685 = vmatpush3.bf16.msra.mxu0 %v6682_v35  ;;  %v2634_v41 = vld [vmem:[#allocation10 + $0x98] sm:$0xff] }
 0x92c   : > { %6687 = vmatprep.subr.bf16.mxu0 %v6686_v31 }
 0x92e   : > { %6184 = vmatmul.mubr.msk.f32.gmra.mrb[18].mxu0 %vm1040_vm5, %v2322_v42  ;;  %v6706_v42 = vpack.c.bf16 %v2634_v41, %v2632_v40  ;;  %v2766_v41 = vld [vmem:[#allocation12 + $0x50] sm:$0xff] }
 0x92f   : > { %6689 = vmatpush3.bf16.msra.mxu0 %v6686_v31  ;;  %v6704_v31 = vpack.c.bf16 %v2629_v39, %v2627_v27  ;;  %v2782_v27 = vld [vmem:[#allocation12 + $0xd0] sm:$0xff]  ;;  %v2783_v39 = vld [vmem:[#allocation12 + $0xd8] sm:$0xff] }
 0x930   : > { %v6742_v40 = vpack.c.bf16 %v2783_v39, %v2782_v27 }
 0x9fd   : > { %v6182_v43 = vpop.f32.mrb[16].mxu0 }
 0x9fe   : > { %v2413_v44 = vpop.f32.mrb[17].mxu0 }
 0x9ff   : > { %6194 = vmatprep.mubr.msk.f32.mxu0 %vm1040_vm5, %v2413_v44  ;;  %v2633_v44 = vld [vmem:[#allocation10 + $0x90] sm:$0xff] }
 0xa00   : > { %6195 = vmatmul.mubr.msk.f32.vlgmr.msra.gmra.mrb[8].mxu0 %vm1040_vm5, %v6182_v43  ;;  %v2631_v43 = vld [vmem:[#allocation10 + $0x80] sm:$0xff] }
 0xa01   : > { %v6185_v45 = vpop.f32.mrb[18].mxu0 }
 0xa02   : > { %v2423_v46 = vpop.f32.mrb[19].mxu0 }
 0xa03   : > { %6197 = vmatprep.mubr.msk.f32.mxu0 %vm1040_vm5, %v2423_v46  ;;  %v2636_v46 = vld [vmem:[#allocation10 + $0xa8] sm:$0xff] }
 0xa04   : > { %6198 = vmatmul.mubr.msk.f32.gmra.mrb[10].mxu0 %vm1040_vm5, %v6185_v45  ;;  %v6708_v45 = vpack.c.bf16 %v2633_v44, %v2631_v43  ;;  %v2784_v43 = vld [vmem:[#allocation12 + $0xe0] sm:$0xff]  ;;  %v2785_v44 = vld [vmem:[#allocation12 + $0xe8] sm:$0xff] }
 0xad3   : > { %v6196_v48 = vpop.f32.mrb[8].mxu0 }
 0xad4   : > { %v2541_v49 = vadd.f32 %v6196_v48, %v5409_v47  ;;  %v2510_v30 = vpop.f32.mrb[9].mxu0 }
 0xad5   : > { %v2540_v50 = vadd.f32 %v5409_v47, %v2510_v30  ;;  %v2637_v30 = vld [vmem:[#allocation10 + $0xb0] sm:$0xff] }
 0xad6   : > { %v2545_v52 = vadd.f32 %v2541_v49, %v7945_v60  ;;  %v2620_v60 = vld [vmem:[#allocation10 + $0x28] sm:$0xff]  ;;  %v2635_v49 = vld [vmem:[#allocation10 + $0xa0] sm:$0xff] }
 0xad7   : > { %v6199_v54 = vpop.f32.mrb[10].mxu0  ;;  %v2544_v55 = vadd.f32 %v2540_v50, %v7911_v28  ;;  %v6694_v28 = vpack.c.bf16 %v2622_v7, %v2620_v60  ;;  %v6712_v50 = vpack.c.bf16 %v2637_v30, %v2635_v49  ;;  %v2773_v60 = vld [vmem:[#allocation12 + $0x88] sm:$0xff]  ;;  %v2756_v7 = vld [vmem:[#allocation12] sm:$0xff] }
 0xad8   : > { %v2543_v0 = vadd.f32 %v6199_v54, %v5409_v47  ;;  %2552 = vadd.xlane.f32.xlu0 %v2545_v52  ;;  %v2520_v57 = vpop.f32.mrb[11].mxu0  ;;  %v2642_v54 = vld [vmem:[#allocation10 + $0xd8] sm:$0xff]  ;;  %v6722_v8 = vpack.c.bf16 %v2773_v60, %v2772_v5  ;;  %v5411_v5 = vld [vmem:[%s8726_s12] ss:$0 sm:$0xff] }
 0xad9   : > { %v2542_v58 = vadd.f32 %v5409_v47, %v2520_v57  ;;  %2550 = vadd.xlane.f32.xlu1 %v2544_v55  ;;  %6695 = vmatprep.subr.bf16.mxu1 %v6694_v28  ;;  %v2638_v47 = vld [vmem:[#allocation10 + $0xb8] sm:$0xff]  ;;  %v2641_v57 = vld [vmem:[#allocation10 + $0xd0] sm:$0xff]  ;;  %v2757_v28 = vld [vmem:[#allocation12 + $0x8] sm:$0xff] }
 0xada   : > { %v2547_v59 = vadd.f32 %v2543_v0, %v7955_v1  ;;  %v6696_v1 = vpack.c.bf16 %v2621_v11, %v2619_v10  ;;  %v6710_v48 = vpack.c.bf16 %v2638_v47, %v2636_v46  ;;  %v2639_v0 = vld [vmem:[#allocation10 + $0xc0] sm:$0xff]  ;;  %v2774_v10 = vld [vmem:[#allocation12 + $0x90] sm:$0xff]  ;;  %v2775_v11 = vld [vmem:[#allocation12 + $0x98] sm:$0xff]  ;;  %6723 = vmatprep.subr.bf16.mxu0 %v6722_v8  ;;  %v6746_v46 = vpack.c.bf16 %v2785_v44, %v2784_v43 }
 0xadb   : > { %v2546_v62 = vadd.f32 %v2542_v58, %v7948_v61  ;;  %v6698_v61 = vpack.c.bf16 %v2626_v13, %v2624_v12  ;;  %v6716_v58 = vpack.c.bf16 %v2641_v57, %v2639_v0  ;;  %v6724_v12 = vpack.c.bf16 %v2757_v28, %v2756_v7 }
 0xadc   : > { %6697 = vmatpush1.bf16.msra.mxu1 %v6696_v1  ;;  %v6726_v13 = vpack.c.bf16 %v2775_v11, %v2774_v10  ;;  %v2758_v1 = vld [vmem:[#allocation12 + $0x10] sm:$0xff] }
 0xadd   : > { %2556 = vadd.xlane.f32.xlu1 %v2547_v59  ;;  %2554 = vadd.xlane.f32.xlu0 %v2546_v62 }
 0xade   : > { %6699 = vmatprep.subr.bf16.mxu1 %v6698_v61  ;;  %v2759_v61 = vld [vmem:[#allocation12 + $0x18] sm:$0xff]  ;;  %6725 = vmatpush3.bf16.msra.mxu0 %v6724_v12 }
 0xadf   : > { %6727 = vmatprep.subr.bf16.mxu0 %v6726_v13 }
 0xae0   : > { %6701 = vmatpush1.bf16.msra.mxu1 %v6700_v14  ;;  %v6728_v14 = vpack.c.bf16 %v2759_v61, %v2758_v1  ;;  %v2768_v61 = vld [vmem:[#allocation12 + $0x60] sm:$0xff] }
 0xae1   : > { %6703 = vmatprep.subr.bf16.mxu1 %v6702_v38  ;;  %v2765_v38 = vld [vmem:[#allocation12 + $0x48] sm:$0xff] }
 0xae2   : > { %6729 = vmatpush3.bf16.msra.mxu0 %v6728_v14  ;;  %v2787_v14 = vld [vmem:[#allocation12 + $0xf8] sm:$0xff] }
 0xae4   : > { %6705 = vmatpush1.bf16.msra.mxu1 %v6704_v31  ;;  %v6740_v31 = vpack.c.bf16 %v2765_v38, %v2764_v29 }
 0xae5   : > { %6707 = vmatprep.subr.bf16.mxu1 %v6706_v42  ;;  %v2767_v42 = vld [vmem:[#allocation12 + $0x58] sm:$0xff] }
 0xae8   : > { %6709 = vmatpush1.bf16.msra.mxu1 %v6708_v45  ;;  %v6744_v45 = vpack.c.bf16 %v2767_v42, %v2766_v41 }
 0xae9   : > { %6711 = vmatprep.subr.bf16.mxu1 %v6710_v48 }
 0xaec   : > { %6713 = vmatpush1.bf16.msra.mxu1 %v6712_v50 }
 0xb65   : > { %v2553_v18 = vpop.xlane.xlu0 %2552 }
 0xb66   : > { %v2560_v17 = vmul.f32 0.0078125, %v2553_v18  ;;  %v2551_v53 = vpop.xlane.xlu1 %2550  ;;  %v6730_v18 = vpack.c.bf16 %v2777_v16, %v2776_v15  ;;  %v2769_v15 = vld [vmem:[#allocation12 + $0x68] sm:$0xff] }
 0xb67   : > { %v2559_v23 = vmul.f32 0.0078125, %v2551_v53  ;;  %v2761_v53 = vld [vmem:[#allocation12 + $0x28] sm:$0xff]  ;;  %v6748_v16 = vpack.c.bf16 %v2769_v15, %v2768_v61 }
 0xb68   : > { %v8222_v25 = vsub.f32 %v2545_v52, %v2560_v17  ;;  %v2640_v52 = vld [vmem:[#allocation10 + $0xc8] sm:$0xff]  ;;  %v2760_v17 = vld [vmem:[#allocation12 + $0x20] sm:$0xff]  ;;  %6731 = vmatprep.subr.bf16.mxu0 %v6730_v18 }
 0xb69   : > { %v8224_v19 = vsub.f32 %v2544_v55, %v2559_v23  ;;  %v6714_v55 = vpack.c.bf16 %v2642_v54, %v2640_v52  ;;  %v2778_v23 = vld [vmem:[#allocation12 + $0xb0] sm:$0xff] }
 0xb6a   : > { %v2557_v24 = vpop.xlane.xlu1 %2556  ;;  %v2555_v20 = vpop.xlane.xlu0 %2554  ;;  %v2568_v51 = vmul.f32 %v8222_v25, %v8222_v25 }
 0xb6b   : > { %v2562_v22 = vmul.f32 0.0078125, %v2557_v24  ;;  %v2561_v26 = vmul.f32 0.0078125, %v2555_v20  ;;  %v2567_v32 = vmul.f32 %v8224_v19, %v8224_v19  ;;  %6715 = vmatprep.subr.bf16.mxu1 %v6714_v55  ;;  %v2779_v24 = vld [vmem:[#allocation12 + $0xb8] sm:$0xff]  ;;  %v6732_v20 = vpack.c.bf16 %v2761_v53, %v2760_v17  ;;  %v2770_v17 = vld [vmem:[#allocation12 + $0x70] sm:$0xff] }
 0xb6c   : > { %2573 = vadd.xlane.f32.xlu1 %v2568_v51  ;;  %6717 = vmatpush1.bf16.msra.mxu1 %v6716_v58  ;;  %v6734_v51 = vpack.c.bf16 %v2779_v24, %v2778_v23  ;;  %v2771_v53 = vld [vmem:[#allocation12 + $0x78] sm:$0xff]  ;;  %v2651_v24 = vsub.s32 0, %v7873_v6 }
 0xb6d   : > { %v8230_v33 = vsub.f32 %v2547_v59, %v2562_v22  ;;  %v8232_v34 = vsub.f32 %v2546_v62, %v2561_v26  ;;  %2571 = vadd.xlane.f32.xlu0 %v2567_v32  ;;  %v2644_v59 = vld [vmem:[#allocation10 + $0xe8] sm:$0xff]  ;;  %v2646_v62 = vld [vmem:[#allocation10 + $0xf8] sm:$0xff]  ;;  %v2762_v22 = vld [vmem:[#allocation12 + $0x30] sm:$0xff]  ;;  %6733 = vmatpush3.bf16.msra.mxu0 %v6732_v20  ;;  %v6752_v23 = vpack.c.bf16 %v2771_v53, %v2770_v17 }
 0xb6e   : > { %v6718_v2 = vpack.c.bf16 %v2646_v62, %v2644_v59  ;;  %v2763_v26 = vld [vmem:[#allocation12 + $0x38] sm:$0xff]  ;;  %v2780_v32 = vld [vmem:[#allocation12 + $0xc0] sm:$0xff]  ;;  %6735 = vmatprep.subr.bf16.mxu0 %v6734_v51  ;;  %v2655_v51 = vsub.s32 1, %v7873_v6 }
 0xb6f   : > { %v2570_v35 = vmul.f32 %v8230_v33, %v8230_v33  ;;  %v2569_v36 = vmul.f32 %v8232_v34, %v8232_v34  ;;  %v2647_v20 = vld [vmem:[%s8772_s27] sm:$0x3] }
 0xb70   : > { %6719 = vmatprep.subr.bf16.mxu1 %v6718_v2  ;;  %v5410_v2 = vld [vmem:[%s8725_s11] ss:$0 sm:$0xff] }
 0xb71   : > { %2577 = vadd.xlane.f32.xlu1 %v2570_v35  ;;  %2575 = vadd.xlane.f32.xlu0 %v2569_v36  ;;  %v2781_v35 = vld [vmem:[#allocation12 + $0xc8] sm:$0xff]  ;;  %v6736_v36 = vpack.c.bf16 %v2763_v26, %v2762_v22  ;;  %v2652_v22 = vrot.slane %v2647_v20, %v2651_v24  ;;  %v2656_v26 = vrot.slane %v2647_v20, %v2655_v51  ;;  %v3064_v20 = vld [vmem:[#allocation5 + $0x98] sm:$0xff] }
 0xb72   : > { %6721 = vmatpush1.bf16.msra.mxu1 %v6720_v4  ;;  %v6738_v37 = vpack.c.bf16 %v2781_v35, %v2780_v32 }
 0xb73   : > { %6737 = vmatpush3.bf16.msra.mxu0 %v6736_v36 }
 0xb74   : > { %6739 = vmatprep.subr.bf16.mxu0 %v6738_v37 }
 0xb77   : > { %6741 = vmatpush3.bf16.msra.mxu0 %v6740_v31 }
 0xb78   : > { %6743 = vmatprep.subr.bf16.mxu0 %v6742_v40 }
 0xb7b   : > { %6745 = vmatpush3.bf16.msra.mxu0 %v6744_v45 }
 0xb7c   : > { %6747 = vmatprep.subr.bf16.mxu0 %v6746_v46 }
 0xb7f   : > { %6749 = vmatpush3.bf16.msra.mxu0 %v6748_v16 }
 0xbf9   : > { %v2574_v47 = vpop.xlane.xlu1 %2573 }
 0xbfa   : > { %v2580_v48 = vmul.f32 0.0078125, %v2574_v47  ;;  %v2572_v49 = vpop.xlane.xlu0 %2571 }
 0xbfb   : > { %v2579_v30 = vmul.f32 0.0078125, %v2572_v49 }
 0xbfc   : > { %v2584_v50 = vadd.f32 1e-05, %v2580_v48 }
 0xbfd   : > { %v2583_v52 = vadd.f32 1e-05, %v2579_v30 }
 0xbfe   : > { %7303 = vrsqrt.f32 %v2584_v50  ;;  %v2578_v54 = vpop.xlane.xlu1 %2577  ;;  %v2576_v55 = vpop.xlane.xlu0 %2575 }
 0xbff   : > { %7305 = vrsqrt.f32 %v2583_v52  ;;  %v2582_v0 = vmul.f32 0.0078125, %v2578_v54  ;;  %v2581_v57 = vmul.f32 0.0078125, %v2576_v55 }
 0xc01   : > { %v2586_v58 = vadd.f32 1e-05, %v2582_v0  ;;  %v2585_v59 = vadd.f32 1e-05, %v2581_v57  ;;  %v5412_v57 = vld [vmem:[%s8730_s16] ss:$0 sm:$0xff] }
 0xc03   : > { %7307 = vrsqrt.f32 %v2585_v59 }
 0xc04   : > { %7309 = vrsqrt.f32 %v2586_v58 }
 0xc08   : > { %v7304_v62 = vpop.eup %7303 }
 0xc09   : > { %v7306_v63 = vpop.eup %7305  ;;  %v2592_v4 = vmul.f32 %v7304_v62, %v8222_v25 }
 0xc0a   : > { %v2591_v3 = vmul.f32 %v7306_v63, %v8224_v19 }
 0xc0b   : > { %v2602_v28 = vmul.f32 %v5410_v2, %v2592_v4 }
 0xc0c   : > { %v2601_v60 = vmul.f32 %v5410_v2, %v2591_v3 }
 0xc0d   : > { %v7308_v7 = vpop.eup %7307  ;;  %v8251_v12 = vadd.f32 %v5411_v5, %v2602_v28 }
 0xc0e   : > { %v8246_v8 = vadd.f32 %v5411_v5, %v2601_v60  ;;  %v7310_v10 = vpop.eup %7309  ;;  %v2593_v11 = vmul.f32 %v7308_v7, %v8232_v34 }
 0xc0f   : > { %v2594_v25 = vmul.f32 %v7310_v10, %v8230_v33  ;;  %v2786_v33 = vld [vmem:[#allocation12 + $0xf0] sm:$0xff] }
 0xc10   : > { %2724 = vmatmul.mubr.f32.vlgmr.msra.gmra.mrb[28].mxu1 %v8246_v8  ;;  %v2603_v19 = vmul.f32 %v5410_v2, %v2593_v11  ;;  %v6750_v18 = vpack.c.bf16 %v2787_v14, %v2786_v33  ;;  %v3061_v33 = vld [vmem:[#allocation5 + $0x80] sm:$0xff] }
 0xc11   : > { %2729 = vmatprep.mubr.f32.mxu1 %v7596_v21  ;;  %v2604_v1 = vmul.f32 %v5410_v2, %v2594_v25 }
 0xc12   : > { %v8256_v13 = vadd.f32 %v5411_v5, %v2603_v19  ;;  %6751 = vmatprep.subr.bf16.mxu0 %v6750_v18  ;;  %v3062_v18 = vld [vmem:[#allocation5 + $0x88] sm:$0xff] }
 0xc13   : > { %v8260_v34 = vadd.f32 %v5411_v5, %v2604_v1  ;;  %6753 = vmatpush3.bf16.msra.mxu0 %v6752_v23  ;;  %v6786_v17 = vpack.c.bf16 %v3062_v18, %v3061_v33  ;;  %v3063_v23 = vld [vmem:[#allocation5 + $0x90] sm:$0xff]  ;;  %v3076_v18 = vld [vmem:[#allocation5 + $0xf8] sm:$0xff] }
 0xc14   : > { %2730 = vmatmul.mubr.f32.gmra.mrb[30].mxu1 %v8251_v12 }
 0xc15   : > { %2735 = vmatprep.mubr.f32.mxu1 %v7596_v21  ;;  %6787 = vmatprep.subr.bf16.mxu0 %v6786_v17 }
 0xc18   : > { %2736 = vmatmul.mubr.f32.gmra.mrb[32].mxu1 %v8256_v13 }
 0xc19   : > { %2741 = vmatprep.mubr.f32.mxu1 %v7596_v21 }
 0xc1c   : > { %2742 = vmatmul.mubr.f32.gmra.mrb[34].mxu1 %v8260_v34 }
 0xce3   : > { %v2725_v32 = vpop.f32.mrb[28].mxu1 }
 0xce4   : > { %v2726_v35 = vadd.f32 %v2725_v32, %v2652_v22  ;;  %v2727_v36 = vpop.f32.mrb[29].mxu1 }
 0xce5   : > { %v2728_v37 = vadd.f32 %v2727_v36, %v2656_v26 }
 0xce6   : > { %v2748_v27 = vmax.f32 %v2726_v35, 0.0 }
 0xce7   : > { %v2749_v29 = vmax.f32 %v2728_v37, 0.0  ;;  %v2731_v38 = vpop.f32.mrb[30].mxu1 }
 0xce8   : > { %v2732_v39 = vadd.f32 %v2731_v38, %v2652_v22  ;;  %v2733_v31 = vpop.f32.mrb[31].mxu1 }
 0xce9   : > { %v2734_v40 = vadd.f32 %v2733_v31, %v2656_v26  ;;  %2859 = vmatprep.mubr.f32.mxu0 %v2749_v29 }
 0xcea   : > { %2860 = vmatmul.mubr.f32.vlgmr.msra.gmra.mrb[20].mxu0 %v2748_v27  ;;  %v2750_v43 = vmax.f32 %v2732_v39, 0.0 }
 0xceb   : > { %v2751_v41 = vmax.f32 %v2734_v40, 0.0  ;;  %v2737_v42 = vpop.f32.mrb[32].mxu1  ;;  %6789 = vmatpush3.bf16.msra.mxu0 %v6786_v17  ;;  %v3172_v17 = vld [vmem:[#allocation7 + $0x88] sm:$0xff] }
 0xcec   : > { %v2738_v44 = vadd.f32 %v2737_v42, %v2652_v22  ;;  %v2739_v45 = vpop.f32.mrb[33].mxu1 }
 0xced   : > { %v2740_v46 = vadd.f32 %v2739_v45, %v2656_v26  ;;  %2864 = vmatprep.mubr.f32.mxu0 %v2751_v41 }
 0xcee   : > { %2865 = vmatmul.mubr.f32.gmra.mrb[22].mxu0 %v2750_v43  ;;  %v2752_v49 = vmax.f32 %v2738_v44, 0.0 }
 0xcef   : > { %v2753_v47 = vmax.f32 %v2740_v46, 0.0  ;;  %v2743_v48 = vpop.f32.mrb[34].mxu1  ;;  %v5419_v46 = vld [vmem:[%s8767_s30 + $0xa0] sm:$0xff] }
 0xcf0   : > { %v2744_v30 = vadd.f32 %v2743_v48, %v2652_v22  ;;  %v2745_v50 = vpop.f32.mrb[35].mxu1  ;;  %v6790_v22 = vpack.c.bf16 %v3064_v20, %v3063_v23 }
 0xcf1   : > { %v2746_v52 = vadd.f32 %v2745_v50, %v2656_v26  ;;  %2869 = vmatprep.mubr.f32.mxu0 %v2753_v47  ;;  %v5420_v47 = vld [vmem:[%s8767_s30 + $0xa8] sm:$0xff] }
 0xcf2   : > { %2870 = vmatmul.mubr.f32.gmra.mrb[24].mxu0 %v2752_v49  ;;  %v2754_v55 = vmax.f32 %v2744_v30, 0.0  ;;  %6791 = vmatprep.subr.bf16.mxu0 %v6790_v22  ;;  %v6762_v48 = vpack.c.bf16 %v5420_v47, %v5419_v46  ;;  %v3065_v49 = vld [vmem:[#allocation5 + $0xa0] sm:$0xff]  ;;  %v3066_v30 = vld [vmem:[#allocation5 + $0xa8] sm:$0xff] }
 0xcf3   : > { %v2755_v54 = vmax.f32 %v2746_v52, 0.0  ;;  %6793 = vmatpush3.bf16.msra.mxu0 %v6790_v22  ;;  %v6794_v50 = vpack.c.bf16 %v3066_v30, %v3065_v49  ;;  %v5421_v52 = vld [vmem:[%s8767_s30 + $0xb0] sm:$0xff]  ;;  %v5414_v46 = vld [vmem:[%s8732_s18] ss:$0 sm:$0xff] }
 0xcf5   : > { %2874 = vmatprep.mubr.f32.mxu0 %v2755_v54  ;;  %6795 = vmatprep.subr.bf16.mxu0 %v6794_v50  ;;  %v5422_v54 = vld [vmem:[%s8767_s30 + $0xb8] sm:$0xff] }
 0xcf6   : > { %2875 = vmatmul.mubr.f32.gmra.mrb[26].mxu0 %v2754_v55  ;;  %v6766_v55 = vpack.c.bf16 %v5422_v54, %v5421_v52  ;;  %v3174_v52 = vld [vmem:[#allocation7 + $0x98] sm:$0xff] }
 0xcf7   : > { %6797 = vmatpush3.bf16.msra.mxu0 %v6794_v50  ;;  %v3173_v50 = vld [vmem:[#allocation7 + $0x90] sm:$0xff] }
 0xdbd   : > { %v5706_v0 = vpop.f32.mrb[20].mxu0 }
 0xdbe   : > { %v5707_v58 = vpop.f32.mrb[21].mxu0 }
 0xdbf   : > { %v5708_v59 = vadd.f32 %v5707_v58, %v5706_v0  ;;  %v3067_v0 = vld [vmem:[#allocation5 + $0xb0] sm:$0xff] }
 0xdc1   : > { %v2862_v62 = vadd.f32 %v5708_v59, %v5412_v57  ;;  %v5709_v63 = vpop.f32.mrb[22].mxu0  ;;  %v5423_v59 = vld [vmem:[%s8767_s30 + $0xc0] sm:$0xff] }
 0xdc2   : > { %v5710_v2 = vpop.f32.mrb[23].mxu0 }
 0xdc3   : > { %v5711_v3 = vadd.f32 %v5710_v2, %v5709_v63  ;;  %v2880_v4 = vadd.f32 %v2862_v62, %v8246_v8  ;;  %v5415_v8 = vld [vmem:[%s8767_s30 + $0x80] sm:$0xff]  ;;  %v5424_v62 = vld [vmem:[%s8767_s30 + $0xc8] sm:$0xff] }
 0xdc4   : > { %v6770_v63 = vpack.c.bf16 %v5424_v62, %v5423_v59  ;;  %v3069_v2 = vld [vmem:[#allocation5 + $0xc0] sm:$0xff]  ;;  %v3176_v59 = vld [vmem:[#allocation7 + $0xa8] sm:$0xff] }
 0xdc5   : > { %v2867_v5 = vadd.f32 %v5711_v3, %v5412_v57  ;;  %2886 = vadd.xlane.f32.xlu0 %v2880_v4  ;;  %v5712_v60 = vpop.f32.mrb[24].mxu0  ;;  %v3070_v3 = vld [vmem:[#allocation5 + $0xc8] sm:$0xff] }
 0xdc6   : > { %v5713_v7 = vpop.f32.mrb[25].mxu0 }
 0xdc7   : > { %v5714_v28 = vadd.f32 %v5713_v7, %v5712_v60  ;;  %v2881_v10 = vadd.f32 %v2867_v5, %v8251_v12  ;;  %v5416_v12 = vld [vmem:[%s8767_s30 + $0x88] sm:$0xff]  ;;  %v5425_v5 = vld [vmem:[%s8767_s30 + $0xd0] sm:$0xff]  ;;  %v5426_v60 = vld [vmem:[%s8767_s30 + $0xd8] sm:$0xff] }
 0xdc8   : > { %v6754_v14 = vpack.c.bf16 %v5416_v12, %v5415_v8  ;;  %v6774_v7 = vpack.c.bf16 %v5426_v60, %v5425_v5  ;;  %v5429_v8 = vld [vmem:[%s8767_s30 + $0xf0] sm:$0xff]  ;;  %v5430_v12 = vld [vmem:[%s8767_s30 + $0xf8] sm:$0xff] }
 0xdc9   : > { %v2872_v11 = vadd.f32 %v5714_v28, %v5412_v57  ;;  %2888 = vadd.xlane.f32.xlu1 %v2881_v10  ;;  %v5715_v19 = vpop.f32.mrb[26].mxu0  ;;  %v3071_v28 = vld [vmem:[#allocation5 + $0xd0] sm:$0xff]  ;;  %v6782_v33 = vpack.c.bf16 %v5430_v12, %v5429_v8  ;;  %v3178_v5 = vld [vmem:[#allocation7 + $0xb8] sm:$0xff] }
 0xdca   : > { %v5716_v25 = vpop.f32.mrb[27].mxu0  ;;  %6755 = vmatprep.subr.bf16.mxu1 %v6754_v14  ;;  %v3186_v8 = vld [vmem:[#allocation7 + $0xf8] sm:$0xff] }
 0xdcb   : > { %v5717_v1 = vadd.f32 %v5716_v25, %v5715_v19  ;;  %v2882_v61 = vadd.f32 %v2872_v11, %v8256_v13  ;;  %v5417_v13 = vld [vmem:[%s8767_s30 + $0x90] sm:$0xff]  ;;  %6757 = vmatpush3.bf16.msra.mxu1 %v6754_v14  ;;  %v5427_v19 = vld [vmem:[%s8767_s30 + $0xe0] sm:$0xff]  ;;  %v5428_v25 = vld [vmem:[%s8767_s30 + $0xe8] sm:$0xff] }
 0xdcc   : > { %v3075_v14 = vld [vmem:[#allocation5 + $0xf0] sm:$0xff] }
 0xdcd   : > { %v2877_v15 = vadd.f32 %v5717_v1, %v5412_v57  ;;  %2890 = vadd.xlane.f32.xlu0 %v2882_v61  ;;  %v3068_v57 = vld [vmem:[#allocation5 + $0xb8] sm:$0xff]  ;;  %v6778_v1 = vpack.c.bf16 %v5428_v25, %v5427_v19 }
 0xdce   : > { %v6798_v58 = vpack.c.bf16 %v3068_v57, %v3067_v0  ;;  %v6822_v0 = vpack.c.bf16 %v3174_v52, %v3173_v50  ;;  %v3182_v19 = vld [vmem:[#allocation7 + $0xd8] sm:$0xff] }
 0xdcf   : > { %v2883_v16 = vadd.f32 %v2877_v15, %v8260_v34  ;;  %v5418_v34 = vld [vmem:[%s8767_s30 + $0x98] sm:$0xff]  ;;  %v3074_v15 = vld [vmem:[#allocation5 + $0xe8] sm:$0xff] }
 0xdd0   : > { %v6758_v53 = vpack.c.bf16 %v5418_v34, %v5417_v13  ;;  %6799 = vmatprep.subr.bf16.mxu0 %v6798_v58  ;;  %v6814_v13 = vpack.c.bf16 %v3076_v18, %v3075_v14  ;;  %v3171_v34 = vld [vmem:[#allocation7 + $0x80] sm:$0xff] }
 0xdd1   : > { %2892 = vadd.xlane.f32.xlu1 %v2883_v16  ;;  %6801 = vmatpush3.bf16.msra.mxu0 %v6798_v58  ;;  %v3175_v58 = vld [vmem:[#allocation7 + $0xa0] sm:$0xff] }
 0xdd2   : > { %6759 = vmatprep.subr.bf16.mxu1 %v6758_v53  ;;  %v5432_v14 = vld [vmem:[%s8769_s26 + $0x1] ss:$0 sm:$0xff] }
 0xdd3   : > { %6761 = vmatpush3.bf16.msra.mxu1 %v6758_v53  ;;  %v6818_v53 = vpack.c.bf16 %v3172_v17, %v3171_v34 }
 0xdd4   : > { %6763 = vmatprep.subr.bf16.mxu1 %v6762_v48 }
 0xdd7   : > { %6765 = vmatpush3.bf16.msra.mxu1 %v6762_v48 }
 0xdd8   : > { %6767 = vmatprep.subr.bf16.mxu1 %v6766_v55 }
 0xddb   : > { %6769 = vmatpush3.bf16.msra.mxu1 %v6766_v55 }
 0xddc   : > { %6771 = vmatprep.subr.bf16.mxu1 %v6770_v63 }
 0xddf   : > { %6773 = vmatpush3.bf16.msra.mxu1 %v6770_v63 }
 0xde0   : > { %6775 = vmatprep.subr.bf16.mxu1 %v6774_v7 }
 0xde3   : > { %6777 = vmatpush3.bf16.msra.mxu1 %v6774_v7 }
 0xde4   : > { %6779 = vmatprep.subr.bf16.mxu1 %v6778_v1 }
 0xde7   : > { %6781 = vmatpush3.bf16.msra.mxu1 %v6778_v1  ;;  %v3183_v1 = vld [vmem:[#allocation7 + $0xe0] sm:$0xff] }
 0xde8   : > { %6783 = vmatprep.subr.bf16.mxu1 %v6782_v33 }
 0xdeb   : > { %6785 = vmatpush3.bf16.msra.mxu1 %v6782_v33  ;;  %v5434_v33 = vld [vmem:[%s8720_s6 + $0x1] ss:$0 sm:$0xff] }
 0xdec   : > { %6819 = vmatprep.subr.bf16.mxu1 %v6818_v53 }
 0xe52   : > { %v2887_v26 = vpop.xlane.xlu0 %2886 }
 0xe53   : > { %v2894_v32 = vmul.f32 0.0078125, %v2887_v26 }
 0xe55   : > { %v8291_v35 = vsub.f32 %v2880_v4, %v2894_v32  ;;  %v6802_v4 = vpack.c.bf16 %v3070_v3, %v3069_v2  ;;  %v6826_v2 = vpack.c.bf16 %v3176_v59, %v3175_v58 }
 0xe56   : > { %v2889_v36 = vpop.xlane.xlu1 %2888 }
 0xe57   : > { %v2895_v37 = vmul.f32 0.0078125, %v2889_v36  ;;  %v2902_v29 = vmul.f32 %v8291_v35, %v8291_v35  ;;  %6803 = vmatprep.subr.bf16.mxu0 %v6802_v4 }
 0xe58   : > { %6805 = vmatpush3.bf16.msra.mxu0 %v6802_v4  ;;  %v3177_v4 = vld [vmem:[#allocation7 + $0xb0] sm:$0xff] }
 0xe59   : > { %v8295_v38 = vsub.f32 %v2881_v10, %v2895_v37  ;;  %2906 = vadd.xlane.f32.xlu0 %v2902_v29  ;;  %v3072_v10 = vld [vmem:[#allocation5 + $0xd8] sm:$0xff]  ;;  %v6830_v7 = vpack.c.bf16 %v3178_v5, %v3177_v4 }
 0xe5a   : > { %v2891_v27 = vpop.xlane.xlu0 %2890  ;;  %v6806_v11 = vpack.c.bf16 %v3072_v10, %v3071_v28  ;;  %v3179_v28 = vld [vmem:[#allocation7 + $0xc0] sm:$0xff]  ;;  %v3180_v10 = vld [vmem:[#allocation7 + $0xc8] sm:$0xff] }
 0xe5b   : > { %v2896_v39 = vmul.f32 0.0078125, %v2891_v27  ;;  %v2903_v31 = vmul.f32 %v8295_v38, %v8295_v38 }
 0xe5c   : > { %6807 = vmatprep.subr.bf16.mxu0 %v6806_v11 }
 0xe5d   : > { %v8299_v40 = vsub.f32 %v2882_v61, %v2896_v39  ;;  %2908 = vadd.xlane.f32.xlu1 %v2903_v31  ;;  %6809 = vmatpush3.bf16.msra.mxu0 %v6806_v11  ;;  %v3073_v61 = vld [vmem:[#allocation5 + $0xe0] sm:$0xff]  ;;  %v3181_v11 = vld [vmem:[#allocation7 + $0xd0] sm:$0xff] }
 0xe5e   : > { %v2893_v41 = vpop.xlane.xlu1 %2892  ;;  %v6838_v25 = vpack.c.bf16 %v3182_v19, %v3181_v11 }
 0xe5f   : > { %v2897_v42 = vmul.f32 0.0078125, %v2893_v41  ;;  %v2904_v43 = vmul.f32 %v8299_v40, %v8299_v40 }
 0xe61   : > { %v8303_v44 = vsub.f32 %v2883_v16, %v2897_v42  ;;  %2910 = vadd.xlane.f32.xlu0 %v2904_v43  ;;  %v6810_v16 = vpack.c.bf16 %v3074_v15, %v3073_v61  ;;  %v5413_v43 = vld [vmem:[%s8731_s17] ss:$0 sm:$0xff]  ;;  %v3184_v61 = vld [vmem:[#allocation7 + $0xe8] sm:$0xff] }
 0xe62   : > { %v6842_v15 = vpack.c.bf16 %v3184_v61, %v3183_v1 }
 0xe63   : > { %v2905_v45 = vmul.f32 %v8303_v44, %v8303_v44  ;;  %6811 = vmatprep.subr.bf16.mxu0 %v6810_v16 }
 0xe64   : > { %6813 = vmatpush3.bf16.msra.mxu0 %v6810_v16  ;;  %v3185_v16 = vld [vmem:[#allocation7 + $0xf0] sm:$0xff] }
 0xe65   : > { %2912 = vadd.xlane.f32.xlu1 %v2905_v45  ;;  %6815 = vmatprep.subr.bf16.mxu0 %v6814_v13  ;;  %v6846_v12 = vpack.c.bf16 %v3186_v8, %v3185_v16 }
 0xe68   : > { %6817 = vmatpush3.bf16.msra.mxu0 %v6814_v13 }
 0xee6   : > { %v2907_v23 = vpop.xlane.xlu0 %2906 }
 0xee7   : > { %v2914_v20 = vmul.f32 0.0078125, %v2907_v23 }
 0xee9   : > { %v2918_v22 = vadd.f32 1e-05, %v2914_v20 }
 0xeea   : > { %v2909_v26 = vpop.xlane.xlu1 %2908 }
 0xeeb   : > { %7311 = vrsqrt.f32 %v2918_v22  ;;  %v2915_v32 = vmul.f32 0.0078125, %v2909_v26 }
 0xeed   : > { %v2919_v36 = vadd.f32 1e-05, %v2915_v32 }
 0xeee   : > { %v2911_v37 = vpop.xlane.xlu0 %2910 }
 0xeef   : > { %7313 = vrsqrt.f32 %v2919_v36  ;;  %v2916_v29 = vmul.f32 0.0078125, %v2911_v37 }
 0xef1   : > { %v2920_v27 = vadd.f32 1e-05, %v2916_v29 }
 0xef2   : > { %v2913_v39 = vpop.xlane.xlu1 %2912 }
 0xef3   : > { %7315 = vrsqrt.f32 %v2920_v27  ;;  %v2917_v31 = vmul.f32 0.0078125, %v2913_v39 }
 0xef5   : > { %v7312_v41 = vpop.eup %7311  ;;  %v2921_v42 = vadd.f32 1e-05, %v2917_v31 }
 0xef6   : > { %v2926_v45 = vmul.f32 %v7312_v41, %v8291_v35 }
 0xef7   : > { %7317 = vrsqrt.f32 %v2921_v42 }
 0xef8   : > { %v2936_v47 = vmul.f32 %v5413_v43, %v2926_v45 }
 0xef9   : > { %v7314_v48 = vpop.eup %7313 }
 0xefa   : > { %v2927_v49 = vmul.f32 %v7314_v48, %v8295_v38  ;;  %v8351_v30 = vadd.f32 %v5414_v46, %v2936_v47 }
 0xefc   : > { %6232 = vmatprep.mubr.f32.mxu1 %v8351_v30  ;;  %6270 = vmatprep.mubr.f32.mxu0 %v8351_v30  ;;  %v2937_v54 = vmul.f32 %v5413_v43, %v2927_v49 }
 0xefd   : > { %v7316_v55 = vpop.eup %7315 }
 0xefe   : > { %v8355_v35 = vadd.f32 %v5414_v46, %v2937_v54  ;;  %v2928_v57 = vmul.f32 %v7316_v55, %v8299_v40 }
 0xf00   : > { %6233 = vmatmul.mubr.f32.vlgmr.msra.gmra.mrb[36].mxu1 %v8355_v35  ;;  %6271 = vmatmul.mubr.f32.vlgmr.msra.gmra.mrb[28].mxu0 %v8355_v35  ;;  %v2938_v38 = vmul.f32 %v5413_v43, %v2928_v57 }
 0xf01   : > { %v7318_v62 = vpop.eup %7317  ;;  %6821 = vmatpush3.bf16.msra.mxu1 %v6818_v53 }
 0xf02   : > { %6823 = vmatprep.subr.bf16.mxu1 %v6822_v0  ;;  %v8360_v63 = vadd.f32 %v5414_v46, %v2938_v38  ;;  %v2929_v3 = vmul.f32 %v7318_v62, %v8303_v44  ;;  %v6834_v44 = vpack.c.bf16 %v3180_v10, %v3179_v28 }
 0xf04   : > { %6235 = vmatprep.mubr.f32.mxu1 %v8360_v63  ;;  %6273 = vmatprep.mubr.f32.mxu0 %v8360_v63  ;;  %v2939_v40 = vmul.f32 %v5413_v43, %v2929_v3 }
 0xf05   : > { %6825 = vmatpush3.bf16.msra.mxu1 %v6822_v0 }
 0xf06   : > { %6827 = vmatprep.subr.bf16.mxu1 %v6826_v2  ;;  %v8365_v60 = vadd.f32 %v5414_v46, %v2939_v40  ;;  %v5436_v46 = vld [vmem:[%s8722_s8 + $0x1] ss:$0 sm:$0xff] }
 0xf08   : > { %6236 = vmatmul.mubr.f32.gmra.mrb[38].mxu1 %v8365_v60  ;;  %6274 = vmatmul.mubr.f32.gmra.mrb[30].mxu0 %v8365_v60 }
 0xf09   : > { %6829 = vmatpush3.bf16.msra.mxu1 %v6826_v2  ;;  %6308 = vmatprep.mubr.f32.mxu1 %v8351_v30 }
 0xf0a   : > { %6831 = vmatprep.subr.bf16.mxu1 %v6830_v7 }
 0xf0d   : > { %6833 = vmatpush3.bf16.msra.mxu1 %v6830_v7 }
 0xf0e   : > { %6835 = vmatprep.subr.bf16.mxu1 %v6834_v44 }
 0xf11   : > { %6837 = vmatpush3.bf16.msra.mxu1 %v6834_v44 }
 0xf12   : > { %6839 = vmatprep.subr.bf16.mxu1 %v6838_v25 }
 0xf15   : > { %6841 = vmatpush3.bf16.msra.mxu1 %v6838_v25 }
 0xf16   : > { %6843 = vmatprep.subr.bf16.mxu1 %v6842_v15 }
 0xf19   : > { %6845 = vmatpush3.bf16.msra.mxu1 %v6842_v15 }
 0xf1a   : > { %6847 = vmatprep.subr.bf16.mxu1 %v6846_v12 }
 0xf1d   : > { %6849 = vmatpush3.bf16.msra.mxu1 %v6846_v12 }
 0xf20   : > { %6309 = vmatmul.mubr.f32.vlgmr.msra.gmra.mrb[40].mxu1 %v8355_v35 }
 0xf21   : > { %6311 = vmatprep.mubr.f32.mxu1 %v8360_v63 }
 0xf24   : > { %6312 = vmatmul.mubr.f32.gmra.mrb[42].mxu1 %v8365_v60 }
 0xfd3   : > { %v6234_v18 = vpop.f32.mrb[36].mxu1  ;;  %v6272_v13 = vpop.f32.mrb[28].mxu0 }
 0xfd4   : > { %v3157_v34 = vadd.f32 %v6272_v13, %v5434_v33  ;;  %v3041_v17 = vpop.f32.mrb[37].mxu1  ;;  %v3151_v53 = vpop.f32.mrb[29].mxu0  ;;  %v8407_v43 = vadd.f32 %v6234_v18, %v5432_v14 }
 0xfd5   : > { %v8379_v23 = vadd.f32 %v5432_v14, %v3041_v17  ;;  %v3152_v20 = vadd.f32 %v5434_v33, %v3151_v53 }
 0xfd7   : > { %6322 = vmatprep.mubr.msk.f32.mxu0 %vm1040_vm5, %v8379_v23  ;;  %v8383_v22 = vpack.i.bf16 %v3157_v34, %v3152_v20  ;;  %v6850_v26 = vpack.c.bf16 %v3157_v34, %v3152_v20 }
 0xfd9   : > { %7180 = vrot.lane.b32.xlu0 %v8383_v22, %s7597_s29  ;;  %6852 = vmatprep.subr.msk.bf16.mxu0 %vm7970_vm6, %v6850_v26 }
 0xfda   : > { %6855 = vmatpush3.bf16.xpose.msk.msra.mxu0 %vm7970_vm6, %v6850_v26 }
 0xfdb   : > { %v6237_v32 = vpop.f32.mrb[38].mxu1  ;;  %v6275_v36 = vpop.f32.mrb[30].mxu0 }
 0xfdc   : > { %v3167_v37 = vadd.f32 %v6275_v36, %v5434_v33  ;;  %v3051_v29 = vpop.f32.mrb[39].mxu1  ;;  %v3161_v27 = vpop.f32.mrb[31].mxu0  ;;  %v8417_v45 = vadd.f32 %v6237_v32, %v5432_v14 }
 0xfdd   : > { %v8391_v39 = vadd.f32 %v5432_v14, %v3051_v29  ;;  %v3162_v31 = vadd.f32 %v5434_v33, %v3161_v27 }
 0xfdf   : > { %3559 = vrot.lane.b32.xlu0 %v8391_v39, %s7597_s29  ;;  %v8395_v41 = vpack.i.bf16 %v3167_v37, %v3162_v31  ;;  %v6856_v42 = vpack.c.bf16 %v3167_v37, %v3162_v31 }
 0xfe1   : > { %7185 = vrot.lane.b32.xlu1 %v8395_v41, %s7597_s29  ;;  %6858 = vmatprep.subr.msk.bf16.mxu0 %vm7970_vm6, %v6856_v42 }
 0xfe2   : > { %6861 = vmatpush3.bf16.xpose.msk.msra.mxu0 %vm7970_vm6, %v6856_v42 }
 0xfe3   : > { %7190 = vrot.lane.b32.xlu0 %v8383_v22, %s7598_s7 }
 0xfe5   : > { %3555 = vrot.lane.b32.xlu1 %v8379_v23, %s7597_s29 }
 0xfe7   : > { %4031 = vrot.lane.b32.xlu0 %v8379_v23, %s7598_s7 }
 0xfe9   : > { %3557 = vrot.lane.b32.xlu1 %v8407_v43, %s7597_s29  ;;  %6323 = vmatmul.mubr.msk.f32.vlgmr.msra.gmra.mrb[32].mxu0 %vm1040_vm5, %v8407_v43 }
 0xfea   : > { %6325 = vmatprep.mubr.msk.f32.mxu0 %vm1040_vm5, %v8391_v39 }
 0xfeb   : > { %4035 = vrot.lane.b32.xlu0 %v8391_v39, %s7598_s7 }
 0xfed   : > { %3561 = vrot.lane.b32.xlu1 %v8417_v45, %s7597_s29  ;;  %6326 = vmatmul.mubr.msk.f32.gmra.mrb[34].mxu0 %vm1040_vm5, %v8417_v45 }
 0xff1   : > { %7195 = vrot.lane.b32.xlu1 %v8395_v41, %s7598_s7 }
 0xff3   : > { %v6310_v47 = vpop.f32.mrb[40].mxu1 }
 0xff4   : > { %v3267_v48 = vadd.f32 %v6310_v47, %v5436_v46  ;;  %v3261_v49 = vpop.f32.mrb[41].mxu1 }
 0xff5   : > { %v3262_v50 = vadd.f32 %v5436_v46, %v3261_v49  ;;  %4033 = vrot.lane.b32.xlu1 %v8407_v43, %s7598_s7 }
 0xff7   : > { %v6313_v52 = vpop.f32.mrb[42].mxu1  ;;  %v6862_v54 = vpack.c.bf16 %v3267_v48, %v3262_v50  ;;  %v8432_v55 = vpack.i.bf16 %v3267_v48, %v3262_v50 }
 0xff8   : > { %v3277_v0 = vadd.f32 %v6313_v52, %v5436_v46  ;;  %v3271_v57 = vpop.f32.mrb[43].mxu1 }
 0xff9   : > { %v3272_v58 = vadd.f32 %v5436_v46, %v3271_v57  ;;  %6863 = vmatprep.subr.bf16.mxu0 %v6862_v54  ;;  %4037 = vrot.lane.b32.xlu1 %v8417_v45, %s7598_s7 }
 0xffa   : > { %6865 = vmatpush3.bf16.msra.mxu0 %v6862_v54 }
 0xffb   : > { %v6866_v59 = vpack.c.bf16 %v3277_v0, %v3272_v58  ;;  %v8436_v38 = vpack.i.bf16 %v3277_v0, %v3272_v58 }
 0xffd   : > { %6867 = vmatprep.subr.bf16.mxu0 %v6866_v59 }
 0xffe   : > { %6869 = vmatpush3.bf16.msra.mxu0 %v6866_v59 }
0x104b   : > { %v7181_v62 = vpop.permute.xlu0 %7180 }
0x104c   : > { %v7183_v2 = vunpack.i.h.bf16 %v7181_v62  ;;  %v7182_v3 = vunpack.i.l.bf16 %v7181_v62 }
0x104e   : > { %v6870_v4 = vpack.c.bf16 %v7183_v2, %v7182_v3 }
0x1050   : > { %6872 = vmatprep.subr.msk.bf16.mxu1 %vm7970_vm6, %v6870_v4 }
0x1051   : > { %v3560_v5 = vpop.permute.xlu0 %3559  ;;  %6875 = vmatpush3.bf16.xpose.msk.msra.mxu1 %vm7970_vm6, %v6870_v4 }
0x1053   : > { %v7186_v40 = vpop.permute.xlu1 %7185 }
0x1054   : > { %v7188_v7 = vunpack.i.h.bf16 %v7186_v40  ;;  %v7187_v28 = vunpack.i.l.bf16 %v7186_v40 }
0x1055   : > { %v7191_v10 = vpop.permute.xlu0 %7190 }
0x1056   : > { %v6876_v44 = vpack.c.bf16 %v7188_v7, %v7187_v28  ;;  %v7193_v11 = vunpack.i.h.bf16 %v7191_v10  ;;  %v7192_v19 = vunpack.i.l.bf16 %v7191_v10 }
0x1057   : > { %v3556_v25 = vpop.permute.xlu1 %3555 }
0x1058   : > { %v6906_v1 = vpack.c.bf16 %v7193_v11, %v7192_v19  ;;  %6878 = vmatprep.subr.msk.bf16.mxu1 %vm7970_vm6, %v6876_v44  ;;  %6350 = vmatprep.mubr.msk.f32.mxu1 %vm1040_vm5, %v3556_v25 }
0x1059   : > { %6881 = vmatpush3.bf16.xpose.msk.msra.mxu1 %vm7970_vm6, %v6876_v44  ;;  %v4032_v8 = vpop.permute.xlu0 %4031 }
0x105a   : > { %6908 = vmatprep.subr.msk.bf16.mxu1 %vm7970_vm6, %v6906_v1 }
0x105b   : > { %v3558_v61 = vpop.permute.xlu1 %3557 }
0x105d   : > { %v4036_v13 = vpop.permute.xlu0 %4035 }
0x105f   : > { %v3562_v15 = vpop.permute.xlu1 %3561 }
0x1060   : > { %6351 = vmatmul.mubr.msk.f32.vlgmr.msra.gmra.mrb[44].mxu1 %vm1040_vm5, %v3558_v61 }
0x1061   : > { %6353 = vmatprep.mubr.msk.f32.mxu1 %vm1040_vm5, %v3560_v5  ;;  %6911 = vmatpush3.bf16.xpose.msk.msra.mxu1 %vm7970_vm6, %v6906_v1 }
0x1063   : > { %v7196_v16 = vpop.permute.xlu1 %7195 }
0x1064   : > { %v7198_v12 = vunpack.i.h.bf16 %v7196_v16  ;;  %v7197_v33 = vunpack.i.l.bf16 %v7196_v16  ;;  %6354 = vmatmul.mubr.msk.f32.gmra.mrb[46].mxu1 %vm1040_vm5, %v3562_v15 }
0x1065   : > { %6406 = vmatprep.mubr.msk.f32.mxu1 %vm1040_vm5, %v4032_v8 }
0x1066   : > { %v6912_v14 = vpack.c.bf16 %v7198_v12, %v7197_v33 }
0x1067   : > { %v4034_v18 = vpop.permute.xlu1 %4033 }
0x1068   : > { %6914 = vmatprep.subr.msk.bf16.mxu1 %vm7970_vm6, %v6912_v14 }
0x1069   : > { %6917 = vmatpush3.bf16.xpose.msk.msra.mxu1 %vm7970_vm6, %v6912_v14 }
0x106b   : > { %v4038_v34 = vpop.permute.xlu1 %4037 }
0x1070   : > { %6407 = vmatmul.mubr.msk.f32.vlgmr.msra.gmra.mrb[48].mxu1 %vm1040_vm5, %v4034_v18 }
0x1071   : > { %6409 = vmatprep.mubr.msk.f32.mxu1 %vm1040_vm5, %v4036_v13 }
0x1074   : > { %6410 = vmatmul.mubr.msk.f32.gmra.mrb[50].mxu1 %vm1040_vm5, %v4038_v34 }
0x10bc   : > { %v6324_v17 = vpop.f32.mrb[32].mxu0 }
0x10bd   : > { %v3407_v53 = vmul.f32 0.17677669, %v6324_v17  ;;  %v3387_v20 = vpop.f32.mrb[33].mxu0 }
0x10be   : > { %v3406_v26 = vmul.f32 0.17677669, %v3387_v20 }
0x10bf   : > { %v3411_v32 = vadd.f32 %v3407_v53, %v8009_v56 }
0x10c0   : > { %v6327_v36 = vpop.f32.mrb[34].mxu0  ;;  %v3410_v37 = vadd.f32 %v3406_v26, %v8009_v56 }
0x10c1   : > { %v3409_v29 = vmul.f32 0.17677669, %v6327_v36  ;;  %v3397_v27 = vpop.f32.mrb[35].mxu0  ;;  %v3417_v31 = vsel %vm1040_vm5, %v3411_v32, -inf }
0x10c2   : > { %v3408_v42 = vmul.f32 0.17677669, %v3397_v27  ;;  %3418 = vmax.xlane.f32.xlu1 %v3417_v31  ;;  %v3414_v46 = vsel %vm1040_vm5, %v3410_v37, -inf }
0x10c3   : > { %3415 = vmax.xlane.f32.xlu0 %v3414_v46  ;;  %v3413_v47 = vadd.f32 %v3409_v29, %v8009_v56 }
0x10c4   : > { %v3412_v49 = vadd.f32 %v3408_v42, %v8009_v56 }
0x10c5   : > { %v3423_v48 = vsel %vm1040_vm5, %v3413_v47, -inf }
0x10c6   : > { %v3420_v50 = vsel %vm1040_vm5, %v3412_v49, -inf }
0x10c7   : > { %3424 = vmax.xlane.f32.xlu0 %v3423_v48 }
0x10cb   : > { %3421 = vmax.xlane.f32.xlu0 %v3420_v50 }
0x1133   : > { %v6352_v52 = vpop.f32.mrb[44].mxu1 }
0x1134   : > { %v3673_v54 = vmul.f32 0.17677669, %v6352_v52  ;;  %v3653_v0 = vpop.f32.mrb[45].mxu1 }
0x1135   : > { %v3672_v57 = vmul.f32 0.17677669, %v3653_v0 }
0x1136   : > { %v3677_v58 = vadd.f32 %v3673_v54, %v8009_v56 }
0x1137   : > { %v6355_v59 = vpop.f32.mrb[46].mxu1  ;;  %v3676_v62 = vadd.f32 %v3672_v57, %v8009_v56 }
0x1138   : > { %v3675_v2 = vmul.f32 0.17677669, %v6355_v59  ;;  %v3663_v3 = vpop.f32.mrb[47].mxu1  ;;  %v3683_v4 = vsel %vm1040_vm5, %v3677_v58, -inf }
0x1139   : > { %v3674_v5 = vmul.f32 0.17677669, %v3663_v3  ;;  %3684 = vmax.xlane.f32.xlu1 %v3683_v4  ;;  %v3680_v40 = vsel %vm1040_vm5, %v3676_v62, -inf }
0x113a   : > { %3681 = vmax.xlane.f32.xlu0 %v3680_v40  ;;  %v3679_v7 = vadd.f32 %v3675_v2, %v8009_v56 }
0x113b   : > { %v3678_v28 = vadd.f32 %v3674_v5, %v8009_v56 }
0x113c   : > { %v3689_v10 = vsel %vm1040_vm5, %v3679_v7, -inf }
0x113d   : > { %3690 = vmax.xlane.f32.xlu1 %v3689_v10  ;;  %v3686_v44 = vsel %vm1040_vm5, %v3678_v28, -inf }
0x113e   : > { %3687 = vmax.xlane.f32.xlu0 %v3686_v44 }
0x1143   : > { %v8478_v11 = vpop.f32.mrb[48].mxu1 }
0x1144   : > { %v8480_v19 = vpop.f32.mrb[49].mxu1 }
0x1147   : > { %v8482_v25 = vpop.f32.mrb[50].mxu1 }
0x1148   : > { %v8484_v1 = vpop.f32.mrb[51].mxu1 }
0x114f   : > { %v3419_v61 = vpop.xlane.xlu1 %3418 }
0x1150   : > { %v3427_v15 = vsub.f32 %v3411_v32, %v3419_v61  ;;  %v3416_v16 = vpop.xlane.xlu0 %3415 }
0x1151   : > { %v3426_v8 = vsub.f32 %v3410_v37, %v3416_v16 }
0x1152   : > { %v3432_v12 = vmul.f32 1.442695, %v3427_v15 }
0x1153   : > { %v3430_v33 = vmul.f32 1.442695, %v3426_v8 }
0x1154   : > { %7319 = vpow2.f32 %v3432_v12  ;;  %v3425_v14 = vpop.xlane.xlu0 %3424 }
0x1155   : > { %7321 = vpow2.f32 %v3430_v33  ;;  %v3429_v18 = vsub.f32 %v3413_v47, %v3425_v14 }
0x1157   : > { %v3436_v13 = vmul.f32 1.442695, %v3429_v18  ;;  %v4150_v18 = vmul.f32 0.17677669, %v8484_v1 }
0x1158   : > { %v3422_v34 = vpop.xlane.xlu0 %3421 }
0x1159   : > { %7323 = vpow2.f32 %v3436_v13  ;;  %v3428_v17 = vsub.f32 %v3412_v49, %v3422_v34  ;;  %v4151_v13 = vmul.f32 0.17677669, %v8482_v25  ;;  %v8534_v34 = vadd.f32 %v4150_v18, %v8009_v56 }
0x115b   : > { %v3434_v53 = vmul.f32 1.442695, %v3428_v17  ;;  %v4162_v1 = vsel %vm1040_vm5, %v8534_v34, -inf }
0x115d   : > { %7325 = vpow2.f32 %v3434_v53 }
0x115e   : > { %v7320_v20 = vpop.eup %7319 }
0x115f   : > { %v7322_v26 = vpop.eup %7321  ;;  %v3441_v36 = vsel %vm1040_vm5, %v7320_v20, 0.0 }
0x1160   : > { %3442 = vadd.xlane.f32.xlu1 %v3441_v36  ;;  %v3438_v32 = vsel %vm1040_vm5, %v7322_v26, 0.0 }
0x1161   : > { %3439 = vadd.xlane.f32.xlu0 %v3438_v32 }
0x1163   : > { %v7324_v37 = vpop.eup %7323 }
0x1164   : > { %v3447_v29 = vsel %vm1040_vm5, %v7324_v37, 0.0 }
0x1165   : > { %3448 = vadd.xlane.f32.xlu1 %v3447_v29 }
0x1167   : > { %v7326_v27 = vpop.eup %7325 }
0x1168   : > { %v3444_v31 = vsel %vm1040_vm5, %v7326_v27, 0.0 }
0x1169   : > { %3445 = vadd.xlane.f32.xlu0 %v3444_v31 }
0x11c6   : > { %v3685_v42 = vpop.xlane.xlu1 %3684 }
0x11c7   : > { %v3693_v46 = vsub.f32 %v3677_v58, %v3685_v42  ;;  %v3682_v47 = vpop.xlane.xlu0 %3681 }
0x11c8   : > { %v3692_v48 = vsub.f32 %v3676_v62, %v3682_v47 }
0x11c9   : > { %v3698_v49 = vmul.f32 1.442695, %v3693_v46 }
0x11ca   : > { %v3696_v50 = vmul.f32 1.442695, %v3692_v48  ;;  %v3691_v52 = vpop.xlane.xlu1 %3690 }
0x11cb   : > { %7327 = vpow2.f32 %v3698_v49  ;;  %v3695_v54 = vsub.f32 %v3679_v7, %v3691_v52  ;;  %v3688_v0 = vpop.xlane.xlu0 %3687 }
0x11cc   : > { %7329 = vpow2.f32 %v3696_v50  ;;  %v3694_v57 = vsub.f32 %v3678_v28, %v3688_v0 }
0x11cd   : > { %v3702_v59 = vmul.f32 1.442695, %v3695_v54 }
0x11ce   : > { %v3700_v2 = vmul.f32 1.442695, %v3694_v57 }
0x11cf   : > { %7331 = vpow2.f32 %v3702_v59 }
0x11d0   : > { %7333 = vpow2.f32 %v3700_v2 }
0x11d5   : > { %v8490_v3 = vpop.eup %7327 }
0x11d6   : > { %v8492_v4 = vpop.eup %7329  ;;  %v3707_v58 = vsel %vm1040_vm5, %v8490_v3, 0.0 }
0x11d7   : > { %3708 = vadd.xlane.f32.xlu1 %v3707_v58  ;;  %v3704_v62 = vsel %vm1040_vm5, %v8492_v4, 0.0 }
0x11d8   : > { %3705 = vadd.xlane.f32.xlu0 %v3704_v62 }
0x11d9   : > { %v8498_v5 = vpop.eup %7331 }
0x11da   : > { %v8500_v40 = vpop.eup %7333  ;;  %v3713_v7 = vsel %vm1040_vm5, %v8498_v5, 0.0 }
0x11db   : > { %3714 = vadd.xlane.f32.xlu1 %v3713_v7  ;;  %v3710_v28 = vsel %vm1040_vm5, %v8500_v40, 0.0 }
0x11dc   : > { %3711 = vadd.xlane.f32.xlu0 %v3710_v28 }
0x11ec   : > { %7205 = vrot.lane.b32.xlu1 %v8436_v38, %s7597_s29 }
0x11ed   : > { %v3443_v10 = vpop.xlane.xlu1 %3442 }
0x11ee   : > { %7335 = vrcp.f32 %v3443_v10  ;;  %v3440_v44 = vpop.xlane.xlu0 %3439 }
0x11ef   : > { %7337 = vrcp.f32 %v3440_v44 }
0x11f0   : > { %7210 = vrot.lane.b32.xlu1 %v8383_v22, %s7599_s21 }
0x11f2   : > { %7200 = vrot.lane.b32.xlu0 %v8432_v55, %s7597_s29  ;;  %v3449_v61 = vpop.xlane.xlu1 %3448 }
0x11f3   : > { %7339 = vrcp.f32 %v3449_v61 }
0x11f4   : > { %7215 = vrot.lane.b32.xlu1 %v8395_v41, %s7599_s21 }
0x11f6   : > { %4410 = vrot.lane.b32.xlu0 %v8379_v23, %s7599_s21  ;;  %v3446_v15 = vpop.xlane.xlu0 %3445 }
0x11f7   : > { %7341 = vrcp.f32 %v3446_v15 }
0x11f8   : > { %v7336_v16 = vpop.eup %7335  ;;  %4412 = vrot.lane.b32.xlu1 %v8407_v43, %s7599_s21  ;;  %v4148_v43 = vmul.f32 0.17677669, %v8480_v19  ;;  %v8542_v19 = vadd.f32 %v4151_v13, %v8009_v56 }
0x11f9   : > { %v7338_v8 = vpop.eup %7337  ;;  %v3455_v12 = vmul.f32 %v7336_v16, %v7320_v20 }
0x11fa   : > { %4414 = vrot.lane.b32.xlu0 %v8391_v39, %s7599_s21  ;;  %v3454_v22 = vmul.f32 %v7338_v8, %v7322_v26  ;;  %v8528_v39 = vadd.f32 %v4148_v43, %v8009_v56  ;;  %v4165_v25 = vsel %vm1040_vm5, %v8542_v19, -inf }
0x11fc   : > { %4416 = vrot.lane.b32.xlu1 %v8417_v45, %s7599_s21  ;;  %6336 = vmatprep.mubr.msk.f32.mxu0 %vm1040_vm5, %v3454_v22  ;;  %v4149_v45 = vmul.f32 0.17677669, %v8478_v11  ;;  %v4156_v17 = vsel %vm1040_vm5, %v8528_v39, -inf }
0x11fd   : > { %6337 = vmatmul.mubr.msk.f32.vlgmr.msra.gmra.mrb[36].mxu0 %vm1040_vm5, %v3455_v12  ;;  %v7340_v23 = vpop.eup %7339 }
0x11fe   : > { %v3457_v14 = vmul.f32 %v7340_v23, %v7324_v37  ;;  %v8539_v53 = vadd.f32 %v4149_v45, %v8009_v56 }
0x1200   : > { %v4159_v11 = vsel %vm1040_vm5, %v8539_v53, -inf }
0x1201   : > { %v7342_v41 = vpop.eup %7341 }
0x1202   : > { %v3456_v33 = vmul.f32 %v7342_v41, %v7326_v27 }
0x1204   : > { %6339 = vmatprep.mubr.msk.f32.mxu0 %vm1040_vm5, %v3456_v33 }
0x1205   : > { %6340 = vmatmul.mubr.msk.f32.gmra.mrb[38].mxu0 %vm1040_vm5, %v3457_v14 }
0x1219   : > { %4157 = vmax.xlane.f32.xlu0 %v4156_v17 }
0x121d   : > { %4163 = vmax.xlane.f32.xlu0 %v4162_v1 }
0x1220   : > { %4160 = vmax.xlane.f32.xlu1 %v4159_v11 }
0x1221   : > { %4166 = vmax.xlane.f32.xlu0 %v4165_v25  ;;  %v3285_v25 = vld [vmem:[#allocation9 + $0xa0] sm:$0xff] }
0x1264   : > { %v3709_v20 = vpop.xlane.xlu1 %3708 }
0x1265   : > { %v3706_v26 = vpop.xlane.xlu0 %3705 }
0x1266   : > { %7343 = vrcp.f32 %v3706_v26 }
0x1267   : > { %7345 = vrcp.f32 %v3709_v20  ;;  %v3286_v20 = vld [vmem:[#allocation9 + $0xa8] sm:$0xff] }
0x1268   : > { %v3715_v36 = vpop.xlane.xlu1 %3714  ;;  %v6890_v26 = vpack.c.bf16 %v3286_v20, %v3285_v25 }
0x1269   : > { %v3712_v32 = vpop.xlane.xlu0 %3711 }
0x126a   : > { %7347 = vrcp.f32 %v3712_v32  ;;  %v3288_v32 = vld [vmem:[#allocation9 + $0xb8] sm:$0xff] }
0x126b   : > { %7349 = vrcp.f32 %v3715_v36  ;;  %v3287_v36 = vld [vmem:[#allocation9 + $0xb0] sm:$0xff] }
0x126c   : > { %v7206_v37 = vpop.permute.xlu1 %7205 }
0x126d   : > { %v7201_v29 = vpop.permute.xlu0 %7200  ;;  %v7208_v27 = vunpack.i.h.bf16 %v7206_v37  ;;  %v7207_v31 = vunpack.i.l.bf16 %v7206_v37  ;;  %v6894_v37 = vpack.c.bf16 %v3288_v32, %v3287_v36 }
0x126e   : > { %v7203_v42 = vunpack.i.h.bf16 %v7201_v29  ;;  %v7202_v46 = vunpack.i.l.bf16 %v7201_v29  ;;  %v3281_v29 = vld [vmem:[#allocation9 + $0x80] sm:$0xff] }
0x126f   : > { %v6886_v57 = vpack.c.bf16 %v7208_v27, %v7207_v31  ;;  %v3282_v27 = vld [vmem:[#allocation9 + $0x88] sm:$0xff] }
0x1270   : > { %v7344_v47 = vpop.eup %7343  ;;  %v6882_v48 = vpack.c.bf16 %v7203_v42, %v7202_v46  ;;  %v7211_v49 = vpop.permute.xlu1 %7210  ;;  %v6898_v31 = vpack.c.bf16 %v3282_v27, %v3281_v29  ;;  %v3290_v29 = vld [vmem:[#allocation9 + $0xc8] sm:$0xff]  ;;  %v3291_v27 = vld [vmem:[#allocation9 + $0xd0] sm:$0xff] }
0x1271   : > { %v7213_v50 = vunpack.i.h.bf16 %v7211_v49  ;;  %v7212_v52 = vunpack.i.l.bf16 %v7211_v49  ;;  %v4411_v54 = vpop.permute.xlu0 %4410  ;;  %v3720_v0 = vmul.f32 %v7344_v47, %v8492_v4  ;;  %v7346_v58 = vpop.eup %7345 }
0x1272   : > { %6883 = vmatprep.subr.bf16.mxu0 %v6882_v48  ;;  %6448 = vmatprep.mubr.msk.f32.mxu1 %vm1040_vm5, %v4411_v54  ;;  %v3721_v10 = vmul.f32 %v7346_v58, %v8490_v3  ;;  %v3283_v54 = vld [vmem:[#allocation9 + $0x90] sm:$0xff] }
0x1273   : > { %v6934_v59 = vpack.c.bf16 %v7213_v50, %v7212_v52  ;;  %6885 = vmatpush3.bf16.msra.mxu0 %v6882_v48  ;;  %6364 = vmatprep.mubr.msk.f32.mxu0 %vm1040_vm5, %v3720_v0  ;;  %v3284_v0 = vld [vmem:[#allocation9 + $0x98] sm:$0xff] }
0x1274   : > { %v7216_v2 = vpop.permute.xlu1 %7215  ;;  %6887 = vmatprep.subr.bf16.mxu0 %v6886_v57  ;;  %v7348_v28 = vpop.eup %7347  ;;  %v6902_v58 = vpack.c.bf16 %v3284_v0, %v3283_v54 }
0x1275   : > { %v7218_v62 = vunpack.i.h.bf16 %v7216_v2  ;;  %v7217_v7 = vunpack.i.l.bf16 %v7216_v2  ;;  %6936 = vmatprep.subr.msk.bf16.mxu1 %vm7970_vm6, %v6934_v59  ;;  %v7350_v44 = vpop.eup %7349  ;;  %v3722_v61 = vmul.f32 %v7348_v28, %v8500_v40  ;;  %v4415_v8 = vpop.permute.xlu0 %4414 }
0x1276   : > { %6939 = vmatpush3.bf16.xpose.msk.msra.mxu1 %vm7970_vm6, %v6934_v59  ;;  %v3723_v15 = vmul.f32 %v7350_v44, %v8498_v5 }
0x1277   : > { %v6940_v4 = vpack.c.bf16 %v7218_v62, %v7217_v7  ;;  %6889 = vmatpush3.bf16.msra.mxu0 %v6886_v57 }
0x1278   : > { %v4413_v16 = vpop.permute.xlu1 %4412  ;;  %6891 = vmatprep.subr.bf16.mxu0 %v6890_v26 }
0x1279   : > { %6942 = vmatprep.subr.msk.bf16.mxu1 %vm7970_vm6, %v6940_v4 }
0x127a   : > { %6365 = vmatmul.mubr.msk.f32.vlgmr.msra.gmra.mrb[40].mxu0 %vm1040_vm5, %v3721_v10 }
0x127b   : > { %6367 = vmatprep.mubr.msk.f32.mxu0 %vm1040_vm5, %v3722_v61  ;;  %6893 = vmatpush3.bf16.msra.mxu0 %v6890_v26 }
0x127c   : > { %v4417_v3 = vpop.permute.xlu1 %4416  ;;  %6895 = vmatprep.subr.bf16.mxu0 %v6894_v37 }
0x127e   : > { %6368 = vmatmul.mubr.msk.f32.gmra.mrb[42].mxu0 %vm1040_vm5, %v3723_v15  ;;  %6945 = vmatpush3.bf16.xpose.msk.msra.mxu1 %vm7970_vm6, %v6940_v4 }
0x127f   : > { %6897 = vmatpush3.bf16.msra.mxu0 %v6894_v37  ;;  %v3289_v37 = vld [vmem:[#allocation9 + $0xc0] sm:$0xff] }
0x1280   : > { %6899 = vmatprep.subr.bf16.mxu0 %v6898_v31 }
0x1285   : > { %6449 = vmatmul.mubr.msk.f32.vlgmr.msra.gmra.mrb[52].mxu1 %vm1040_vm5, %v4413_v16 }
0x1286   : > { %6451 = vmatprep.mubr.msk.f32.mxu1 %vm1040_vm5, %v4415_v8 }
0x1289   : > { %6452 = vmatmul.mubr.msk.f32.gmra.mrb[54].mxu1 %vm1040_vm5, %v4417_v3 }
0x128a   : > { %4983 = vmatprep.mubr.f32.mxu1 %v7596_v21 }
0x12a6   : > { %v4158_v40 = vpop.xlane.xlu0 %4157 }
0x12a7   : > { %v4168_v22 = vsub.f32 %v8528_v39, %v4158_v40 }
0x12a9   : > { %v4172_v5 = vmul.f32 1.442695, %v4168_v22 }
0x12aa   : > { %v4164_v12 = vpop.xlane.xlu0 %4163 }
0x12ab   : > { %7351 = vpow2.f32 %v4172_v5  ;;  %v4170_v9 = vsub.f32 %v8534_v34, %v4164_v12 }
0x12ad   : > { %v4176_v23 = vmul.f32 1.442695, %v4170_v9  ;;  %v4161_v41 = vpop.xlane.xlu1 %4160 }
0x12ae   : > { %v4169_v33 = vsub.f32 %v8539_v53, %v4161_v41  ;;  %v4167_v14 = vpop.xlane.xlu0 %4166 }
0x12af   : > { %7353 = vpow2.f32 %v4176_v23  ;;  %v4171_v43 = vsub.f32 %v8542_v19, %v4167_v14 }
0x12b0   : > { %v4174_v18 = vmul.f32 1.442695, %v4169_v33 }
0x12b1   : > { %v4178_v45 = vmul.f32 1.442695, %v4171_v43 }
0x12b2   : > { %7355 = vpow2.f32 %v4174_v18 }
0x12b3   : > { %7357 = vpow2.f32 %v4178_v45 }
0x12b5   : > { %v8575_v13 = vpop.eup %7351 }
0x12b6   : > { %v4180_v39 = vsel %vm1040_vm5, %v8575_v13, 0.0 }
0x12b7   : > { %4181 = vadd.xlane.f32.xlu0 %v4180_v39 }
0x12b9   : > { %v8579_v17 = vpop.eup %7353 }
0x12ba   : > { %v4186_v34 = vsel %vm1040_vm5, %v8579_v17, 0.0 }
0x12bb   : > { %4187 = vadd.xlane.f32.xlu0 %v4186_v34 }
0x12bc   : > { %v8583_v53 = vpop.eup %7355 }
0x12bd   : > { %v4183_v19 = vsel %vm1040_vm5, %v8583_v53, 0.0  ;;  %v8587_v1 = vpop.eup %7357 }
0x12be   : > { %4184 = vadd.xlane.f32.xlu1 %v4183_v19  ;;  %v4189_v11 = vsel %vm1040_vm5, %v8587_v1, 0.0 }
0x12c2   : > { %4190 = vadd.xlane.f32.xlu1 %v4189_v11 }
0x12d0   : > { %v6338_v42 = vpop.f32.mrb[36].mxu0 }
0x12d1   : > { %v3536_v46 = vpop.f32.mrb[37].mxu0  ;;  %7220 = vrot.lane.b32.xlu0 %v8432_v55, %s7598_s7 }
0x12d3   : > { %7225 = vrot.lane.b32.xlu1 %v8436_v38, %s7598_s7 }
0x12d8   : > { %v6341_v47 = vpop.f32.mrb[38].mxu0 }
0x12d9   : > { %v3546_v48 = vpop.f32.mrb[39].mxu0 }
0x1344   : > { %v4182_v49 = vpop.xlane.xlu0 %4181 }
0x1345   : > { %7359 = vrcp.f32 %v4182_v49 }
0x1348   : > { %v4188_v50 = vpop.xlane.xlu0 %4187 }
0x134b   : > { %v4185_v52 = vpop.xlane.xlu1 %4184 }
0x134c   : > { %v7221_v57 = vpop.permute.xlu0 %7220  ;;  %7361 = vrcp.f32 %v4185_v52 }
0x134d   : > { %v6366_v59 = vpop.f32.mrb[40].mxu0  ;;  %v7223_v7 = vunpack.i.h.bf16 %v7221_v57  ;;  %v7222_v28 = vunpack.i.l.bf16 %v7221_v57  ;;  %7363 = vrcp.f32 %v4188_v50 }
0x134e   : > { %v3818_v2 = vpop.f32.mrb[41].mxu0 }
0x134f   : > { %v4191_v62 = vpop.xlane.xlu1 %4190  ;;  %6378 = vmatprep.mubr.msk.f32.mxu0 %vm1040_vm5, %v3818_v2  ;;  %v6918_v61 = vpack.c.bf16 %v7223_v7, %v7222_v28  ;;  %v7360_v3 = vpop.eup %7359 }
0x1350   : > { %6379 = vmatmul.mubr.msk.f32.vlgmr.msra.gmra.mrb[44].mxu0 %vm1040_vm5, %v6366_v59  ;;  %7365 = vrcp.f32 %v4191_v62  ;;  %v4196_v41 = vmul.f32 %v7360_v3, %v8575_v13 }
0x1351   : > { %6901 = vmatpush3.bf16.msra.mxu0 %v6898_v31  ;;  %v6369_v4 = vpop.f32.mrb[42].mxu0  ;;  %v3292_v31 = vld [vmem:[#allocation9 + $0xd8] sm:$0xff] }
0x1352   : > { %v3828_v10 = vpop.f32.mrb[43].mxu0  ;;  %6903 = vmatprep.subr.bf16.mxu0 %v6902_v58 }
0x1353   : > { %v7226_v44 = vpop.permute.xlu1 %7225  ;;  %6381 = vmatprep.mubr.msk.f32.mxu0 %vm1040_vm5, %v3828_v10 }
0x1354   : > { %v7228_v15 = vunpack.i.h.bf16 %v7226_v44  ;;  %v7227_v16 = vunpack.i.l.bf16 %v7226_v44  ;;  %6382 = vmatmul.mubr.msk.f32.gmra.mrb[46].mxu0 %vm1040_vm5, %v6369_v4 }
0x1355   : > { %6905 = vmatpush3.bf16.msra.mxu0 %v6902_v58  ;;  %6392 = vmatprep.mubr.msk.f32.mxu0 %vm1040_vm5, %v3536_v46 }
0x1356   : > { %v6922_v8 = vpack.c.bf16 %v7228_v15, %v7227_v16  ;;  %6919 = vmatprep.subr.bf16.mxu0 %v6918_v61  ;;  %v7362_v9 = vpop.eup %7361 }
0x1357   : > { %v7364_v33 = vpop.eup %7363  ;;  %v4197_v34 = vmul.f32 %v7362_v9, %v8583_v53 }
0x1358   : > { %6393 = vmatmul.mubr.msk.f32.vlgmr.msra.gmra.mrb[44].mxu0 %vm1040_vm5, %v6338_v42  ;;  %v6450_v40 = vpop.f32.mrb[52].mxu1  ;;  %v4198_v20 = vmul.f32 %v7364_v33, %v8579_v17  ;;  %v6926_v17 = vpack.c.bf16 %v3290_v29, %v3289_v37 }
0x1359   : > { %6921 = vmatpush3.bf16.msra.mxu0 %v6918_v61  ;;  %v4528_v22 = vmul.f32 0.17677669, %v6450_v40  ;;  %6395 = vmatprep.mubr.msk.f32.mxu0 %vm1040_vm5, %v3546_v48  ;;  %v4508_v5 = vpop.f32.mrb[53].mxu1 }
0x135a   : > { %6923 = vmatprep.subr.bf16.mxu0 %v6922_v8  ;;  %v4527_v12 = vmul.f32 0.17677669, %v4508_v5  ;;  %v7366_v13 = vpop.eup %7365 }
0x135b   : > { %v4532_v23 = vadd.f32 %v4528_v22, %v8009_v56  ;;  %v4199_v32 = vmul.f32 %v7366_v13, %v8587_v1  ;;  %v3296_v13 = vld [vmem:[#allocation9 + $0xf8] sm:$0xff] }
0x135c   : > { %v4531_v14 = vadd.f32 %v4527_v12, %v8009_v56  ;;  %6396 = vmatmul.mubr.msk.f32.gmra.mrb[46].mxu0 %vm1040_vm5, %v6341_v47  ;;  %v6453_v43 = vpop.f32.mrb[54].mxu1 }
0x135d   : > { %6925 = vmatpush3.bf16.msra.mxu0 %v6922_v8  ;;  %v4530_v18 = vmul.f32 0.17677669, %v6453_v43  ;;  %6420 = vmatprep.mubr.msk.f32.mxu0 %vm1040_vm5, %v4196_v41  ;;  %v4518_v45 = vpop.f32.mrb[55].mxu1  ;;  %v4538_v39 = vsel %vm1040_vm5, %v4532_v23, -inf }
0x135e   : > { %v4529_v19 = vmul.f32 0.17677669, %v4518_v45  ;;  %4539 = vmax.xlane.f32.xlu0 %v4538_v39  ;;  %v4535_v11 = vsel %vm1040_vm5, %v4531_v14, -inf  ;;  %6927 = vmatprep.subr.bf16.mxu0 %v6926_v17  ;;  %v3294_v45 = vld [vmem:[#allocation9 + $0xe8] sm:$0xff] }
0x135f   : > { %v4534_v25 = vadd.f32 %v4530_v18, %v8009_v56  ;;  %4536 = vmax.xlane.f32.xlu1 %v4535_v11  ;;  %v3293_v18 = vld [vmem:[#allocation9 + $0xe0] sm:$0xff]  ;;  %v3295_v11 = vld [vmem:[#allocation9 + $0xf0] sm:$0xff] }
0x1360   : > { %v4533_v26 = vadd.f32 %v4529_v19, %v8009_v56  ;;  %6421 = vmatmul.mubr.msk.f32.vlgmr.msra.gmra.mrb[48].mxu0 %vm1040_vm5, %v4197_v34  ;;  %v6930_v56 = vpack.c.bf16 %v3292_v31, %v3291_v27  ;;  %v6954_v34 = vpack.c.bf16 %v3294_v45, %v3293_v18  ;;  %v5502_v31 = vld [vmem:[%s8724_s10 + $0x1] ss:$0 sm:$0xff] }
0x1361   : > { %6423 = vmatprep.mubr.msk.f32.mxu0 %vm1040_vm5, %v4198_v20  ;;  %v4544_v36 = vsel %vm1040_vm5, %v4534_v25, -inf  ;;  %6929 = vmatpush3.bf16.msra.mxu0 %v6926_v17 }
0x1362   : > { %v4541_v53 = vsel %vm1040_vm5, %v4533_v26, -inf  ;;  %6931 = vmatprep.subr.bf16.mxu0 %v6930_v56 }
0x1363   : > { %4542 = vmax.xlane.f32.xlu0 %v4541_v53  ;;  %4545 = vmax.xlane.f32.xlu1 %v4544_v36 }
0x1364   : > { %6424 = vmatmul.mubr.msk.f32.gmra.mrb[50].mxu0 %vm1040_vm5, %v4199_v32 }
0x1365   : > { %6933 = vmatpush3.bf16.msra.mxu0 %v6930_v56 }
0x13eb   : > { %v4540_v42 = vpop.xlane.xlu0 %4539 }
0x13ec   : > { %v4548_v46 = vsub.f32 %v4532_v23, %v4540_v42  ;;  %v4537_v47 = vpop.xlane.xlu1 %4536 }
0x13ed   : > { %v4547_v48 = vsub.f32 %v4531_v14, %v4537_v47 }
0x13ee   : > { %v4553_v49 = vmul.f32 1.442695, %v4548_v46 }
0x13ef   : > { %v4551_v1 = vmul.f32 1.442695, %v4547_v48 }
0x13f0   : > { %7367 = vpow2.f32 %v4553_v49  ;;  %v4546_v50 = vpop.xlane.xlu1 %4545  ;;  %v4543_v52 = vpop.xlane.xlu0 %4542 }
0x13f1   : > { %7369 = vpow2.f32 %v4551_v1  ;;  %v4550_v54 = vsub.f32 %v4534_v25, %v4546_v50  ;;  %v4549_v0 = vsub.f32 %v4533_v26, %v4543_v52  ;;  %v6958_v26 = vpack.c.bf16 %v3296_v13, %v3295_v11  ;;  %v4889_v11 = vld [vmem:[#allocation10 + $0x178] sm:$0xff] }
0x13f3   : > { %v4557_v57 = vmul.f32 1.442695, %v4550_v54  ;;  %v4555_v59 = vmul.f32 1.442695, %v4549_v0 }
0x13f5   : > { %7371 = vpow2.f32 %v4557_v57 }
0x13f6   : > { %7373 = vpow2.f32 %v4555_v59  ;;  %v4875_v59 = vld [vmem:[#allocation10 + $0x108] sm:$0xff] }
0x13fa   : > { %v7368_v2 = vpop.eup %7367 }
0x13fb   : > { %v7370_v58 = vpop.eup %7369  ;;  %v4562_v62 = vsel %vm1040_vm5, %v7368_v2, 0.0 }
0x13fc   : > { %4563 = vadd.xlane.f32.xlu1 %v4562_v62  ;;  %v4559_v7 = vsel %vm1040_vm5, %v7370_v58, 0.0 }
0x13fd   : > { %4560 = vadd.xlane.f32.xlu0 %v4559_v7  ;;  %v4876_v7 = vld [vmem:[#allocation10 + $0x110] sm:$0xff] }
0x13ff   : > { %v7372_v28 = vpop.eup %7371 }
0x1400   : > { %v7374_v4 = vpop.eup %7373  ;;  %v4568_v10 = vsel %vm1040_vm5, %v7372_v28, 0.0 }
0x1401   : > { %4569 = vadd.xlane.f32.xlu1 %v4568_v10  ;;  %v4565_v44 = vsel %vm1040_vm5, %v7374_v4, 0.0  ;;  %v4878_v10 = vld [vmem:[#allocation10 + $0x120] sm:$0xff] }
0x1402   : > { %4566 = vadd.xlane.f32.xlu0 %v4565_v44  ;;  %v4880_v44 = vld [vmem:[#allocation10 + $0x130] sm:$0xff] }
0x1412   : > { %7235 = vrot.lane.b32.xlu1 %v8436_v38, %s7599_s21 }
0x1418   : > { %7230 = vrot.lane.b32.xlu0 %v8432_v55, %s7599_s21  ;;  %s8773_s21 = sld [smem:[#allocation24_spill]] }
0x141e   : > { %s633_s20 = scalar_lea.vmem %s8773_s21, %s5516_s2 }
0x1433   : > { %v6422_v61 = vpop.f32.mrb[48].mxu0 }
0x1434   : > { %v4290_v15 = vpop.f32.mrb[49].mxu0 }
0x1435   : > { %6434 = vmatprep.mubr.msk.f32.mxu0 %vm1040_vm5, %v4290_v15  ;;  %v4885_v15 = vld [vmem:[#allocation10 + $0x158] sm:$0xff] }
0x1436   : > { %6435 = vmatmul.mubr.msk.f32.vlgmr.msra.gmra.mrb[44].mxu0 %vm1040_vm5, %v6422_v61  ;;  %v4883_v61 = vld [vmem:[#allocation10 + $0x148] sm:$0xff] }
0x1437   : > { %v6425_v16 = vpop.f32.mrb[50].mxu0 }
0x1438   : > { %v4300_v8 = vpop.f32.mrb[51].mxu0 }
0x1439   : > { %6437 = vmatprep.mubr.msk.f32.mxu0 %vm1040_vm5, %v4300_v8  ;;  %v4884_v8 = vld [vmem:[#allocation10 + $0x150] sm:$0xff] }
0x143a   : > { %6438 = vmatmul.mubr.msk.f32.gmra.mrb[46].mxu0 %vm1040_vm5, %v6425_v16  ;;  %v4882_v16 = vld [vmem:[#allocation10 + $0x140] sm:$0xff] }
0x1489   : > { %v4564_v3 = vpop.xlane.xlu1 %4563 }
0x148a   : > { %v4561_v40 = vpop.xlane.xlu0 %4560 }
0x148b   : > { %7375 = vrcp.f32 %v4561_v40 }
0x148c   : > { %7377 = vrcp.f32 %v4564_v3  ;;  %v6972_v3 = vpack.c.bf16 %v4884_v8, %v4882_v16  ;;  %v5037_v16 = vld [vmem:[#allocation12 + $0x1a0] sm:$0xff]  ;;  %v5038_v8 = vld [vmem:[#allocation12 + $0x1a8] sm:$0xff] }
0x148e   : > { %v4570_v22 = vpop.xlane.xlu1 %4569 }
0x148f   : > { %v4567_v38 = vpop.xlane.xlu0 %4566 }
0x1490   : > { %7379 = vrcp.f32 %v4567_v38 }
0x1491   : > { %7381 = vrcp.f32 %v4570_v22 }
0x1492   : > { %v7236_v55 = vpop.permute.xlu1 %7235 }
0x1493   : > { %v7231_v5 = vpop.permute.xlu0 %7230  ;;  %v7238_v12 = vunpack.i.h.bf16 %v7236_v55  ;;  %v7237_v9 = vunpack.i.l.bf16 %v7236_v55 }
0x1494   : > { %v7233_v23 = vunpack.i.h.bf16 %v7231_v5  ;;  %v7232_v41 = vunpack.i.l.bf16 %v7231_v5 }
0x1495   : > { %v7376_v33 = vpop.eup %7375  ;;  %v6950_v39 = vpack.c.bf16 %v7238_v12, %v7237_v9 }
0x1496   : > { %v6946_v14 = vpack.c.bf16 %v7233_v23, %v7232_v41  ;;  %v4575_v43 = vmul.f32 %v7376_v33, %v7370_v58  ;;  %v7378_v19 = vpop.eup %7377  ;;  %v4874_v58 = vld [vmem:[#allocation10 + $0x100] sm:$0xff] }
0x1497   : > { %v4576_v20 = vmul.f32 %v7378_v19, %v7368_v2  ;;  %v4877_v2 = vld [vmem:[#allocation10 + $0x118] sm:$0xff]  ;;  %v4887_v19 = vld [vmem:[#allocation10 + $0x168] sm:$0xff] }
0x1498   : > { %6947 = vmatprep.subr.bf16.mxu0 %v6946_v14  ;;  %6462 = vmatprep.mubr.msk.f32.mxu0 %vm1040_vm5, %v4575_v43  ;;  %v6962_v62 = vpack.c.bf16 %v4877_v2, %v4875_v59  ;;  %v6974_v13 = vpack.c.bf16 %v4889_v11, %v4887_v19  ;;  %v4902_v59 = vld [vmem:[#allocation10 + $0x1e0] sm:$0xff] }
0x1499   : > { %6949 = vmatpush3.bf16.msra.mxu0 %v6946_v14  ;;  %v5025_v11 = vld [vmem:[#allocation12 + $0x140] sm:$0xff] }
0x149a   : > { %6951 = vmatprep.subr.bf16.mxu0 %v6950_v39  ;;  %v7380_v25 = vpop.eup %7379  ;;  %6963 = vmatprep.subr.bf16.mxu1 %v6962_v62 }
0x149b   : > { %v7382_v36 = vpop.eup %7381  ;;  %v4577_v53 = vmul.f32 %v7380_v25, %v7374_v4  ;;  %v4886_v25 = vld [vmem:[#allocation10 + $0x160] sm:$0xff] }
0x149c   : > { %v4578_v32 = vmul.f32 %v7382_v36, %v7372_v28  ;;  %v4881_v28 = vld [vmem:[#allocation10 + $0x138] sm:$0xff]  ;;  %v4891_v36 = vld [vmem:[#allocation10 + $0x188] sm:$0xff] }
0x149d   : > { %6953 = vmatpush3.bf16.msra.mxu0 %v6950_v39 }
0x149e   : > { %6955 = vmatprep.subr.bf16.mxu0 %v6954_v34 }
0x14a0   : > { %6463 = vmatmul.mubr.msk.f32.vlgmr.msra.gmra.mrb[52].mxu0 %vm1040_vm5, %v4576_v20  ;;  %v4888_v20 = vld [vmem:[#allocation10 + $0x170] sm:$0xff] }
0x14a1   : > { %6465 = vmatprep.mubr.msk.f32.mxu0 %vm1040_vm5, %v4577_v53  ;;  %6957 = vmatpush3.bf16.msra.mxu0 %v6954_v34  ;;  %v4893_v53 = vld [vmem:[#allocation10 + $0x198] sm:$0xff] }
0x14a2   : > { %6959 = vmatprep.subr.bf16.mxu0 %v6958_v26 }
0x14a4   : > { %6466 = vmatmul.mubr.msk.f32.gmra.mrb[54].mxu0 %vm1040_vm5, %v4578_v32  ;;  %v6978_v32 = vpack.c.bf16 %v4893_v53, %v4891_v36  ;;  %v5027_v53 = vld [vmem:[#allocation12 + $0x150] sm:$0xff] }
0x14a5   : > { %6961 = vmatpush3.bf16.msra.mxu0 %v6958_v26  ;;  %v6976_v26 = vpack.c.bf16 %v4888_v20, %v4886_v25  ;;  %v5043_v25 = vld [vmem:[#allocation12 + $0x1d0] sm:$0xff]  ;;  %v5044_v20 = vld [vmem:[#allocation12 + $0x1d8] sm:$0xff] }
0x14a6   : > { %v7014_v36 = vpack.c.bf16 %v5044_v20, %v5043_v25 }
0x1573   : > { %v6464_v37 = vpop.f32.mrb[52].mxu0 }
0x1574   : > { %v4669_v29 = vpop.f32.mrb[53].mxu0 }
0x1575   : > { %6476 = vmatprep.mubr.msk.f32.mxu0 %vm1040_vm5, %v4669_v29  ;;  %v4892_v29 = vld [vmem:[#allocation10 + $0x190] sm:$0xff] }
0x1576   : > { %6477 = vmatmul.mubr.msk.f32.vlgmr.msra.gmra.mrb[44].mxu0 %vm1040_vm5, %v6464_v37  ;;  %v4890_v37 = vld [vmem:[#allocation10 + $0x180] sm:$0xff] }
0x1577   : > { %v6467_v27 = vpop.f32.mrb[54].mxu0 }
0x1578   : > { %v4679_v17 = vpop.f32.mrb[55].mxu0 }
0x1579   : > { %6479 = vmatprep.mubr.msk.f32.mxu0 %vm1040_vm5, %v4679_v17  ;;  %v4895_v17 = vld [vmem:[#allocation10 + $0x1a8] sm:$0xff] }
0x157a   : > { %6480 = vmatmul.mubr.msk.f32.gmra.mrb[46].mxu0 %vm1040_vm5, %v6467_v27  ;;  %v6980_v27 = vpack.c.bf16 %v4892_v29, %v4890_v37  ;;  %v5045_v37 = vld [vmem:[#allocation12 + $0x1e0] sm:$0xff]  ;;  %v5046_v29 = vld [vmem:[#allocation12 + $0x1e8] sm:$0xff] }
0x1649   : > { %v6478_v56 = vpop.f32.mrb[44].mxu0 }
0x164a   : > { %v4798_v42 = vadd.f32 %v6478_v56, %v5502_v31  ;;  %v4766_v46 = vpop.f32.mrb[45].mxu0 }
0x164b   : > { %v4797_v47 = vadd.f32 %v5502_v31, %v4766_v46  ;;  %v4896_v46 = vld [vmem:[#allocation10 + $0x1b0] sm:$0xff] }
0x164c   : > { %v4802_v48 = vadd.f32 %v4798_v42, %v8355_v35  ;;  %v4879_v35 = vld [vmem:[#allocation10 + $0x128] sm:$0xff]  ;;  %v4894_v42 = vld [vmem:[#allocation10 + $0x1a0] sm:$0xff] }
0x164d   : > { %v4801_v49 = vadd.f32 %v4797_v47, %v8351_v30  ;;  %v6481_v1 = vpop.f32.mrb[46].mxu0  ;;  %v6964_v30 = vpack.c.bf16 %v4876_v7, %v4874_v58  ;;  %v6966_v4 = vpack.c.bf16 %v4881_v28, %v4879_v35  ;;  %v6984_v47 = vpack.c.bf16 %v4896_v46, %v4894_v42  ;;  %v4904_v58 = vld [vmem:[#allocation10 + $0x1f0] sm:$0xff]  ;;  %v5033_v7 = vld [vmem:[#allocation12 + $0x180] sm:$0xff]  ;;  %v5034_v35 = vld [vmem:[#allocation12 + $0x188] sm:$0xff] }
0x164e   : > { %v4800_v50 = vadd.f32 %v6481_v1, %v5502_v31  ;;  %4811 = vadd.xlane.f32.xlu0 %v4802_v48  ;;  %v4776_v52 = vpop.f32.mrb[47].mxu0  ;;  %v6992_v62 = vpack.c.bf16 %v4904_v58, %v4902_v59  ;;  %v5017_v28 = vld [vmem:[#allocation12 + $0x100] sm:$0xff] }
0x164f   : > { %v4799_v54 = vadd.f32 %v5502_v31, %v4776_v52  ;;  %4809 = vadd.xlane.f32.xlu1 %v4801_v49  ;;  %6965 = vmatpush1.bf16.msra.mxu1 %v6964_v30  ;;  %v4897_v31 = vld [vmem:[#allocation10 + $0x1b8] sm:$0xff]  ;;  %v4900_v52 = vld [vmem:[#allocation10 + $0x1d0] sm:$0xff]  ;;  %v6994_v30 = vpack.c.bf16 %v5034_v35, %v5033_v7  ;;  %v5506_v7 = vld [vmem:[%s8726_s12 + $0x1] ss:$0 sm:$0xff] }
0x1650   : > { %v4804_v0 = vadd.f32 %v4800_v50, %v8365_v60  ;;  %v6968_v60 = vpack.c.bf16 %v4880_v44, %v4878_v10  ;;  %6967 = vmatprep.subr.bf16.mxu1 %v6966_v4  ;;  %v6982_v56 = vpack.c.bf16 %v4897_v31, %v4895_v17  ;;  %v4898_v50 = vld [vmem:[#allocation10 + $0x1c0] sm:$0xff]  ;;  %v5018_v4 = vld [vmem:[#allocation12 + $0x108] sm:$0xff]  ;;  %v5035_v10 = vld [vmem:[#allocation12 + $0x190] sm:$0xff]  ;;  %v7018_v17 = vpack.c.bf16 %v5046_v29, %v5045_v37 }
0x1651   : > { %v4803_v57 = vadd.f32 %v4799_v54, %v8360_v63  ;;  %v6970_v63 = vpack.c.bf16 %v4885_v15, %v4883_v61  ;;  %v6988_v54 = vpack.c.bf16 %v4900_v52, %v4898_v50  ;;  %v5036_v44 = vld [vmem:[#allocation12 + $0x198] sm:$0xff]  ;;  %v6996_v61 = vpack.c.bf16 %v5018_v4, %v5017_v28  ;;  %6995 = vmatprep.subr.bf16.mxu0 %v6994_v30 }
0x1652   : > { %v6998_v15 = vpack.c.bf16 %v5036_v44, %v5035_v10 }
0x1653   : > { %4815 = vadd.xlane.f32.xlu1 %v4804_v0  ;;  %4813 = vadd.xlane.f32.xlu0 %v4803_v57 }
0x1654   : > { %6969 = vmatpush1.bf16.msra.mxu1 %v6968_v60  ;;  %v5019_v60 = vld [vmem:[#allocation12 + $0x110] sm:$0xff]  ;;  %6997 = vmatpush3.bf16.msra.mxu0 %v6996_v61 }
0x1655   : > { %6971 = vmatprep.subr.bf16.mxu1 %v6970_v63  ;;  %v5020_v63 = vld [vmem:[#allocation12 + $0x118] sm:$0xff]  ;;  %6999 = vmatprep.subr.bf16.mxu0 %v6998_v15 }
0x1658   : > { %6973 = vmatpush1.bf16.msra.mxu1 %v6972_v3  ;;  %v7000_v3 = vpack.c.bf16 %v5020_v63, %v5019_v60  ;;  %v5029_v63 = vld [vmem:[#allocation12 + $0x160] sm:$0xff] }
0x1659   : > { %6975 = vmatprep.subr.bf16.mxu1 %v6974_v13  ;;  %v5026_v13 = vld [vmem:[#allocation12 + $0x148] sm:$0xff] }
0x165a   : > { %7001 = vmatpush3.bf16.msra.mxu0 %v7000_v3  ;;  %v5048_v3 = vld [vmem:[#allocation12 + $0x1f8] sm:$0xff] }
0x165c   : > { %6977 = vmatpush1.bf16.msra.mxu1 %v6976_v26  ;;  %v7012_v26 = vpack.c.bf16 %v5026_v13, %v5025_v11 }
0x165d   : > { %6979 = vmatprep.subr.bf16.mxu1 %v6978_v32  ;;  %v5028_v32 = vld [vmem:[#allocation12 + $0x158] sm:$0xff] }
0x1660   : > { %6981 = vmatpush1.bf16.msra.mxu1 %v6980_v27  ;;  %v7016_v27 = vpack.c.bf16 %v5028_v32, %v5027_v53 }
0x1661   : > { %6983 = vmatprep.subr.bf16.mxu1 %v6982_v56 }
0x1664   : > { %6985 = vmatpush1.bf16.msra.mxu1 %v6984_v47 }
0x16db   : > { %v4812_v40 = vpop.xlane.xlu0 %4811 }
0x16dc   : > { %v4818_v22 = vmul.f32 0.0078125, %v4812_v40  ;;  %v4810_v38 = vpop.xlane.xlu1 %4809  ;;  %v7002_v40 = vpack.c.bf16 %v5038_v8, %v5037_v16  ;;  %v5030_v16 = vld [vmem:[#allocation12 + $0x168] sm:$0xff] }
0x16dd   : > { %v4817_v55 = vmul.f32 0.0078125, %v4810_v38  ;;  %v5022_v38 = vld [vmem:[#allocation12 + $0x128] sm:$0xff]  ;;  %v7020_v8 = vpack.c.bf16 %v5030_v16, %v5029_v63 }
0x16de   : > { %v8646_v5 = vsub.f32 %v4802_v48, %v4818_v22  ;;  %v4899_v48 = vld [vmem:[#allocation10 + $0x1c8] sm:$0xff]  ;;  %v5021_v22 = vld [vmem:[#allocation12 + $0x120] sm:$0xff]  ;;  %7003 = vmatprep.subr.bf16.mxu0 %v7002_v40 }
0x16df   : > { %v8648_v12 = vsub.f32 %v4801_v49, %v4817_v55  ;;  %v4901_v49 = vld [vmem:[#allocation10 + $0x1d8] sm:$0xff]  ;;  %v5039_v55 = vld [vmem:[#allocation12 + $0x1b0] sm:$0xff] }
0x16e0   : > { %v4816_v9 = vpop.xlane.xlu1 %4815  ;;  %v4814_v23 = vpop.xlane.xlu0 %4813  ;;  %v4826_v41 = vmul.f32 %v8646_v5, %v8646_v5  ;;  %v6986_v1 = vpack.c.bf16 %v4901_v49, %v4899_v48 }
0x16e1   : > { %v4820_v33 = vmul.f32 0.0078125, %v4816_v9  ;;  %v4819_v14 = vmul.f32 0.0078125, %v4814_v23  ;;  %v4825_v43 = vmul.f32 %v8648_v12, %v8648_v12  ;;  %v5040_v9 = vld [vmem:[#allocation12 + $0x1b8] sm:$0xff]  ;;  %v7004_v23 = vpack.c.bf16 %v5022_v38, %v5021_v22  ;;  %v5031_v22 = vld [vmem:[#allocation12 + $0x170] sm:$0xff] }
0x16e2   : > { %4831 = vadd.xlane.f32.xlu1 %v4826_v41  ;;  %6987 = vmatprep.subr.bf16.mxu1 %v6986_v1  ;;  %v7006_v41 = vpack.c.bf16 %v5040_v9, %v5039_v55  ;;  %v5032_v38 = vld [vmem:[#allocation12 + $0x178] sm:$0xff] }
0x16e3   : > { %v8654_v18 = vsub.f32 %v4804_v0, %v4820_v33  ;;  %v8656_v45 = vsub.f32 %v4803_v57, %v4819_v14  ;;  %4829 = vadd.xlane.f32.xlu0 %v4825_v43  ;;  %6989 = vmatpush1.bf16.msra.mxu1 %v6988_v54  ;;  %v4903_v0 = vld [vmem:[#allocation10 + $0x1e8] sm:$0xff]  ;;  %v4905_v57 = vld [vmem:[#allocation10 + $0x1f8] sm:$0xff]  ;;  %v5023_v33 = vld [vmem:[#allocation12 + $0x130] sm:$0xff]  ;;  %v7024_v55 = vpack.c.bf16 %v5032_v38, %v5031_v22 }
0x16e4   : > { %v6990_v2 = vpack.c.bf16 %v4905_v57, %v4903_v0  ;;  %v5024_v14 = vld [vmem:[#allocation12 + $0x138] sm:$0xff]  ;;  %v5041_v43 = vld [vmem:[#allocation12 + $0x1c0] sm:$0xff]  ;;  %7005 = vmatpush3.bf16.msra.mxu0 %v7004_v23 }
0x16e5   : > { %v4828_v39 = vmul.f32 %v8654_v18, %v8654_v18  ;;  %v4827_v34 = vmul.f32 %v8656_v45, %v8656_v45  ;;  %7007 = vmatprep.subr.bf16.mxu0 %v7006_v41 }
0x16e6   : > { %6991 = vmatprep.subr.bf16.mxu1 %v6990_v2  ;;  %v5505_v2 = vld [vmem:[%s8725_s11 + $0x1] ss:$0 sm:$0xff] }
0x16e7   : > { %4835 = vadd.xlane.f32.xlu1 %v4828_v39  ;;  %4833 = vadd.xlane.f32.xlu0 %v4827_v34  ;;  %v5042_v39 = vld [vmem:[#allocation12 + $0x1c8] sm:$0xff]  ;;  %v7008_v34 = vpack.c.bf16 %v5024_v14, %v5023_v33 }
0x16e8   : > { %6993 = vmatpush1.bf16.msra.mxu1 %v6992_v62  ;;  %v7010_v19 = vpack.c.bf16 %v5042_v39, %v5041_v43 }
0x16e9   : > { %7009 = vmatpush3.bf16.msra.mxu0 %v7008_v34 }
0x16ea   : > { %7011 = vmatprep.subr.bf16.mxu0 %v7010_v19 }
0x16ed   : > { %7013 = vmatpush3.bf16.msra.mxu0 %v7012_v26 }
0x16ee   : > { %7015 = vmatprep.subr.bf16.mxu0 %v7014_v36 }
0x16f1   : > { %7017 = vmatpush3.bf16.msra.mxu0 %v7016_v27 }
0x16f2   : > { %7019 = vmatprep.subr.bf16.mxu0 %v7018_v17 }
0x16f5   : > { %7021 = vmatpush3.bf16.msra.mxu0 %v7020_v8 }
0x176f   : > { %v4832_v31 = vpop.xlane.xlu1 %4831 }
0x1770   : > { %v4838_v56 = vmul.f32 0.0078125, %v4832_v31  ;;  %v4830_v42 = vpop.xlane.xlu0 %4829 }
0x1771   : > { %v4837_v46 = vmul.f32 0.0078125, %v4830_v42 }
0x1772   : > { %v4842_v47 = vadd.f32 1e-05, %v4838_v56 }
0x1773   : > { %v4841_v48 = vadd.f32 1e-05, %v4837_v46  ;;  %v5509_v46 = vld [vmem:[%s8730_s16 + $0x1] ss:$0 sm:$0xff] }
0x1774   : > { %7383 = vrsqrt.f32 %v4842_v47  ;;  %v4836_v49 = vpop.xlane.xlu1 %4835  ;;  %v4834_v1 = vpop.xlane.xlu0 %4833 }
0x1775   : > { %7385 = vrsqrt.f32 %v4841_v48  ;;  %v4840_v50 = vmul.f32 0.0078125, %v4836_v49  ;;  %v4839_v52 = vmul.f32 0.0078125, %v4834_v1 }
0x1777   : > { %v4844_v54 = vadd.f32 1e-05, %v4840_v50  ;;  %v4843_v0 = vadd.f32 1e-05, %v4839_v52 }
0x1779   : > { %7387 = vrsqrt.f32 %v4843_v0 }
0x177a   : > { %7389 = vrsqrt.f32 %v4844_v54 }
0x177e   : > { %v7384_v57 = vpop.eup %7383 }
0x177f   : > { %v7386_v59 = vpop.eup %7385  ;;  %v4850_v62 = vmul.f32 %v7384_v57, %v8646_v5 }
0x1780   : > { %v4849_v58 = vmul.f32 %v7386_v59, %v8648_v12 }
0x1781   : > { %v4860_v4 = vmul.f32 %v5505_v2, %v4850_v62 }
0x1782   : > { %v4859_v35 = vmul.f32 %v5505_v2, %v4849_v58 }
0x1783   : > { %v7388_v28 = vpop.eup %7387  ;;  %v8675_v61 = vadd.f32 %v5506_v7, %v4860_v4 }
0x1784   : > { %v8670_v30 = vadd.f32 %v5506_v7, %v4859_v35  ;;  %v7390_v10 = vpop.eup %7389  ;;  %v4851_v44 = vmul.f32 %v7388_v28, %v8656_v45 }
0x1785   : > { %v4852_v5 = vmul.f32 %v7390_v10, %v8654_v18  ;;  %v5047_v18 = vld [vmem:[#allocation12 + $0x1f0] sm:$0xff] }
0x1786   : > { %4984 = vmatmul.mubr.f32.vlgmr.msra.gmra.mrb[56].mxu1 %v8670_v30  ;;  %v4861_v12 = vmul.f32 %v5505_v2, %v4851_v44  ;;  %v7022_v40 = vpack.c.bf16 %v5048_v3, %v5047_v18 }
0x1787   : > { %4989 = vmatprep.mubr.f32.mxu1 %v7596_v21  ;;  %v4862_v60 = vmul.f32 %v5505_v2, %v4852_v5 }
0x1788   : > { %v8680_v15 = vadd.f32 %v5506_v7, %v4861_v12  ;;  %7023 = vmatprep.subr.bf16.mxu0 %v7022_v40 }
0x1789   : > { %v8684_v45 = vadd.f32 %v5506_v7, %v4862_v60  ;;  %7025 = vmatpush3.bf16.msra.mxu0 %v7024_v55 }
0x178a   : > { %4990 = vmatmul.mubr.f32.gmra.mrb[58].mxu1 %v8675_v61 }
0x178b   : > { %4995 = vmatprep.mubr.f32.mxu1 %v7596_v21 }
0x178e   : > { %4996 = vmatmul.mubr.f32.gmra.mrb[60].mxu1 %v8680_v15 }
0x178f   : > { %5001 = vmatprep.mubr.f32.mxu1 %v7596_v21  ;;  %v5507_v21 = vld [vmem:[%s8772_s27 + $0x2] sm:$0x3] }
0x1790   : > { %v4912_v9 = vrot.slane %v5507_v21, %v2651_v24  ;;  %v4916_v23 = vrot.slane %v5507_v21, %v2655_v51 }
0x1792   : > { %5002 = vmatmul.mubr.f32.gmra.mrb[62].mxu1 %v8684_v45 }
0x1859   : > { %v4985_v41 = vpop.f32.mrb[56].mxu1 }
0x185a   : > { %v4986_v33 = vadd.f32 %v4985_v41, %v4912_v9  ;;  %v4987_v14 = vpop.f32.mrb[57].mxu1 }
0x185b   : > { %v4988_v43 = vadd.f32 %v4987_v14, %v4916_v23 }
0x185c   : > { %v5008_v19 = vmax.f32 %v4986_v33, 0.0 }
0x185d   : > { %v5009_v39 = vmax.f32 %v4988_v43, 0.0  ;;  %v4991_v34 = vpop.f32.mrb[58].mxu1 }
0x185e   : > { %v4992_v11 = vadd.f32 %v4991_v34, %v4912_v9  ;;  %v4993_v13 = vpop.f32.mrb[59].mxu1 }
0x185f   : > { %v4994_v25 = vadd.f32 %v4993_v13, %v4916_v23  ;;  %5121 = vmatprep.mubr.f32.mxu0 %v5009_v39 }
0x1860   : > { %5122 = vmatmul.mubr.f32.vlgmr.msra.gmra.mrb[56].mxu0 %v5008_v19  ;;  %v5010_v36 = vmax.f32 %v4992_v11, 0.0 }
0x1861   : > { %v5011_v20 = vmax.f32 %v4994_v25, 0.0  ;;  %v4997_v26 = vpop.f32.mrb[60].mxu1  ;;  %v5512_v25 = vld [vmem:[%s8731_s17 + $0x1] ss:$0 sm:$0xff] }
0x1862   : > { %v4998_v53 = vadd.f32 %v4997_v26, %v4912_v9  ;;  %v4999_v24 = vpop.f32.mrb[61].mxu1 }
0x1863   : > { %v5000_v32 = vadd.f32 %v4999_v24, %v4916_v23  ;;  %5126 = vmatprep.mubr.f32.mxu0 %v5011_v20 }
0x1864   : > { %5127 = vmatmul.mubr.f32.gmra.mrb[58].mxu0 %v5010_v36  ;;  %v5012_v37 = vmax.f32 %v4998_v53, 0.0  ;;  %v5513_v36 = vld [vmem:[%s8732_s18 + $0x1] ss:$0 sm:$0xff] }
0x1865   : > { %v5013_v6 = vmax.f32 %v5000_v32, 0.0  ;;  %v5003_v51 = vpop.f32.mrb[62].mxu1 }
0x1866   : > { %v5004_v29 = vadd.f32 %v5003_v51, %v4912_v9  ;;  %v5005_v27 = vpop.f32.mrb[63].mxu1 }
0x1867   : > { %v5006_v17 = vadd.f32 %v5005_v27, %v4916_v23  ;;  %5131 = vmatprep.mubr.f32.mxu0 %v5013_v6 }
0x1868   : > { %5132 = vmatmul.mubr.f32.gmra.mrb[60].mxu0 %v5012_v37  ;;  %v5014_v56 = vmax.f32 %v5004_v29, 0.0 }
0x1869   : > { %v5015_v31 = vmax.f32 %v5006_v17, 0.0 }
0x186b   : > { %5136 = vmatprep.mubr.f32.mxu0 %v5015_v31 }
0x186c   : > { %5137 = vmatmul.mubr.f32.gmra.mrb[62].mxu0 %v5014_v56 }
0x1933   : > { %v5906_v42 = vpop.f32.mrb[56].mxu0 }
0x1934   : > { %v5907_v47 = vpop.f32.mrb[57].mxu0 }
0x1935   : > { %v5908_v48 = vadd.f32 %v5907_v47, %v5906_v42 }
0x1937   : > { %v5124_v49 = vadd.f32 %v5908_v48, %v5509_v46  ;;  %v5909_v1 = vpop.f32.mrb[58].mxu0 }
0x1938   : > { %v5910_v50 = vpop.f32.mrb[59].mxu0 }
0x1939   : > { %v5911_v52 = vadd.f32 %v5910_v50, %v5909_v1  ;;  %v5142_v54 = vadd.f32 %v5124_v49, %v8670_v30 }
0x193b   : > { %v5129_v0 = vadd.f32 %v5911_v52, %v5509_v46  ;;  %5150 = vadd.xlane.f32.xlu0 %v5142_v54  ;;  %v5912_v57 = vpop.f32.mrb[60].mxu0 }
0x193c   : > { %v5913_v59 = vpop.f32.mrb[61].mxu0 }
0x193d   : > { %v5914_v2 = vadd.f32 %v5913_v59, %v5912_v57  ;;  %v5143_v58 = vadd.f32 %v5129_v0, %v8675_v61 }
0x193f   : > { %v5134_v62 = vadd.f32 %v5914_v2, %v5509_v46  ;;  %5152 = vadd.xlane.f32.xlu1 %v5143_v58  ;;  %v5915_v7 = vpop.f32.mrb[62].mxu0 }
0x1940   : > { %v5916_v35 = vpop.f32.mrb[63].mxu0 }
0x1941   : > { %v5917_v28 = vadd.f32 %v5916_v35, %v5915_v7  ;;  %v5144_v4 = vadd.f32 %v5134_v62, %v8680_v15 }
0x1943   : > { %v5139_v10 = vadd.f32 %v5917_v28, %v5509_v46  ;;  %5154 = vadd.xlane.f32.xlu0 %v5144_v4 }
0x1945   : > { %v5145_v44 = vadd.f32 %v5139_v10, %v8684_v45 }
0x1947   : > { %5156 = vadd.xlane.f32.xlu1 %v5145_v44 }
0x19c8   : > { %v5151_v30 = vpop.xlane.xlu0 %5150 }
0x19c9   : > { %v5158_v12 = vmul.f32 0.0078125, %v5151_v30 }
0x19cb   : > { %v5162_v5 = vsub.f32 %v5142_v54, %v5158_v12 }
0x19cc   : > { %v5153_v60 = vpop.xlane.xlu1 %5152 }
0x19cd   : > { %v5159_v63 = vmul.f32 0.0078125, %v5153_v60  ;;  %v5166_v16 = vmul.f32 %v5162_v5, %v5162_v5 }
0x19cf   : > { %v5163_v8 = vsub.f32 %v5143_v58, %v5159_v63  ;;  %5170 = vadd.xlane.f32.xlu0 %v5166_v16 }
0x19d0   : > { %v5155_v61 = vpop.xlane.xlu0 %5154 }
0x19d1   : > { %v5160_v18 = vmul.f32 0.0078125, %v5155_v61  ;;  %v5167_v3 = vmul.f32 %v5163_v8, %v5163_v8 }
0x19d3   : > { %v5164_v40 = vsub.f32 %v5144_v4, %v5160_v18  ;;  %5172 = vadd.xlane.f32.xlu1 %v5167_v3 }
0x19d4   : > { %v5157_v22 = vpop.xlane.xlu1 %5156 }
0x19d5   : > { %v5161_v15 = vmul.f32 0.0078125, %v5157_v22  ;;  %v5168_v38 = vmul.f32 %v5164_v40, %v5164_v40 }
0x19d7   : > { %v5165_v55 = vsub.f32 %v5145_v44, %v5161_v15  ;;  %5174 = vadd.xlane.f32.xlu0 %v5168_v38 }
0x19d9   : > { %v5169_v45 = vmul.f32 %v5165_v55, %v5165_v55 }
0x19db   : > { %5176 = vadd.xlane.f32.xlu1 %v5169_v45 }
0x1a5c   : > { %v5171_v21 = vpop.xlane.xlu0 %5170 }
0x1a5d   : > { %v5178_v9 = vmul.f32 0.0078125, %v5171_v21 }
0x1a5f   : > { %v5182_v23 = vadd.f32 1e-05, %v5178_v9 }
0x1a60   : > { %v5173_v41 = vpop.xlane.xlu1 %5172 }
0x1a61   : > { %7391 = vrsqrt.f32 %v5182_v23  ;;  %v5179_v33 = vmul.f32 0.0078125, %v5173_v41 }
0x1a63   : > { %v5183_v14 = vadd.f32 1e-05, %v5179_v33 }
0x1a64   : > { %v5175_v43 = vpop.xlane.xlu0 %5174 }
0x1a65   : > { %7393 = vrsqrt.f32 %v5183_v14  ;;  %v5180_v39 = vmul.f32 0.0078125, %v5175_v43 }
0x1a67   : > { %v5184_v34 = vadd.f32 1e-05, %v5180_v39 }
0x1a68   : > { %v5177_v19 = vpop.xlane.xlu1 %5176 }
0x1a69   : > { %7395 = vrsqrt.f32 %v5184_v34  ;;  %v5181_v11 = vmul.f32 0.0078125, %v5177_v19 }
0x1a6b   : > { %v7392_v13 = vpop.eup %7391  ;;  %v5185_v20 = vadd.f32 1e-05, %v5181_v11 }
0x1a6c   : > { %v5190_v26 = vmul.f32 %v7392_v13, %v5162_v5 }
0x1a6d   : > { %7397 = vrsqrt.f32 %v5185_v20 }
0x1a6e   : > { %v5200_v53 = vmul.f32 %v5512_v25, %v5190_v26 }
0x1a6f   : > { %v7394_v24 = vpop.eup %7393 }
0x1a70   : > { %v5210_v32 = vadd.f32 %v5513_v36, %v5200_v53  ;;  %v5191_v6 = vmul.f32 %v7394_v24, %v5163_v8 }
0x1a72   : > { %5214 = vst [vmem:[%s633_s20] sm:$0xff] %v5210_v32  ;;  %v5201_v51 = vmul.f32 %v5512_v25, %v5191_v6 }
0x1a73   : > { %v7396_v37 = vpop.eup %7395 }
0x1a74   : > { %v5211_v29 = vadd.f32 %v5513_v36, %v5201_v51  ;;  %v5192_v27 = vmul.f32 %v7396_v37, %v5164_v40 }
0x1a76   : > { %5215 = vst [vmem:[%s633_s20 + $0x8] sm:$0xff] %v5211_v29  ;;  %v5202_v17 = vmul.f32 %v5512_v25, %v5192_v27 }
0x1a77   : > { %v7398_v31 = vpop.eup %7397 }
0x1a78   : > { %v5212_v56 = vadd.f32 %v5513_v36, %v5202_v17  ;;  %v5193_v42 = vmul.f32 %v7398_v31, %v5165_v55 }
0x1a7a   : > { %5216 = vst [vmem:[%s633_s20 + $0x10] sm:$0xff] %v5212_v56  ;;  %v5203_v46 = vmul.f32 %v5512_v25, %v5193_v42 }
0x1a7c   : > { %v5213_v47 = vadd.f32 %v5513_v36, %v5203_v46 }
0x1a7e   : > { %5217 = vst [vmem:[%s633_s20 + $0x18] sm:$0xff] %v5213_v47 }
0x1a7f PF: > { %s8774_s4 = sld [smem:[#allocation17_spill]] }
0x1a85   : > { %s42_s1 = sadd.s32 1, %s8774_s4  }
0x1a86   : > { %p39_p11 = scmp.ge.s32.totalorder %s42_s1, 4  }
0x1a88   :  { %41 = sbr.rel (!%p39_p11) target bundleno = 35 (0x23), region = 155 }
0x1a8f   :  { %5239 = vsyncpa [#allocation6], 1 }
0x1a90   :  { %5241 = vsyncpa [#allocation6 + $0x1], 1 }
0x1a91   :  { %5242 = vsyncpa [#allocation8], 1 }
0x1a92   :  { %5243 = vsyncpa [#allocation11], 1 }

</bundles_post_ra>
